<compile_context>
chip_gen: v7x
topology: tpu7x:2x2x1
jax: 0.10.0
libtpu: 0.0.40
codegen_flags: <defaults>
</compile_context>

<pallas_src>
import functools

import jax
import jax.numpy as jnp
from jax.experimental import pallas as pl
from jax.experimental.pallas import tpu as pltpu

_MIB = 1024 * 1024


def _cca_kernel(x_ref, w_ref, b_ref, gamma_ref, o_ref, *, H, W, C, Cq, bblk,
                mxu_dtype, out_layout):
    """Processes `bblk` images per grid step.

    x_ref:     (bblk, C, H*W)   channel-major (flattened NCHW) input block
    w_ref:     (C, C + 2*Cq)    fused [Wv^T | Wq^T | Wk^T] (MXU dtype)
    b_ref:     (1, C + 2*Cq)    fused [bv | bq | bk] bias (f32)
    gamma_ref: (1, 1)           scalar residual gain in SMEM
    o_ref:     (bblk, C, H*W)   if out_layout == "nchw"
               (bblk, H*W, C)   if out_layout == "nhwc"  (lane-dense store)
    """
    HW = H * W

    def mx(t):  # cast MXU operands only; accumulation stays f32
        return t if mxu_dtype is None else t.astype(mxu_dtype)

    gamma = gamma_ref[0, 0]

    x_cl = x_ref[...]                                   # (bblk, C, HW)
    x_rm = jnp.swapaxes(x_cl, 1, 2)                     # (bblk, HW, C)

    # Fused 1x1-conv projections for the whole batch block: one MXU matmul
    # with M = bblk*HW (fills lanes / amortizes per-step overhead on small
    # feature maps).
    qkv = jnp.dot(mx(x_rm.reshape(bblk * HW, C)), w_ref[...],
                  preferred_element_type=jnp.float32) + b_ref[...]
    qkv = qkv.reshape(bblk, HW, C + 2 * Cq)             # leading-dim split: free

    # Static unroll over the (small) batch block; each image runs the
    # batch-leading, contraction-minor einsum path (canonical batched
    # dot_generals -> batched MXU matmuls).
    for b in range(bblk):
        v = qkv[b, :, 0:C].reshape(H, W, C)             # (H, W, C)
        q = qkv[b, :, C:C + Cq].reshape(H, W, Cq)       # (H, W, Cq)
        k = qkv[b, :, C + Cq:C + 2 * Cq].reshape(H, W, Cq)

        # Column-major copies for the H (vertical) path, shared by the energy
        # and the aggregation matmuls.
        qT = jnp.swapaxes(q, 0, 1)                      # (W, H, Cq)
        kT = jnp.swapaxes(k, 0, 1)                      # (W, H, Cq)
        vT = jnp.swapaxes(v, 0, 1)                      # (W, H, C)

        # ---- H path (attend along a column); batch dim = column j (leading).
        e_h = jnp.einsum('jic,jkc->jik', mx(qT), mx(kT),
                         preferred_element_type=jnp.float32)       # (W, H, H)
        # torch softmax(dim=1) == over the query-row index i (axis 1 here).
        m_h = jnp.max(e_h, axis=1, keepdims=True)
        p_h = jnp.exp(e_h - m_h)
        att_h = p_h * pl.reciprocal(jnp.sum(p_h, axis=1, keepdims=True),
                                    approx=True)
        out_hT = jnp.einsum('jik,jkc->jic', mx(att_h), mx(vT),
                            preferred_element_type=jnp.float32)    # (W, H, C)

        # ---- W path (attend along a row); batch dim = row i (leading).
        e_w = jnp.einsum('ijc,ikc->ijk', mx(q), mx(k),
                         preferred_element_type=jnp.float32)       # (H, W, W)
        m_w = jnp.max(e_w, axis=0, keepdims=True)
        p_w = jnp.exp(e_w - m_w)
        att_w = p_w * pl.reciprocal(jnp.sum(p_w, axis=0, keepdims=True),
                                    approx=True)
        out_w = jnp.einsum('ijk,ikc->ijc', mx(att_w), mx(v),
                           preferred_element_type=jnp.float32)     # (H, W, C)

        out = jnp.swapaxes(out_hT, 0, 1) + out_w                   # (H, W, C)
        res = gamma * out.reshape(HW, C) + x_rm[b]                 # (HW, C)
        if out_layout == "nchw":
            o_ref[b] = res.T.astype(o_ref.dtype)                   # (C, HW)
        else:  # "nhwc": lane-dense store (C on the lane axis)
            o_ref[b] = res.astype(o_ref.dtype)                     # (HW, C)


def _vmem_budget_bytes():
    """~3/4 of the chip's VMEM; never request the full physical capacity."""
    try:
        cap = int(pltpu.get_tpu_info().vmem_capacity_bytes)
    except Exception:
        cap = 0
    if cap <= 0:
        cap = 64 * _MIB    # v7x per-TensorCore size == most restrictive gen
    return (cap * 3) // 4


def _per_image_vmem_bytes(C, H, W, Cq, x_itemsize, mxu_itemsize):
    """Rough per-image VMEM footprint of the whole-image kernel body."""
    HW = H * W
    cout = C + 2 * Cq
    f32 = 4
    io = 2 * 2 * C * HW * x_itemsize                    # in+out blocks, 2x buffered
    big = (C * HW * x_itemsize                          # x_rm
           + HW * cout * f32                            # qkv
           + 2 * C * HW * mxu_itemsize                  # v / vT MXU operand copies
           + 4 * C * HW * f32)                          # out_hT, out_w, out, res
    small = 4 * Cq * HW * mxu_itemsize + 2 * (W * H * H + H * W * W) * f32
    return io + big + small


def _pick_batch_block(B, per_image_bytes, budget_bytes, HW):
    """Images per grid step: fill the MXU on small maps, keep >=2 grid steps
    when possible (both v7x TensorCores busy), stay under the VMEM budget."""
    if HW % 8 != 0:
        return 1        # keep the folded-projection reshape sublane-aligned
    divisors = [d for d in range(1, B + 1) if B % d == 0]
    feasible = [d for d in divisors if d * per_image_bytes <= budget_bytes]
    if not feasible:
        return 1        # whole image already over budget -> see TODO(synk)
    preferred = [d for d in feasible if B // d >= 2]
    return max(preferred) if preferred else max(feasible)


def criss_cross_attention(x_nchw, wq, bq, wk, bk, wv, bv, gamma, *,
                          mxu_dtype=jnp.bfloat16, out_layout="nchw",
                          batch_block=None):
    """CrissCrossAttention forward.

    x_nchw: (B, C, H, W);  wq/wk: (C//8, C);  wv: (C, C);  gamma: scalar.
    mxu_dtype:   dtype of the MXU *operands* (accumulation is always f32).
                 Default bf16 (native MXU dtype on v5e/v6e/v7x); None => f32.
    out_layout:  "nchw" (default, zero wrapper data movement) or "nhwc"
                 (lane-dense (HW, C) kernel stores; wrapper transposes back).
    batch_block: images per grid step; None => heuristic.
    """
    B, C, H, W = x_nchw.shape
    Cq = wq.shape[0]
    HW = H * W
    cout = C + 2 * Cq

    # Metadata-only reshape; keeps the caller's dtype (bf16 I/O stays bf16).
    x_flat = x_nchw.reshape(B, C, HW)

    w_dtype = jnp.float32 if mxu_dtype is None else mxu_dtype
    # Fused QKV weight, pre-transposed to (C_in, C_out) and ordered
    # [Wv | Wq | Wk] (lane-aligned slice starts at production sizes).
    w_fused = jnp.concatenate([wv.T, wq.T, wk.T], axis=1).astype(w_dtype)
    b_fused = jnp.concatenate([bv, bq, bk]).reshape(1, cout).astype(jnp.float32)
    gamma2 = jnp.reshape(gamma, (1, 1)).astype(jnp.float32)

    vmem_budget = _vmem_budget_bytes()
    if batch_block is None:
        mxu_itemsize = jnp.dtype(w_dtype).itemsize
        batch_block = _pick_batch_block(
            B,
            _per_image_vmem_bytes(C, H, W, Cq, x_flat.dtype.itemsize,
                                  mxu_itemsize),
            vmem_budget, HW)
    if B % batch_block != 0:
        raise ValueError("batch_block must divide the batch size")

    kernel = functools.partial(_cca_kernel, H=H, W=W, C=C, Cq=Cq,
                               bblk=batch_block, mxu_dtype=mxu_dtype,
                               out_layout=out_layout)

    if out_layout == "nchw":
        out_shape = jax.ShapeDtypeStruct((B, C, HW), x_nchw.dtype)
        out_spec = pl.BlockSpec((batch_block, C, HW), lambda i: (i, 0, 0))
    elif out_layout == "nhwc":
        out_shape = jax.ShapeDtypeStruct((B, HW, C), x_nchw.dtype)
        out_spec = pl.BlockSpec((batch_block, HW, C), lambda i: (i, 0, 0))
    else:
        raise ValueError(f"unknown out_layout: {out_layout!r}")

    # TODO(synk): production CCNet sizes (C=1024, H=W~97) need a column-strip
    # grid axis with full-image K/V resident in VMEM scratch (softmax(dim=1)
    # is column-local, so column strips need no cross-strip reduction) to fit
    # v7x's 64 MiB VMEM; the whole-image block below covers small/medium maps.
    out = pl.pallas_call(
        kernel,
        out_shape=out_shape,
        grid=(B // batch_block,),
        in_specs=[
            pl.BlockSpec((batch_block, C, HW), lambda i: (i, 0, 0)),   # x
            pl.BlockSpec((C, cout), lambda i: (0, 0)),                 # fused W
            pl.BlockSpec((1, cout), lambda i: (0, 0)),                 # fused b
            pl.BlockSpec(memory_space=pltpu.MemorySpace.SMEM),         # gamma
        ],
        out_specs=out_spec,
        compiler_params=pltpu.CompilerParams(
            dimension_semantics=("parallel",),
            vmem_limit_bytes=vmem_budget),
    )(x_flat, w_fused, b_fused, gamma2)

    if out_layout == "nchw":
        return out.reshape(B, C, H, W)
    # NHWC kernel store; callers needing NCHW pay one XLA transpose here.
    return jnp.transpose(out, (0, 2, 1)).reshape(B, C, H, W)


def _reference(x, wq, bq, wk, bk, wv, bv, gamma):
    """Pure-JAX port of the provided PyTorch forward (softmax dim=1, no mask)."""
    h = x.shape[2]
    q = jnp.einsum('oc,bchw->bohw', wq, x) + bq[None, :, None, None]
    k = jnp.einsum('oc,bchw->bohw', wk, x) + bk[None, :, None, None]
    v = jnp.einsum('oc,bchw->bohw', wv, x) + bv[None, :, None, None]
    e_h = jnp.einsum('bcij,bckj->bijk', q, k)
    e_w = jnp.einsum('bcij,bcik->bijk', q, k)
    energy = jnp.concatenate([e_h, e_w], axis=3)
    att = jax.nn.softmax(energy, axis=1)
    o_h = jnp.einsum('bckj,bijk->bcij', v, att[..., :h])
    o_w = jnp.einsum('bcik,bijk->bcij', v, att[..., h:])
    return gamma * (o_h + o_w) + x


def _check(name, out, ref, atol, rtol):
    if out.shape != ref.shape:
        raise AssertionError(f"{name}: shape {out.shape} != {ref.shape}")
    if not jnp.allclose(out, ref, atol=atol, rtol=rtol):
        md = float(jnp.max(jnp.abs(out - ref)))
        raise AssertionError(f"{name}: kernel/reference mismatch, max|diff|={md}")


if __name__ == "__main__":
    key = jax.random.PRNGKey(0)
    k_x, k_x4, k_wq, k_bq, k_wk, k_bk, k_wv, k_bv = jax.random.split(key, 8)

    # Small shapes consistent with the module: in_dim=32 -> query/key dim 4.
    B, C, H, W = 2, 32, 16, 16
    Cq = C // 8
    scale = 0.1

    x = jax.random.normal(k_x, (B, C, H, W), jnp.float32)
    wq = scale * jax.random.normal(k_wq, (Cq, C), jnp.float32)
    bq = scale * jax.random.normal(k_bq, (Cq,), jnp.float32)
    wk = scale * jax.random.normal(k_wk, (Cq, C), jnp.float32)
    bk = scale * jax.random.normal(k_bk, (Cq,), jnp.float32)
    wv = scale * jax.random.normal(k_wv, (C, C), jnp.float32)
    bv = scale * jax.random.normal(k_bv, (C,), jnp.float32)
    # PyTorch inits gamma = 0 (output would equal x exactly); use a nonzero
    # deterministic value so the attention path is actually exercised.
    gamma = jnp.float32(0.5)

    ref = _reference(x, wq, bq, wk, bk, wv, bv, gamma)

    # 1) Default: bf16 MXU operands, NCHW-preserving store.
    out = jax.block_until_ready(
        criss_cross_attention(x, wq, bq, wk, bk, wv, bv, gamma))
    _check("bf16-mxu/nchw", out, ref, atol=3e-2, rtol=3e-2)

    # 2) Strict f32 MXU operands (tight parity with the f32 PyTorch module).
    out32 = jax.block_until_ready(
        criss_cross_attention(x, wq, bq, wk, bk, wv, bv, gamma,
                              mxu_dtype=None))
    _check("f32-mxu/nchw", out32, ref, atol=1e-2, rtol=1e-2)

    # 3) Lane-dense pixel-major store path.
    out_nhwc = jax.block_until_ready(
        criss_cross_attention(x, wq, bq, wk, bk, wv, bv, gamma,
                              out_layout="nhwc"))
    _check("bf16-mxu/nhwc", out_nhwc, ref, atol=3e-2, rtol=3e-2)

    # 4) Batch-blocked path (2 images per grid step) on a batch of 4.
    x4 = jax.random.normal(k_x4, (4, C, H, W), jnp.float32)
    ref4 = _reference(x4, wq, bq, wk, bk, wv, bv, gamma)
    out4 = jax.block_until_ready(
        criss_cross_attention(x4, wq, bq, wk, bk, wv, bv, gamma,
                              batch_block=2))
    _check("bf16-mxu/bblk=2", out4, ref4, atol=3e-2, rtol=3e-2)

    print("KERNEL_OK")
</pallas_src>

<mosaic_0001>
module attributes {stable_mosaic.version = 11 : i64} {
  func.func @_cca_kernel(%arg0: i32, %arg1: memref<1x32x256xf32, #tpu.memory_space<vmem>>, %arg2: memref<32x40xbf16, #tpu.memory_space<vmem>>, %arg3: memref<1x40xf32, #tpu.memory_space<vmem>>, %arg4: memref<1x1xf32, #tpu.memory_space<smem>>, %arg5: memref<1x32x256xf32, #tpu.memory_space<vmem>>) attributes {dimension_semantics = [#tpu.dimension_semantics<parallel>], iteration_bounds = array<i64: 2>, scalar_prefetch = 0 : i64, scratch_operands = 0 : i64, tpu.core_type = #tpu.core_type<tc>, window_params = [{transform_indices = @transform_0, window_bounds = array<i64: 1, 32, 256>}, {pipeline_mode = #tpu.pipeline_mode<synchronous>, transform_indices = @transform_1, window_bounds = array<i64: 32, 40>}, {pipeline_mode = #tpu.pipeline_mode<synchronous>, transform_indices = @transform_2, window_bounds = array<i64: 1, 40>}, {transform_indices = @transform_3, window_bounds = array<i64: 1, 1>}, {transform_indices = @transform_4, window_bounds = array<i64: 1, 32, 256>}]} {
    %c0 = arith.constant 0 : index
    %c0_0 = arith.constant 0 : index
    %0 = memref.load %arg4[%c0, %c0_0] : memref<1x1xf32, #tpu.memory_space<smem>>
    %c0_1 = arith.constant 0 : index
    %c0_2 = arith.constant 0 : index
    %c0_3 = arith.constant 0 : index
    %1 = vector.load %arg1[%c0_1, %c0_2, %c0_3] : memref<1x32x256xf32, #tpu.memory_space<vmem>>, vector<1x32x256xf32>
    %2 = tpu.transpose %1, [0, 2, 1] : vector<1x32x256xf32> -> vector<1x256x32xf32>
    %3 = vector.shape_cast %2 : vector<1x256x32xf32> to vector<256x32xf32>
    %4 = arith.truncf %3 : vector<256x32xf32> to vector<256x32xbf16>
    %c0_4 = arith.constant 0 : index
    %c0_5 = arith.constant 0 : index
    %5 = vector.load %arg2[%c0_4, %c0_5] : memref<32x40xbf16, #tpu.memory_space<vmem>>, vector<32x40xbf16>
    %cst = arith.constant dense<0.000000e+00> : vector<256x40xf32>
    %6 = tpu.matmul %4, %5, %cst {dimension_numbers = #tpu.dot_dimension_numbers<[1], [0], [0], [1], [0, 0, 1, 1], [], []>} : vector<256x32xbf16>, vector<32x40xbf16>, vector<256x40xf32> -> vector<256x40xf32>
    %c0_6 = arith.constant 0 : index
    %c0_7 = arith.constant 0 : index
    %7 = vector.load %arg3[%c0_6, %c0_7] : memref<1x40xf32, #tpu.memory_space<vmem>>, vector<1x40xf32>
    %8 = vector.broadcast %7 : vector<1x40xf32> to vector<256x40xf32>
    %9 = arith.addf %6, %8 : vector<256x40xf32>
    %10 = vector.shape_cast %9 : vector<256x40xf32> to vector<1x256x40xf32>
    %11 = vector.extract_strided_slice %10 {offsets = [0, 0, 0], sizes = [1, 256, 32], strides = [1, 1, 1]} : vector<1x256x40xf32> to vector<1x256x32xf32>
    %12 = vector.shape_cast %11 : vector<1x256x32xf32> to vector<256x32xf32>
    %13 = vector.shape_cast %12 : vector<256x32xf32> to vector<16x16x32xf32>
    %14 = vector.extract_strided_slice %10 {offsets = [0, 0, 32], sizes = [1, 256, 4], strides = [1, 1, 1]} : vector<1x256x40xf32> to vector<1x256x4xf32>
    %15 = vector.shape_cast %14 : vector<1x256x4xf32> to vector<256x4xf32>
    %16 = vector.shape_cast %15 : vector<256x4xf32> to vector<16x16x4xf32>
    %17 = vector.extract_strided_slice %10 {offsets = [0, 0, 36], sizes = [1, 256, 4], strides = [1, 1, 1]} : vector<1x256x40xf32> to vector<1x256x4xf32>
    %18 = vector.shape_cast %17 : vector<1x256x4xf32> to vector<256x4xf32>
    %19 = vector.shape_cast %18 : vector<256x4xf32> to vector<16x16x4xf32>
    %20 = tpu.transpose %16, [1, 0, 2] : vector<16x16x4xf32> -> vector<16x16x4xf32>
    %21 = tpu.transpose %19, [1, 0, 2] : vector<16x16x4xf32> -> vector<16x16x4xf32>
    %22 = tpu.transpose %13, [1, 0, 2] : vector<16x16x32xf32> -> vector<16x16x32xf32>
    %23 = arith.truncf %20 : vector<16x16x4xf32> to vector<16x16x4xbf16>
    %24 = arith.truncf %21 : vector<16x16x4xf32> to vector<16x16x4xbf16>
    "tpu.trace_start"() <{level = 10 : i32, message = "jic,jkc->jik"}> : () -> ()
    %cst_8 = arith.constant dense<0.000000e+00> : vector<16x16x16xf32>
    %25 = tpu.matmul %23, %24, %cst_8 {dimension_numbers = #tpu.dot_dimension_numbers<[2], [2], [1], [1], [0, 0, 0, 1, 1, 1], [0], [0]>} : vector<16x16x4xbf16>, vector<16x16x4xbf16>, vector<16x16x16xf32> -> vector<16x16x16xf32>
    "tpu.trace_stop"() : () -> ()
    %cst_9 = arith.constant dense<0xFF800000> : vector<16x16xf32>
    %26 = vector.multi_reduction <maximumf>, %25, %cst_9 [1] : vector<16x16x16xf32> to vector<16x16xf32>
    %27 = vector.shape_cast %26 : vector<16x16xf32> to vector<16x1x16xf32>
    %28 = vector.broadcast %27 : vector<16x1x16xf32> to vector<16x16x16xf32>
    %29 = arith.subf %25, %28 : vector<16x16x16xf32>
    %30 = math.exp %29 : vector<16x16x16xf32>
    %cst_10 = arith.constant dense<0.000000e+00> : vector<16x16xf32>
    %31 = vector.multi_reduction <add>, %30, %cst_10 [1] : vector<16x16x16xf32> to vector<16x16xf32>
    %32 = vector.shape_cast %31 : vector<16x16xf32> to vector<16x1x16xf32>
    %33 = tpu.reciprocal %32 {approx = true} : vector<16x1x16xf32> -> vector<16x1x16xf32>
    %34 = vector.broadcast %33 : vector<16x1x16xf32> to vector<16x16x16xf32>
    %35 = arith.mulf %30, %34 : vector<16x16x16xf32>
    %36 = arith.truncf %35 : vector<16x16x16xf32> to vector<16x16x16xbf16>
    %37 = arith.truncf %22 : vector<16x16x32xf32> to vector<16x16x32xbf16>
    "tpu.trace_start"() <{level = 10 : i32, message = "jik,jkc->jic"}> : () -> ()
    %cst_11 = arith.constant dense<0.000000e+00> : vector<16x16x32xf32>
    %38 = tpu.matmul %36, %37, %cst_11 {dimension_numbers = #tpu.dot_dimension_numbers<[2], [1], [1], [2], [0, 0, 0, 1, 1, 2], [0], [0]>} : vector<16x16x16xbf16>, vector<16x16x32xbf16>, vector<16x16x32xf32> -> vector<16x16x32xf32>
    "tpu.trace_stop"() : () -> ()
    %39 = arith.truncf %16 : vector<16x16x4xf32> to vector<16x16x4xbf16>
    %40 = arith.truncf %19 : vector<16x16x4xf32> to vector<16x16x4xbf16>
    "tpu.trace_start"() <{level = 10 : i32, message = "ijc,ikc->ijk"}> : () -> ()
    %cst_12 = arith.constant dense<0.000000e+00> : vector<16x16x16xf32>
    %41 = tpu.matmul %39, %40, %cst_12 {dimension_numbers = #tpu.dot_dimension_numbers<[2], [2], [1], [1], [0, 0, 0, 1, 1, 1], [0], [0]>} : vector<16x16x4xbf16>, vector<16x16x4xbf16>, vector<16x16x16xf32> -> vector<16x16x16xf32>
    "tpu.trace_stop"() : () -> ()
    %cst_13 = arith.constant dense<0xFF800000> : vector<16x16xf32>
    %42 = vector.multi_reduction <maximumf>, %41, %cst_13 [0] : vector<16x16x16xf32> to vector<16x16xf32>
    %43 = vector.shape_cast %42 : vector<16x16xf32> to vector<1x16x16xf32>
    %44 = vector.broadcast %43 : vector<1x16x16xf32> to vector<16x16x16xf32>
    %45 = arith.subf %41, %44 : vector<16x16x16xf32>
    %46 = math.exp %45 : vector<16x16x16xf32>
    %cst_14 = arith.constant dense<0.000000e+00> : vector<16x16xf32>
    %47 = vector.multi_reduction <add>, %46, %cst_14 [0] : vector<16x16x16xf32> to vector<16x16xf32>
    %48 = vector.shape_cast %47 : vector<16x16xf32> to vector<1x16x16xf32>
    %49 = tpu.reciprocal %48 {approx = true} : vector<1x16x16xf32> -> vector<1x16x16xf32>
    %50 = vector.broadcast %49 : vector<1x16x16xf32> to vector<16x16x16xf32>
    %51 = arith.mulf %46, %50 : vector<16x16x16xf32>
    %52 = arith.truncf %51 : vector<16x16x16xf32> to vector<16x16x16xbf16>
    %53 = arith.truncf %13 : vector<16x16x32xf32> to vector<16x16x32xbf16>
    "tpu.trace_start"() <{level = 10 : i32, message = "ijk,ikc->ijc"}> : () -> ()
    %cst_15 = arith.constant dense<0.000000e+00> : vector<16x16x32xf32>
    %54 = tpu.matmul %52, %53, %cst_15 {dimension_numbers = #tpu.dot_dimension_numbers<[2], [1], [1], [2], [0, 0, 0, 1, 1, 2], [0], [0]>} : vector<16x16x16xbf16>, vector<16x16x32xbf16>, vector<16x16x32xf32> -> vector<16x16x32xf32>
    "tpu.trace_stop"() : () -> ()
    %55 = tpu.transpose %38, [1, 0, 2] : vector<16x16x32xf32> -> vector<16x16x32xf32>
    %56 = arith.addf %55, %54 : vector<16x16x32xf32>
    %57 = vector.shape_cast %56 : vector<16x16x32xf32> to vector<256x32xf32>
    %58 = vector.broadcast %0 : f32 to vector<256x32xf32>
    %59 = arith.mulf %58, %57 : vector<256x32xf32>
    %60 = vector.shape_cast %2 : vector<1x256x32xf32> to vector<256x32xf32>
    %61 = arith.addf %59, %60 : vector<256x32xf32>
    %62 = tpu.transpose %61, [1, 0] : vector<256x32xf32> -> vector<32x256xf32>
    %c0_16 = arith.constant 0 : index
    %c0_17 = arith.constant 0 : index
    %c0_18 = arith.constant 0 : index
    %63 = vector.load %arg5[%c0_16, %c0_17, %c0_18] : memref<1x32x256xf32, #tpu.memory_space<vmem>>, vector<1x32x256xf32>
    %64 = vector.shape_cast %63 : vector<1x32x256xf32> to vector<32x256xf32>
    %65 = vector.shape_cast %62 : vector<32x256xf32> to vector<1x32x256xf32>
    tpu.vector_store %arg5[%c0_16, %c0_17, %c0_18], %65 {strides = array<i32>} : memref<1x32x256xf32, #tpu.memory_space<vmem>>, vector<1x32x256xf32>,
    return
  }
  func.func @transform_0(%arg0: i32) -> (i32, i32, i32) {
    %c0_i32 = arith.constant 0 : i32
    %c0_i32_0 = arith.constant 0 : i32
    %c0_i32_1 = arith.constant 0 : i32
    return %arg0, %c0_i32, %c0_i32_0 : i32, i32, i32
  }
  func.func @transform_1(%arg0: i32) -> (i32, i32) {
    %c0_i32 = arith.constant 0 : i32
    %c0_i32_0 = arith.constant 0 : i32
    %c0_i32_1 = arith.constant 0 : i32
    return %c0_i32, %c0_i32_0 : i32, i32
  }
  func.func @transform_2(%arg0: i32) -> (i32, i32) {
    %c0_i32 = arith.constant 0 : i32
    %c0_i32_0 = arith.constant 0 : i32
    %c0_i32_1 = arith.constant 0 : i32
    return %c0_i32, %c0_i32_0 : i32, i32
  }
  func.func @transform_3(%arg0: i32) -> (i32, i32) {
    %c0_i32 = arith.constant 0 : i32
    %c0_i32_0 = arith.constant 0 : i32
    %c0_i32_1 = arith.constant 0 : i32
    return %c0_i32, %c0_i32_0 : i32, i32
  }
  func.func @transform_4(%arg0: i32) -> (i32, i32, i32) {
    %c0_i32 = arith.constant 0 : i32
    %c0_i32_0 = arith.constant 0 : i32
    %c0_i32_1 = arith.constant 0 : i32
    return %arg0, %c0_i32, %c0_i32_0 : i32, i32, i32
  }
}

</mosaic_0001>

<bundles_post_ra>
// kernel: tpu_custom_call.1
= control target key start
LH: loop header
LB: loop body
LE: loop exit
PB: predicated region body
PF: predicated region fallthrough
CT: control target
= control target key end

     0   :  { %s11242_s0 = inlined_call_operand.hbm [shape: f32[2,32,256], index: 0, kind: input, shape index: {}]   ;;  %s11243_s1 = inlined_call_operand.hbm [shape: bf16[32,40], index: 1, kind: input, shape index: {}]   ;;  %s11244_s2 = inlined_call_operand.vmem [shape: f32[1,40], index: 2, kind: input, shape index: {}]   ;;  %s11245_s3 = inlined_call_operand.<no memory space> [shape: f32[1,1], index: 3, kind: input, shape index: {}]   ;;  %s11246_s4 = inlined_call_operand.hbm [shape: f32[2,32,256], index: 4, kind: output, shape index: {}]  }
   0x1   :  { %9 = sst [smem:[#allocation2]] %s11245_s3 }
   0x2   :  { %10 = vsyncpa [#allocation4], 0 }
   0x3   :  { %12 = vsyncpa [#allocation4 + $0x1], 0 }
   0x4   :  { %13 = vsyncpa [#allocation7], 0 }
   0x5   :  { %14 = vsyncpa [#allocation5], 0 }
   0x6   :  { %16 = vsyncpa [#allocation5 + $0x1], 0  ;;  %s8072_s17 = smov 0   ;;  %s8074_s18 = smov 0  }
   0x7   :  { %s8076_s19 = smov 0   ;;  %s8078_s20 = smov 0  }
   0x8 LB: > { %s8093_s3 = sadd.s32 4294967295, %s8027_s20   ;;  %s6997_s21 = sadd.s32 4294967294, %s8027_s20   ;;  %s8027_s20 = sphi %s8078_s20, %s11636_s20   ;;  %s8023_s19 = sphi %s8076_s19, %s11635_s19   ;;  %s8019_s18 = sphi %s8074_s18, %s11634_s18   ;;  %s8015_s17 = sphi %s8072_s17, %s11633_s17  }
   0x9   : > { %p42_p0 = scmp.ne.s32.totalorder %s8019_s18, %s8015_s17  ;;  %p11247_p1 = scmp.eq.s32.totalorder %s8093_s3, 0 }
   0xa   : > { %p135_p3 = scmp.eq.s32.totalorder %s6997_s21, 1  ;;  %p6998_p5 = scmp.ge.s32.totalorder %s8027_s20, 1 }
   0xb   : > { %p8102_p4 = por %p11247_p1, %p42_p0  ;;  %p142_p7 = scmp.lt.s32.totalorder %s8027_s20, 3 }
   0xc   : > { %p8107_p6 = por %p135_p3, %p42_p0  ;;  %s8029_s25 = smov [#allocation6]  }
   0xd   : > { %s11372_s22 = scalar_select %p8102_p4, 1, 0 }
   0xe   : > { %s11373_s23 = scalar_select %p8107_p6, 1, 0 }
   0xf   : > { %p8112_p8 = pnand %p6998_p5, %p142_p7  ;;  %s154_s26 = sshll.u32 %s8029_s25, 4  ;;  %s8116_s26 = int_to_ptr.vmem [resolvable:$true] %s154_s26 }
  0x10   : > { %s8128_s28 = sadd.s32 1, %s8027_s20   ;;  %s29_s29 = sadd.s32 1, %s8023_s19 }
  0x11   : > { %s11374_s24 = scalar_select %p8112_p8, 1, 0 }
  0x12   : > { %p7672_p9 = pneg %p8112_p8  ;;  %s26_s30 = ssub.s32 %s8027_s20, %s8128_s28 }
  0x13   : > { %s7899_s7 = scalar_lea.hbm %s11243_s1, 256 }
  0x14   : > { %p8123_p11 = pnand %p7672_p9, %p11247_p1  ;;  %p7900_p12 = scmp.ne.s32.totalorder %s11243_s1, %s7899_s7 }
  0x15   : > { %p7906_p5 = scmp.lt.u32.totalorder %s7899_s7, %s11243_s1 }
  0x16   : > { %p7901_p13 = pneg %p8123_p11 }
  0x18   : > { %p7902_p0 = pnand %p7901_p13, %p7900_p12 }
  0x1a   : > { %p7903_p3 = pneg %p7902_p0 }
  0x1c   : > { %p7908_p7 = pnand %p7906_p5, %p7903_p3 }
  0x1e   : > { %7911 = shalt.err (!%p7908_p7)
}
  0x1f   : > { %s7912_s12 = scalar_lea.vmem %s8116_s26, 256  ;;  %p7920_p2 = scmp.lt.s32.totalorder %s8116_s26, %s8116_s26 }
  0x20   : > { %p7913_p9 = scmp.ne.s32.totalorder %s8116_s26, %s7912_s12  ;;  %p7921_p6 = scmp.lt.s32.totalorder %s7912_s12, %s7912_s12 }
  0x22   : > { %p7915_p10 = pnand %p7913_p9, %p7901_p13  ;;  %p7922_p4 = por %p7921_p6, %p7920_p2 }
  0x24   : > { %p7916_p1 = pneg %p7915_p10 }
  0x26   : > { %p7923_p8 = pnand %p7922_p4, %p7916_p1 }
  0x28   : > { %7926 = shalt.err (!%p7923_p8)
}
  0x29   : > { %s8030_s13 = smov 64   ;;  %s8031_s14 = smov 4  }
  0x2a   : > { %7675 = dma.hbm_to_vmem [thread:$0]  (!%p8123_p11), %s11243_s1, 256, %s8116_s26, [#allocation7], %s8030_s13, %s8030_s13, %s8031_s14  }
  0x2b   : > { %p27_p2 = scmp.eq.s32.totalorder %s26_s30, 0  ;;  %p36_p1 = scmp.ne.s32.totalorder %s8023_s19, %s8019_s18 }
  0x2c   : > { %p37_p4 = scmp.eq.s32.totalorder %s8027_s20, 0  ;;  %p7685_p6 = scmp.lt.s32.totalorder %s8027_s20, 2 }
  0x2d   : > { %s8159_s21 = scalar_select %p27_p2, %s8023_s19, %s29_s29  }
  0x2e   : > { %p38_p8 = por %p37_p4, %p36_p1  ;;  %p11376_p10 = scmp.eq.s32.totalorder %s8093_s3, 1 }
  0x2f   : > { %s174_s5 = sand.u32 1, %s8023_s19   ;;  %s7096_s6 = sshll.u32 %s8027_s20, 10 }
  0x30   : > { %p8163_p12 = por %p11376_p10, %p36_p1  ;;  %s7001_s7 = sshll.u32 %s174_s5, 6 }
  0x31   : > { %s8172_s9 = scalar_lea.hbm %s11242_s0, %s7096_s6  ;;  %s178_s26 = scalar_lea.vmem [#allocation3], %s7001_s7 }
  0x32   : > { %s185_s29 = sshll.u32 %s178_s26, 4  ;;  %p8174_p11 = pnand %p7685_p6, %p38_p8  ;;  %s8178_s29 = int_to_ptr.vmem [resolvable:$true] %s185_s29 }
  0x33   : > { %s8180_s10 = scalar_lea.sflag [#allocation4], %s174_s5  ;;  %s7927_s11 = scalar_lea.hbm %s8172_s9, 1024 }
  0x34   : > { %p7928_p13 = scmp.ne.s32.totalorder %s8172_s9, %s7927_s11  ;;  %p7929_p0 = pneg %p8174_p11 }
  0x35   : > { %s7932_s14 = scalar_lea.hbm %s11242_s0, 2048  ;;  %p7933_p7 = scmp.lt.u32.totalorder %s8172_s9, %s11242_s0 }
  0x36   : > { %p7930_p3 = pnand %p7929_p0, %p7928_p13  ;;  %p7934_p9 = scmp.lt.u32.totalorder %s7932_s14, %s7927_s11 }
  0x37   : > { %p7936_p1 = scmp.lt.u32.totalorder %s7927_s11, %s8172_s9 }
  0x38   : > { %p7931_p5 = pneg %p7930_p3  ;;  %p7935_p2 = por %p7934_p9, %p7933_p7 }
  0x3a   : > { %p7937_p4 = por %p7936_p1, %p7935_p2 }
  0x3c   : > { %p7938_p6 = pnand %p7937_p4, %p7931_p5 }
  0x3e   : > { %7941 = shalt.err (!%p7938_p6)
}
  0x3f   : > { %s7942_s5 = scalar_lea.vmem %s8178_s29, 1024  ;;  %s8032_s6 = smov [#allocation3]  }
  0x40   : > { %p7943_p8 = scmp.ne.s32.totalorder %s8178_s29, %s7942_s5  ;;  %s7947_s7 = sshll.u32 %s8032_s6, 4  ;;  %s7948_s7 = int_to_ptr.vmem [resolvable:$false] %s7947_s7 }
  0x41   : > { %s7949_s27 = scalar_lea.vmem %s7948_s7, 2048  ;;  %p7950_p3 = scmp.lt.s32.totalorder %s8178_s29, %s7948_s7 }
  0x42   : > { %p7945_p10 = pnand %p7943_p8, %p7929_p0  ;;  %p7951_p7 = scmp.lt.s32.totalorder %s7949_s27, %s7942_s5 }
  0x44   : > { %p7946_p13 = pneg %p7945_p10  ;;  %p7952_p9 = por %p7951_p7, %p7950_p3 }
  0x46   : > { %p7953_p2 = pnand %p7952_p9, %p7946_p13 }
  0x48   : > { %7956 = shalt.err (!%p7953_p2)
}
  0x49   : > { %s8033_s8 = smov 256   ;;  %s8034_s26 = smov 16  }
  0x4a   : > { %7679 = dma.hbm_to_vmem [thread:$0]  (!%p8174_p11), %s8172_s9, 1024, %s8178_s29, %s8180_s10, %s8033_s8, %s8033_s8, %s8034_s26  }
  0x4b   : > { %p11379_p0 = scmp.ne.s32.totalorder %s11374_s24, 0 }
  0x4d   : > { %197 = sbr.rel (%p11379_p0) target bundleno = 1814 (0x716), region = 36 }
  0x54   : > { %s8211_s11 = sand.u32 1, %s8019_s18   ;;  %p11380_p5 = scmp.ne.s32.totalorder %s11372_s22, 0 }
  0x55   : > { %s7005_s12 = sshll.u32 %s8211_s11, 6  ;;  %s200_s13 = scalar_lea.sflag [#allocation4], %s8211_s11 }
  0x56   : > { %s203_s14 = scalar_lea.vmem [#allocation3], %s7005_s12 }
  0x57   : > { %8002 = dma.done.wait (%p11380_p5), %s200_s13, 1024  }
  0x58   : > { %8004 = vsyncadd (%p11380_p5), %s200_s13, 4294966272  ;;  %p11381_p11 = scmp.eq.s32.totalorder %s8093_s3, 0 }
  0x5a   : > { %8006 = dma.done.wait (%p11381_p11), [#allocation7], 256   ;;  %p11382_p1 = pmov %p11381_p11 }
  0x5b   : > { %v234_v0 = vld [vmem:[%s203_s14] sm:$0xff]  ;;  %v235_v1 = vld [vmem:[%s203_s14 + $0x8] sm:$0xff]  ;;  %v236_v2 = vld [vmem:[%s203_s14 + $0x10] sm:$0xff]  ;;  %vm345_vm0 = vcmask 261120   ;;  %s8035_s9 = smov 96   ;;  %s8036_s29 = smov 92  }
  0x5c   : > { %8008 = vsyncadd (%p11382_p1), [#allocation7], 4294967040  ;;  %242 = vxpose.xlu0.b32.start [1/4] (short) %v234_v0, 128  ;;  %274 = vxpose.xlu1.b32.start [1/4] (short) %v235_v1, 128  ;;  %v237_v3 = vld [vmem:[%s203_s14 + $0x18] sm:$0xff]  ;;  %v7733_v4 = vld [vmem:[#allocation6] sm:$0xff]   ;;  %v8037_v1 = vmov 1983009808  }
  0x5d   : > { %v238_v5 = vld [vmem:[%s203_s14 + $0x20] sm:$0xff]  ;;  %v239_v6 = vld [vmem:[%s203_s14 + $0x28] sm:$0xff]  ;;  %7244 = vmatprep.subr.bf16.mxu0 %v7733_v4  ;;  %v240_v8 = vld [vmem:[%s203_s14 + $0x30] sm:$0xff]  ;;  %vm8040_vm1 = vmmov 0   ;;  %vm2443_vm2 = vcmask 31744   ;;  %vm3196_vm3 = vcmask 130048  }
  0x5e   : > { %7245 = vmatpush3.bf16.msra.mxu0 %v7733_v4  ;;  %v7734_v7 = vld [vmem:[#allocation6 + $0x8] sm:$0xff]   ;;  %v241_v9 = vld [vmem:[%s203_s14 + $0x38] sm:$0xff]  ;;  %v8340_v58 = vld [vmem:[%s11244_s2] ss:$0 sm:$0xff]  ;;  %s233_s30 = sld [smem:[#allocation2]]  ;;  %s231_s10 = scalar_lea.vmem [#allocation8], %s7005_s12 }
  0x5f   : > { %7246 = vmatprep.subr.bf16.mxu0 %v7734_v7  ;;  %s6914_s15 = sshll.u32 %s231_s10, 4  ;;  %s7097_s16 = sshll.u32 %s8093_s3, 10  ;;  %s11193_s15 = int_to_ptr.vmem [resolvable:$true] %s6914_s15 }
  0x60   : > { %243 = vxpose.xlu0.b32.cont [2/4] (short) %v236_v2, 128  ;;  %275 = vxpose.xlu1.b32.cont [2/4] (short) %v237_v3, 128  ;;  %v686_v2 = vunpack.c.l.s4 %v8037_v1  ;;  %v688_v3 = vlaneseq  ;;  %s11198_s7 = scalar_lea.hbm %s11246_s4, %s7097_s16  ;;  %s6901_s27 = scalar_lea.sflag [#allocation5], %s8211_s11 }
  0x61   : > { %s7957_s8 = scalar_lea.vmem %s11193_s15, 1024  ;;  %s8041_s3 = smov [#allocation8]  }
  0x62   : > { %7247 = vmatpush3.bf16.msra.mxu0 %v7734_v7  ;;  %v687_v4 = vunpack.c.0.s8 %v686_v2  ;;  %p7958_p4 = scmp.ne.s32.totalorder %s11193_s15, %s7957_s8  ;;  %s7961_s26 = sshll.u32 %s8041_s3, 4  ;;  %s7962_s26 = int_to_ptr.vmem [resolvable:$false] %s7961_s26 }
  0x63   : > { %s7963_s12 = scalar_lea.vmem %s7962_s26, 2048  ;;  %p7964_p10 = scmp.lt.s32.totalorder %s11193_s15, %s7962_s26 }
  0x64   : > { %244 = vxpose.xlu0.b32.cont [3/4] (short) %v238_v5, 128  ;;  %276 = vxpose.xlu1.b32.cont [3/4] (short) %v239_v6, 128  ;;  %v689_v5 = vshrl.u32 %v688_v3, 7  ;;  %p7959_p6 = pnand %p7958_p4, %p8163_p12  ;;  %p7965_p13 = scmp.lt.s32.totalorder %s7963_s12, %s7957_s8 }
  0x66   : > { %p7960_p8 = pneg %p7959_p6  ;;  %p7966_p3 = por %p7965_p13, %p7964_p10 }
  0x68   : > { %245 = vxpose.xlu0.b32.end [4/4] (short) %v240_v8, 128  ;;  %277 = vxpose.xlu1.b32.end [4/4] (short) %v241_v9, 128  ;;  %v8363_v8 = vsub.s32 %v687_v4, %v689_v5  ;;  %v8038_v4 = vmov 1934713408   ;;  %p7967_p7 = pnand %p7966_p3, %p7960_p8 }
  0x6a   : > { %11415 = vst [vmem:[#allocation44_spill] sm:$0xff] %v8363_v8 }
  0xdc   : > { %v8225_v10 = vpop.trf.xlu0  ;;  %v8227_v11 = vpop.trf.xlu1 }
  0xdd   : > { %11383 = vst [vmem:[#allocation12_spill] sm:$0xff] %v8225_v10  ;;  %11384 = vst [vmem:[#allocation13_spill] sm:$0xff] %v8227_v11 }
  0xe0   : > { %v8229_v12 = vpop.trf.xlu0  ;;  %v8233_v14 = vpop.trf.xlu1 }
  0xe1   : > { %11385 = vst [vmem:[#allocation14_spill] sm:$0xff] %v8229_v12  ;;  %v306_v13 = vpack.c.bf16 %v8229_v12, %v8225_v10  ;;  %11386 = vst [vmem:[#allocation15_spill] sm:$0xff] %v8233_v14  ;;  %v314_v45 = vpack.c.bf16 %v8233_v14, %v8227_v11  ;;  %v11277_v14 = vmov 0.0  }
  0xe2   : > { %7280 = vmatprep.subr.bf16.mxu1 %v11277_v14  ;;  %7328 = vmatprep.subr.bf16.mxu0 %v11277_v14 }
  0xe3   : > { %7248 = vmatprep.mubr.msk.bf16.mxu0 %vm345_vm0, %v306_v13 }
  0xe4   : > { %v8236_v15 = vpop.trf.xlu0  ;;  %v8240_v17 = vpop.trf.xlu1 }
  0xe5   : > { %11387 = vst [vmem:[#allocation16_spill] sm:$0xff] %v8236_v15  ;;  %11389 = vst [vmem:[#allocation18_spill] sm:$0xff] %v8240_v17 }
  0xe8   : > { %v8238_v16 = vpop.trf.xlu0  ;;  %v8247_v20 = vpop.trf.xlu1 }
  0xe9   : > { %11388 = vst [vmem:[#allocation17_spill] sm:$0xff] %v8238_v16  ;;  %v307_v18 = vpack.c.bf16 %v8238_v16, %v8236_v15  ;;  %11391 = vst [vmem:[#allocation20_spill] sm:$0xff] %v8247_v20  ;;  %v315_v47 = vpack.c.bf16 %v8247_v20, %v8240_v17 }
  0xeb   : > { %7249 = vmatmul.mubr.msk.bf16.vlgmr.msra.gmra.mrb[0].mxu0 %vm345_vm0, %v307_v18 }
  0xec   : > { %v8245_v19 = vpop.trf.xlu0  ;;  %v8256_v24 = vpop.trf.xlu1 }
  0xed   : > { %11390 = vst [vmem:[#allocation19_spill] sm:$0xff] %v8245_v19  ;;  %11394 = vst [vmem:[#allocation23_spill] sm:$0xff] %v8256_v24 }
  0xf0   : > { %v8249_v21 = vpop.trf.xlu0  ;;  %v8262_v27 = vpop.trf.xlu1 }
  0xf1   : > { %11392 = vst [vmem:[#allocation21_spill] sm:$0xff] %v8249_v21  ;;  %v308_v22 = vpack.c.bf16 %v8249_v21, %v8245_v19  ;;  %11396 = vst [vmem:[#allocation25_spill] sm:$0xff] %v8262_v27  ;;  %v316_v48 = vpack.c.bf16 %v8262_v27, %v8256_v24 }
  0xf3   : > { %7252 = vmatprep.mubr.msk.bf16.mxu0 %vm345_vm0, %v308_v22 }
  0xf4   : > { %v8254_v23 = vpop.trf.xlu0  ;;  %v8269_v30 = vpop.trf.xlu1 }
  0xf5   : > { %11393 = vst [vmem:[#allocation22_spill] sm:$0xff] %v8254_v23  ;;  %11399 = vst [vmem:[#allocation28_spill] sm:$0xff] %v8269_v30 }
  0xf8   : > { %v8258_v25 = vpop.trf.xlu0  ;;  %v8276_v33 = vpop.trf.xlu1 }
  0xf9   : > { %11395 = vst [vmem:[#allocation24_spill] sm:$0xff] %v8258_v25  ;;  %v309_v26 = vpack.c.bf16 %v8258_v25, %v8254_v23  ;;  %11401 = vst [vmem:[#allocation30_spill] sm:$0xff] %v8276_v33  ;;  %v317_v50 = vpack.c.bf16 %v8276_v33, %v8269_v30 }
  0xfb   : > { %7253 = vmatmul.mubr.msk.bf16.gmra.mrb[4].mxu0 %vm345_vm0, %v309_v26 }
  0xfc   : > { %v8265_v28 = vpop.trf.xlu0  ;;  %v8285_v37 = vpop.trf.xlu1 }
  0xfd   : > { %11397 = vst [vmem:[#allocation26_spill] sm:$0xff] %v8265_v28  ;;  %11404 = vst [vmem:[#allocation33_spill] sm:$0xff] %v8285_v37 }
 0x100   : > { %v8267_v29 = vpop.trf.xlu0  ;;  %v8291_v40 = vpop.trf.xlu1 }
 0x101   : > { %11398 = vst [vmem:[#allocation27_spill] sm:$0xff] %v8267_v29  ;;  %v310_v31 = vpack.c.bf16 %v8267_v29, %v8265_v28  ;;  %11406 = vst [vmem:[#allocation35_spill] sm:$0xff] %v8291_v40  ;;  %v318_v51 = vpack.c.bf16 %v8291_v40, %v8285_v37 }
 0x103   : > { %7256 = vmatprep.mubr.msk.bf16.mxu0 %vm345_vm0, %v310_v31 }
 0x104   : > { %v8274_v32 = vpop.trf.xlu0  ;;  %v8298_v43 = vpop.trf.xlu1 }
 0x105   : > { %11400 = vst [vmem:[#allocation29_spill] sm:$0xff] %v8274_v32  ;;  %11409 = vst [vmem:[#allocation38_spill] sm:$0xff] %v8298_v43 }
 0x108   : > { %v8278_v34 = vpop.trf.xlu0  ;;  %v8306_v46 = vpop.trf.xlu1 }
 0x109   : > { %11402 = vst [vmem:[#allocation31_spill] sm:$0xff] %v8278_v34  ;;  %v311_v35 = vpack.c.bf16 %v8278_v34, %v8274_v32  ;;  %11410 = vst [vmem:[#allocation39_spill] sm:$0xff] %v8306_v46  ;;  %v319_v54 = vpack.c.bf16 %v8306_v46, %v8298_v43 }
 0x10b   : > { %7257 = vmatmul.mubr.msk.bf16.gmra.mrb[8].mxu0 %vm345_vm0, %v311_v35 }
 0x10c   : > { %v8283_v36 = vpop.trf.xlu0  ;;  %v8314_v49 = vpop.trf.xlu1 }
 0x10d   : > { %11403 = vst [vmem:[#allocation32_spill] sm:$0xff] %v8283_v36  ;;  %11411 = vst [vmem:[#allocation40_spill] sm:$0xff] %v8314_v49 }
 0x110   : > { %v8287_v38 = vpop.trf.xlu0  ;;  %v8320_v52 = vpop.trf.xlu1 }
 0x111   : > { %11405 = vst [vmem:[#allocation34_spill] sm:$0xff] %v8287_v38  ;;  %v312_v39 = vpack.c.bf16 %v8287_v38, %v8283_v36  ;;  %11412 = vst [vmem:[#allocation41_spill] sm:$0xff] %v8320_v52  ;;  %v320_v55 = vpack.c.bf16 %v8320_v52, %v8314_v49 }
 0x113   : > { %7260 = vmatprep.mubr.msk.bf16.mxu0 %vm345_vm0, %v312_v39 }
 0x114   : > { %v8294_v41 = vpop.trf.xlu0  ;;  %v8324_v53 = vpop.trf.xlu1 }
 0x115   : > { %11407 = vst [vmem:[#allocation36_spill] sm:$0xff] %v8294_v41  ;;  %11413 = vst [vmem:[#allocation42_spill] sm:$0xff] %v8324_v53 }
 0x118   : > { %v8296_v42 = vpop.trf.xlu0  ;;  %v8332_v56 = vpop.trf.xlu1 }
 0x119   : > { %11408 = vst [vmem:[#allocation37_spill] sm:$0xff] %v8296_v42  ;;  %v313_v44 = vpack.c.bf16 %v8296_v42, %v8294_v41  ;;  %11414 = vst [vmem:[#allocation43_spill] sm:$0xff] %v8332_v56  ;;  %v321_v57 = vpack.c.bf16 %v8332_v56, %v8324_v53 }
 0x11b   : > { %7261 = vmatmul.mubr.msk.bf16.gmra.mrb[12].mxu0 %vm345_vm0, %v313_v44 }
 0x11c   : > { %7264 = vmatprep.mubr.msk.bf16.mxu0 %vm345_vm0, %v314_v45 }
 0x123   : > { %7265 = vmatmul.mubr.msk.bf16.gmra.mrb[16].mxu0 %vm345_vm0, %v315_v47 }
 0x124   : > { %7268 = vmatprep.mubr.msk.bf16.mxu0 %vm345_vm0, %v316_v48 }
 0x12b   : > { %7269 = vmatmul.mubr.msk.bf16.gmra.mrb[20].mxu0 %vm345_vm0, %v317_v50 }
 0x12c   : > { %7272 = vmatprep.mubr.msk.bf16.mxu0 %vm345_vm0, %v318_v51 }
 0x133   : > { %7273 = vmatmul.mubr.msk.bf16.gmra.mrb[24].mxu0 %vm345_vm0, %v319_v54 }
 0x134   : > { %7276 = vmatprep.mubr.msk.bf16.mxu0 %vm345_vm0, %v320_v55 }
 0x13b   : > { %7277 = vmatmul.mubr.msk.bf16.gmra.mrb[28].mxu0 %vm345_vm0, %v321_v57 }
 0x1be   : > { %v7250_v59 = vpop.f32.mrb[0].mxu0 }
 0x1bf   : > { %v8343_v60 = vadd.f32 %v7250_v59, %v8340_v58  ;;  %v428_v61 = vpop.f32.mrb[1].mxu0 }
 0x1c0   : > { %v8345_v62 = vpop.f32.mrb[2].mxu0  ;;  %v8354_v0 = vadd.f32 %v8340_v58, %v428_v61 }
 0x1c1   : > { %591 = vrot.lane.b32.xlu0 %v8343_v60, %s8035_s9  ;;  %1231 = vrot.lane.b32.xlu1 %v8343_v60, %s8036_s29  ;;  %v8351_v63 = vpop.f32.mrb[3].mxu0 }
 0x1c5   : > { %587 = vrot.lane.b32.xlu1 %v8354_v0, %s8035_s9  ;;  %1227 = vrot.lane.b32.xlu0 %v8354_v0, %s8036_s29 }
 0x1ce   : > { %v7254_v6 = vpop.f32.mrb[4].mxu0 }
 0x1cf   : > { %v8361_v7 = vadd.f32 %v7254_v6, %v8340_v58  ;;  %v444_v9 = vpop.f32.mrb[5].mxu0  ;;  %v750_v6 = vunpack.c.l.s4 %v8038_v4 }
 0x1d0   : > { %v8366_v13 = vadd.f32 %v8340_v58, %v444_v9  ;;  %v8368_v18 = vpop.f32.mrb[6].mxu0 }
 0x1d1   : > { %v1883_v22 = vcombine.low %v8343_v60, %v8361_v7  ;;  %v1884_v26 = vcombine.high %v8343_v60, %v8361_v7  ;;  %599 = vrot.lane.b32.xlu0 %v8361_v7, %s8035_s9  ;;  %1239 = vrot.lane.b32.xlu1 %v8361_v7, %s8036_s29  ;;  %v8378_v31 = vpop.f32.mrb[7].mxu0 }
 0x1d2   : > { %v1867_v35 = vcombine.low %v8354_v0, %v8366_v13  ;;  %v1868_v39 = vcombine.high %v8354_v0, %v8366_v13 }
 0x1d3   : > { %v1891_v44 = vrot.slane %v1883_v22, %v8363_v8  ;;  %v8386_v45 = vrot.slane %v1884_v26, %v8363_v8 }
 0x1d4   : > { %v1875_v47 = vrot.slane %v1867_v35, %v8363_v8  ;;  %v1882_v48 = vrot.slane %v1868_v39, %v8363_v8  ;;  %v751_v35 = vunpack.c.0.s8 %v750_v6 }
 0x1d5   : > { %1235 = vrot.lane.b32.xlu1 %v8366_v13, %s8036_s29 }
 0x1d6   : > { %v1931_v50 = vcombine.low %v1875_v47, %v1891_v44  ;;  %v1932_v51 = vcombine.high %v1875_v47, %v1891_v44  ;;  %v1947_v54 = vcombine.low %v1882_v48, %v8386_v45  ;;  %v1948_v55 = vcombine.high %v1882_v48, %v8386_v45 }
 0x1d9   : > { %595 = vrot.lane.b32.xlu1 %v8366_v13, %s8035_s9 }
 0x1de   : > { %v7258_v57 = vpop.f32.mrb[8].mxu0 }
 0x1df   : > { %v8397_v59 = vadd.f32 %v7258_v57, %v8340_v58  ;;  %v460_v61 = vpop.f32.mrb[9].mxu0 }
 0x1e0   : > { %v8400_v1 = vadd.f32 %v8340_v58, %v460_v61  ;;  %v8402_v2 = vpop.f32.mrb[10].mxu0 }
 0x1e1   : > { %1247 = vrot.lane.b32.xlu0 %v8397_v59, %s8036_s29  ;;  %v8406_v3 = vpop.f32.mrb[11].mxu0 }
 0x1e2   : > { %1243 = vrot.lane.b32.xlu1 %v8400_v1, %s8036_s29 }
 0x1e5   : > { %607 = vrot.lane.b32.xlu0 %v8397_v59, %s8035_s9 }
 0x1e6   : > { %603 = vrot.lane.b32.xlu1 %v8400_v1, %s8035_s9 }
 0x1ee   : > { %v7262_v9 = vpop.f32.mrb[12].mxu0 }
 0x1ef   : > { %v8415_v22 = vadd.f32 %v7262_v9, %v8340_v58  ;;  %v476_v26 = vpop.f32.mrb[13].mxu0  ;;  %v8438_v9 = vsub.s32 %v751_v35, %v689_v5 }
 0x1f0   : > { %v8418_v39 = vadd.f32 %v8340_v58, %v476_v26  ;;  %v8420_v44 = vpop.f32.mrb[14].mxu0 }
 0x1f1   : > { %v1915_v45 = vcombine.low %v8397_v59, %v8415_v22  ;;  %v1916_v47 = vcombine.high %v8397_v59, %v8415_v22  ;;  %1255 = vrot.lane.b32.xlu0 %v8415_v22, %s8036_s29  ;;  %v8428_v48 = vpop.f32.mrb[15].mxu0  ;;  %v8450_v5 = vrot.slane %v1931_v50, %v8438_v9  ;;  %v8461_v40 = vrot.slane %v1932_v51, %v8438_v9 }
 0x1f2   : > { %v1899_v57 = vcombine.low %v8400_v1, %v8418_v39  ;;  %v1900_v61 = vcombine.high %v8400_v1, %v8418_v39  ;;  %1251 = vrot.lane.b32.xlu1 %v8418_v39, %s8036_s29 }
 0x1f3   : > { %v1923_v4 = vrot.slane %v1915_v45, %v8363_v8  ;;  %v1930_v6 = vrot.slane %v1916_v47, %v8363_v8 }
 0x1f4   : > { %v1907_v26 = vrot.slane %v1899_v57, %v8363_v8  ;;  %v1914_v56 = vrot.slane %v1900_v61, %v8363_v8 }
 0x1f5   : > { %615 = vrot.lane.b32.xlu0 %v8415_v22, %s8035_s9 }
 0x1f6   : > { %v7266_v53 = vpop.f32.mrb[16].mxu0  ;;  %611 = vrot.lane.b32.xlu1 %v8418_v39, %s8035_s9  ;;  %v1963_v52 = vcombine.low %v1907_v26, %v1923_v4  ;;  %v1964_v49 = vcombine.high %v1907_v26, %v1923_v4  ;;  %v1979_v35 = vcombine.low %v1914_v56, %v1930_v6  ;;  %v1980_v47 = vcombine.high %v1914_v56, %v1930_v6 }
 0x1f7   : > { %v8447_v46 = vadd.f32 %v7266_v53, %v8340_v58  ;;  %v492_v45 = vpop.f32.mrb[17].mxu0  ;;  %v8471_v56 = vrot.slane %v1947_v54, %v8438_v9  ;;  %v8488_v54 = vrot.slane %v1948_v55, %v8438_v9 }
 0x1f8   : > { %v8453_v57 = vadd.f32 %v8340_v58, %v492_v45  ;;  %v8455_v61 = vpop.f32.mrb[18].mxu0  ;;  %v8458_v43 = vrot.slane %v1963_v52, %v8438_v9  ;;  %v8464_v53 = vrot.slane %v1964_v49, %v8438_v9  ;;  %v8474_v4 = vrot.slane %v1979_v35, %v8438_v9 }
 0x1f9   : > { %1263 = vrot.lane.b32.xlu0 %v8447_v46, %s8036_s29  ;;  %v8468_v50 = vpop.f32.mrb[19].mxu0  ;;  %v8477_v52 = vrot.slane %v1980_v47, %v8438_v9 }
 0x1fa   : > { %1259 = vrot.lane.b32.xlu1 %v8453_v57, %s8036_s29 }
 0x1fd   : > { %623 = vrot.lane.b32.xlu0 %v8447_v46, %s8035_s9 }
 0x1fe   : > { %v7270_v55 = vpop.f32.mrb[20].mxu0  ;;  %619 = vrot.lane.b32.xlu1 %v8453_v57, %s8035_s9 }
 0x1ff   : > { %v8505_v26 = vadd.f32 %v7270_v55, %v8340_v58  ;;  %v508_v45 = vpop.f32.mrb[21].mxu0 }
 0x200   : > { %v8508_v6 = vadd.f32 %v8340_v58, %v508_v45  ;;  %v8510_v35 = vpop.f32.mrb[22].mxu0 }
 0x201   : > { %v2019_v47 = vcombine.low %v8447_v46, %v8505_v26  ;;  %v2020_v51 = vcombine.high %v8447_v46, %v8505_v26  ;;  %1271 = vrot.lane.b32.xlu0 %v8505_v26, %s8036_s29  ;;  %v8518_v49 = vpop.f32.mrb[23].mxu0 }
 0x202   : > { %v2003_v55 = vcombine.low %v8453_v57, %v8508_v6  ;;  %v2004_v45 = vcombine.high %v8453_v57, %v8508_v6  ;;  %1267 = vrot.lane.b32.xlu1 %v8508_v6, %s8036_s29 }
 0x203   : > { %v2027_v37 = vrot.slane %v2019_v47, %v8363_v8  ;;  %v2034_v42 = vrot.slane %v2020_v51, %v8363_v8 }
 0x204   : > { %v2011_v33 = vrot.slane %v2003_v55, %v8363_v8  ;;  %v2018_v41 = vrot.slane %v2004_v45, %v8363_v8 }
 0x205   : > { %631 = vrot.lane.b32.xlu0 %v8505_v26, %s8035_s9 }
 0x206   : > { %v7274_v30 = vpop.f32.mrb[24].mxu0  ;;  %627 = vrot.lane.b32.xlu1 %v8508_v6, %s8035_s9  ;;  %v2067_v38 = vcombine.low %v2011_v33, %v2027_v37  ;;  %v2068_v27 = vcombine.high %v2011_v33, %v2027_v37  ;;  %v2083_v47 = vcombine.low %v2018_v41, %v2034_v42  ;;  %v2084_v34 = vcombine.high %v2018_v41, %v2034_v42 }
 0x207   : > { %v8535_v36 = vadd.f32 %v7274_v30, %v8340_v58  ;;  %v524_v24 = vpop.f32.mrb[25].mxu0 }
 0x208   : > { %v8538_v51 = vadd.f32 %v8340_v58, %v524_v24  ;;  %v8540_v55 = vpop.f32.mrb[26].mxu0  ;;  %v2082_v14 = vrot.slane %v2068_v27, %v8438_v9  ;;  %v2091_v16 = vrot.slane %v2083_v47, %v8438_v9  ;;  %v11418_v47 = vmov 0.0  }
 0x209   : > { %1279 = vrot.lane.b32.xlu0 %v8535_v36, %s8036_s29  ;;  %v8544_v45 = vpop.f32.mrb[27].mxu0  ;;  %7282 = vmatprep.mubr.msk.bf16.mxu1 %vm8040_vm1, %v11418_v47 }
 0x20a   : > { %1275 = vrot.lane.b32.xlu1 %v8538_v51, %s8036_s29  ;;  %7330 = vmatprep.mubr.msk.bf16.mxu0 %vm8040_vm1, %v11418_v47 }
 0x20e   : > { %v7278_v33 = vpop.f32.mrb[28].mxu0 }
 0x20f   : > { %v8549_v30 = vadd.f32 %v7278_v33, %v8340_v58  ;;  %v540_v37 = vpop.f32.mrb[29].mxu0 }
 0x210   : > { %v8552_v41 = vadd.f32 %v8340_v58, %v540_v37  ;;  %v8554_v24 = vpop.f32.mrb[30].mxu0 }
 0x211   : > { %v2051_v42 = vcombine.low %v8535_v36, %v8549_v30  ;;  %v2052_v20 = vcombine.high %v8535_v36, %v8549_v30  ;;  %1287 = vrot.lane.b32.xlu0 %v8549_v30, %s8036_s29  ;;  %v8562_v32 = vpop.f32.mrb[31].mxu0 }
 0x212   : > { %v2035_v33 = vcombine.low %v8538_v51, %v8552_v41  ;;  %v2036_v37 = vcombine.high %v8538_v51, %v8552_v41  ;;  %1283 = vrot.lane.b32.xlu1 %v8552_v41, %s8036_s29 }
 0x213   : > { %v2059_v17 = vrot.slane %v2051_v42, %v8363_v8  ;;  %v2066_v29 = vrot.slane %v2052_v20, %v8363_v8  ;;  %v8582_v20 = vadd.f32 %v8345_v62, %v8340_v58 }
 0x214   : > { %v2043_v11 = vrot.slane %v2035_v33, %v8363_v8  ;;  %v2050_v28 = vrot.slane %v2036_v37, %v8363_v8  ;;  %v2075_v33 = vrot.slane %v2067_v38, %v8438_v9 }
 0x215   : > { %639 = vrot.lane.b32.xlu0 %v8535_v36, %s8035_s9  ;;  %11416 = vst [vmem:[#allocation45_spill] sm:$0xff] %v8582_v20 }
 0x216   : > { %635 = vrot.lane.b32.xlu1 %v8538_v51, %s8035_s9  ;;  %v2099_v25 = vcombine.low %v2043_v11, %v2059_v17  ;;  %v2100_v23 = vcombine.high %v2043_v11, %v2059_v17  ;;  %v2115_v42 = vcombine.low %v2050_v28, %v2066_v29  ;;  %v2116_v21 = vcombine.high %v2050_v28, %v2066_v29 }
 0x217   : > { %v8595_v28 = vadd.f32 %v8340_v58, %v8351_v63  ;;  %v2098_v29 = vrot.slane %v2084_v34, %v8438_v9 }
 0x218   : > { %v2107_v37 = vrot.slane %v2099_v25, %v8438_v9  ;;  %v2114_v19 = vrot.slane %v2100_v23, %v8438_v9  ;;  %v2123_v11 = vrot.slane %v2115_v42, %v8438_v9  ;;  %v2130_v17 = vrot.slane %v2116_v21, %v8438_v9 }
 0x219   : > { %647 = vrot.lane.b32.xlu0 %v8549_v30, %s8035_s9  ;;  %11417 = vst [vmem:[#allocation46_spill] sm:$0xff] %v8595_v28  ;;  %v11419_v21 = vcombine.low %v8450_v5, %v8458_v43  ;;  %v11421_v42 = vcombine.high %v8450_v5, %v8458_v43 }
 0x21a   : > { %643 = vrot.lane.b32.xlu1 %v8552_v41, %s8035_s9  ;;  %v2131_v25 = vcombine.low %v2075_v33, %v2107_v37  ;;  %v2132_v27 = vcombine.high %v2075_v33, %v2107_v37  ;;  %v2133_v38 = vcombine.low %v2082_v14, %v2114_v19  ;;  %v2134_v62 = vcombine.high %v2082_v14, %v2114_v19 }
 0x21b   : > { %v2135_v23 = vcombine.low %v2091_v16, %v2123_v11  ;;  %v2136_v34 = vcombine.high %v2091_v16, %v2123_v11  ;;  %v11423_v14 = vcombine.low %v8461_v40, %v8464_v53  ;;  %v11425_v37 = vcombine.high %v8461_v40, %v8464_v53 }
 0x21c   : > { %v8607_v63 = vpack.c.bf16 %v2131_v25, %v11419_v21  ;;  %v8612_v33 = vpack.c.bf16 %v2132_v27, %v11421_v42  ;;  %v11427_v25 = vcombine.low %v8471_v56, %v8474_v4  ;;  %v2137_v5 = vcombine.low %v2098_v29, %v2130_v17 }
 0x21d   : > { %1233 = vrot.lane.b32.xlu0 %v8582_v20, %s8036_s29  ;;  %v8619_v19 = vpack.c.bf16 %v2133_v38, %v11423_v14  ;;  %v8624_v15 = vpack.c.bf16 %v2134_v62, %v11425_v37  ;;  %v11429_v16 = vcombine.high %v8471_v56, %v8474_v4  ;;  %v2138_v27 = vcombine.high %v2098_v29, %v2130_v17 }
 0x21e   : > { %11420 = vst [vmem:[#allocation47_spill] sm:$0xff] %v8607_v63  ;;  %11422 = vst [vmem:[#allocation48_spill] sm:$0xff] %v8612_v33  ;;  %v8629_v43 = vpack.c.bf16 %v2135_v23, %v11427_v25  ;;  %1229 = vrot.lane.b32.xlu1 %v8595_v28, %s8036_s29  ;;  %v8640_v40 = vadd.f32 %v8368_v18, %v8340_v58  ;;  %v11432_v53 = vcombine.low %v8488_v54, %v8477_v52 }
 0x21f   : > { %11424 = vst [vmem:[#allocation49_spill] sm:$0xff] %v8619_v19  ;;  %11426 = vst [vmem:[#allocation50_spill] sm:$0xff] %v8624_v15  ;;  %v8636_v11 = vpack.c.bf16 %v2136_v34, %v11429_v16  ;;  %v8649_v62 = vadd.f32 %v8340_v58, %v8378_v31  ;;  %v11435_v23 = vcombine.high %v8488_v54, %v8477_v52 }
 0x220   : > { %11428 = vst [vmem:[#allocation51_spill] sm:$0xff] %v8629_v43  ;;  %11431 = vst [vmem:[#allocation53_spill] sm:$0xff] %v8640_v40  ;;  %v8645_v38 = vpack.c.bf16 %v2137_v5, %v11432_v53  ;;  %v8662_v18 = vadd.f32 %v8402_v2, %v8340_v58  ;;  %v8666_v4 = vadd.f32 %v8340_v58, %v8406_v3 }
 0x221   : > { %11430 = vst [vmem:[#allocation52_spill] sm:$0xff] %v8636_v11  ;;  %11434 = vst [vmem:[#allocation55_spill] sm:$0xff] %v8649_v62  ;;  %v8654_v56 = vpack.c.bf16 %v2138_v27, %v11435_v23  ;;  %1241 = vrot.lane.b32.xlu0 %v8640_v40, %s8036_s29  ;;  %v8674_v31 = vadd.f32 %v8420_v44, %v8340_v58  ;;  %v8678_v52 = vadd.f32 %v8340_v58, %v8428_v48 }
 0x222   : > { %11433 = vst [vmem:[#allocation54_spill] sm:$0xff] %v8645_v38  ;;  %1237 = vrot.lane.b32.xlu1 %v8649_v62, %s8036_s29  ;;  %11437 = vst [vmem:[#allocation57_spill] sm:$0xff] %v8662_v18  ;;  %v8686_v2 = vadd.f32 %v8455_v61, %v8340_v58  ;;  %v8690_v3 = vadd.f32 %v8340_v58, %v8468_v50  ;;  %v8698_v44 = vadd.f32 %v8510_v35, %v8340_v58 }
 0x223   : > { %11436 = vst [vmem:[#allocation56_spill] sm:$0xff] %v8654_v56  ;;  %11438 = vst [vmem:[#allocation58_spill] sm:$0xff] %v8666_v4  ;;  %v8702_v48 = vadd.f32 %v8340_v58, %v8518_v49  ;;  %v8710_v61 = vadd.f32 %v8540_v55, %v8340_v58  ;;  %v8714_v50 = vadd.f32 %v8340_v58, %v8544_v45 }
 0x224   : > { %11439 = vst [vmem:[#allocation59_spill] sm:$0xff] %v8674_v31  ;;  %11440 = vst [vmem:[#allocation60_spill] sm:$0xff] %v8678_v52  ;;  %v8768_v37 = vadd.f32 %v8554_v24, %v8340_v58  ;;  %v8778_v16 = vadd.f32 %v8340_v58, %v8562_v32  ;;  %v8802_v24 = vpack.c.bf16 %v8582_v20, %v8343_v60 }
 0x225   : > { %1249 = vrot.lane.b32.xlu0 %v8662_v18, %s8036_s29  ;;  %11441 = vst [vmem:[#allocation61_spill] sm:$0xff] %v8686_v2  ;;  %11442 = vst [vmem:[#allocation62_spill] sm:$0xff] %v8690_v3  ;;  %v8806_v23 = vpack.c.bf16 %v8595_v28, %v8354_v0  ;;  %v8826_v0 = vpack.c.bf16 %v8640_v40, %v8361_v7  ;;  %v8834_v56 = vpack.c.bf16 %v8649_v62, %v8366_v13 }
 0x226   : > { %1245 = vrot.lane.b32.xlu1 %v8666_v4, %s8036_s29  ;;  %11443 = vst [vmem:[#allocation63_spill] sm:$0xff] %v8698_v44  ;;  %11444 = vst [vmem:[#allocation64_spill] sm:$0xff] %v8702_v48 }
 0x227   : > { %11445 = vst [vmem:[#allocation65_spill] sm:$0xff] %v8710_v61  ;;  %11446 = vst [vmem:[#allocation66_spill] sm:$0xff] %v8714_v50 }
 0x228   : > { %11447 = vst [vmem:[#allocation67_spill] sm:$0xff] %v8778_v16  ;;  %11448 = vst [vmem:[#allocation68_spill] sm:$0xff] %v8802_v24 }
 0x229   : > { %1257 = vrot.lane.b32.xlu0 %v8674_v31, %s8036_s29  ;;  %11449 = vst [vmem:[#allocation69_spill] sm:$0xff] %v8806_v23  ;;  %11450 = vst [vmem:[#allocation70_spill] sm:$0xff] %v8826_v0 }
 0x22a   : > { %1253 = vrot.lane.b32.xlu1 %v8678_v52, %s8036_s29  ;;  %11451 = vst [vmem:[#allocation71_spill] sm:$0xff] %v8834_v56 }
 0x22d   : > { %1265 = vrot.lane.b32.xlu0 %v8686_v2, %s8036_s29 }
 0x22e   : > { %1261 = vrot.lane.b32.xlu1 %v8690_v3, %s8036_s29 }
 0x231   : > { %1273 = vrot.lane.b32.xlu0 %v8698_v44, %s8036_s29 }
 0x232   : > { %1269 = vrot.lane.b32.xlu1 %v8702_v48, %s8036_s29 }
 0x233   : > { %v8720_v49 = vpop.permute.xlu1 %1231  ;;  %v8722_v54 = vpop.permute.xlu0 %591 }
 0x235   : > { %1281 = vrot.lane.b32.xlu0 %v8710_v61, %s8036_s29 }
 0x236   : > { %1277 = vrot.lane.b32.xlu1 %v8714_v50, %s8036_s29 }
 0x237   : > { %v8732_v35 = vpop.permute.xlu1 %587  ;;  %v8734_v55 = vpop.permute.xlu0 %1227 }
 0x239   : > { %593 = vrot.lane.b32.xlu0 %v8582_v20, %s8035_s9 }
 0x23a   : > { %589 = vrot.lane.b32.xlu1 %v8595_v28, %s8035_s9 }
 0x23d   : > { %601 = vrot.lane.b32.xlu0 %v8640_v40, %s8035_s9 }
 0x23e   : > { %597 = vrot.lane.b32.xlu1 %v8649_v62, %s8035_s9 }
 0x241   : > { %609 = vrot.lane.b32.xlu0 %v8662_v18, %s8035_s9 }
 0x242   : > { %605 = vrot.lane.b32.xlu1 %v8666_v4, %s8035_s9 }
 0x243   : > { %v8740_v45 = vpop.permute.xlu1 %1239  ;;  %v8742_v17 = vpop.permute.xlu0 %599 }
 0x244   : > { %v1340_v29 = vcombine.high %v8720_v49, %v8740_v45  ;;  %v700_v21 = vcombine.high %v8722_v54, %v8742_v17 }
 0x245   : > { %617 = vrot.lane.b32.xlu0 %v8674_v31, %s8035_s9 }
 0x246   : > { %613 = vrot.lane.b32.xlu1 %v8678_v52, %s8035_s9  ;;  %v8771_v25 = vrot.slane %v700_v21, %v8363_v8  ;;  %v1354_v38 = vrot.slane %v1340_v29, %v8363_v8 }
 0x247   : > { %v8752_v42 = vpop.permute.xlu1 %1235 }
 0x248   : > { %v1324_v53 = vcombine.high %v8734_v55, %v8752_v42 }
 0x249   : > { %625 = vrot.lane.b32.xlu0 %v8686_v2, %s8035_s9 }
 0x24a   : > { %621 = vrot.lane.b32.xlu1 %v8690_v3, %s8035_s9 }
 0x24b   : > { %v8758_v34 = vpop.permute.xlu1 %595 }
 0x24c   : > { %v684_v14 = vcombine.high %v8732_v35, %v8758_v34 }
 0x24d   : > { %633 = vrot.lane.b32.xlu0 %v8698_v44, %s8035_s9 }
 0x24e   : > { %629 = vrot.lane.b32.xlu1 %v8702_v48, %s8035_s9  ;;  %v8774_v5 = vrot.slane %v684_v14, %v8363_v8 }
 0x250   : > { %v763_v27 = vcombine.low %v8774_v5, %v8771_v25 }
 0x251   : > { %1289 = vrot.lane.b32.xlu0 %v8768_v37, %s8036_s29 }
 0x252   : > { %1285 = vrot.lane.b32.xlu1 %v8778_v16, %s8036_s29 }
 0x253   : > { %v8792_v32 = vpop.permute.xlu0 %1247 }
 0x254   : > { %v8796_v58 = vpop.permute.xlu1 %1243 }
 0x255   : > { %641 = vrot.lane.b32.xlu0 %v8710_v61, %s8035_s9 }
 0x256   : > { %637 = vrot.lane.b32.xlu1 %v8714_v50, %s8035_s9 }
 0x257   : > { %v8812_v21 = vpop.permute.xlu0 %607 }
 0x258   : > { %v8814_v14 = vpop.permute.xlu1 %603 }
 0x259   : > { %649 = vrot.lane.b32.xlu0 %v8768_v37, %s8035_s9 }
 0x25a   : > { %645 = vrot.lane.b32.xlu1 %v8778_v16, %s8035_s9 }
 0x25d   : > { %4436 = vrot.lane.b32.xlu0 %v8802_v24, %s8036_s29 }
 0x25e   : > { %4384 = vrot.lane.b32.xlu1 %v8806_v23, %s8036_s29 }
 0x261   : > { %4434 = vrot.lane.b32.xlu0 %v8802_v24, %s8035_s9  ;;  %v1338_v24 = vrot.slane %v1324_v53, %v8363_v8 }
 0x262   : > { %4382 = vrot.lane.b32.xlu1 %v8806_v23, %s8035_s9 }
 0x263   : > { %v8822_v60 = vpop.permute.xlu0 %1255  ;;  %v1403_v15 = vcombine.low %v1338_v24, %v1354_v38  ;;  %v1404_v19 = vcombine.high %v1338_v24, %v1354_v38 }
 0x264   : > { %v1372_v12 = vcombine.high %v8792_v32, %v8822_v60  ;;  %v8830_v10 = vpop.permute.xlu1 %1251 }
 0x265   : > { %v1356_v23 = vcombine.high %v8796_v58, %v8830_v10  ;;  %4540 = vrot.lane.b32.xlu0 %v8826_v0, %s8036_s29 }
 0x266   : > { %v1386_v7 = vrot.slane %v1372_v12, %v8363_v8  ;;  %4488 = vrot.lane.b32.xlu1 %v8834_v56, %s8036_s29 }
 0x267   : > { %v1370_v11 = vrot.slane %v1356_v23, %v8363_v8  ;;  %v8846_v43 = vpop.permute.xlu0 %615 }
 0x268   : > { %v732_v13 = vcombine.high %v8812_v21, %v8846_v43  ;;  %v8850_v53 = vpop.permute.xlu1 %611 }
 0x269   : > { %v1435_v28 = vcombine.low %v1370_v11, %v1386_v7  ;;  %v1436_v62 = vcombine.high %v1370_v11, %v1386_v7  ;;  %4538 = vrot.lane.b32.xlu0 %v8826_v0, %s8035_s9  ;;  %v716_v29 = vcombine.high %v8814_v14, %v8850_v53  ;;  %v8869_v11 = vpack.c.bf16 %v8662_v18, %v8397_v59 }
 0x26a   : > { %v746_v12 = vrot.slane %v732_v13, %v8363_v8  ;;  %4486 = vrot.lane.b32.xlu1 %v8834_v56, %s8035_s9  ;;  %v8876_v13 = vpack.c.bf16 %v8666_v4, %v8400_v1  ;;  %v8899_v4 = vrot.slane %v763_v27, %v8438_v9  ;;  %v11455_v56 = vcombine.high %v8774_v5, %v8771_v25 }
 0x26b   : > { %v8860_v23 = vrot.slane %v1435_v28, %v8438_v9  ;;  %v8863_v20 = vrot.slane %v1436_v62, %v8438_v9  ;;  %v8865_v38 = vpop.permute.xlu0 %1263  ;;  %11452 = vst [vmem:[#allocation72_spill] sm:$0xff] %v8869_v11  ;;  %v730_v24 = vrot.slane %v716_v29, %v8363_v8  ;;  %v8881_v28 = vrot.slane %v1403_v15, %v8438_v9 }
 0x26c   : > { %v8872_v7 = vpop.permute.xlu1 %1259  ;;  %11453 = vst [vmem:[#allocation73_spill] sm:$0xff] %v8876_v13  ;;  %v8884_v62 = vrot.slane %v1404_v19, %v8438_v9  ;;  %v8913_v1 = vrot.slane %v11455_v56, %v8438_v9  ;;  %v8931_v5 = vpack.c.bf16 %v8674_v31, %v8415_v22  ;;  %v8937_v15 = vpack.c.bf16 %v8678_v52, %v8418_v39 }
 0x26d   : > { %4644 = vrot.lane.b32.xlu0 %v8869_v11, %s8036_s29  ;;  %v795_v0 = vcombine.low %v730_v24, %v746_v12  ;;  %v796_v59 = vcombine.high %v730_v24, %v746_v12  ;;  %v8953_v22 = vpack.c.bf16 %v8686_v2, %v8447_v46  ;;  %v8957_v39 = vpack.c.bf16 %v8690_v3, %v8453_v57 }
 0x26e   : > { %4592 = vrot.lane.b32.xlu1 %v8876_v13, %s8036_s29  ;;  %11456 = vst [vmem:[#allocation75_spill] sm:$0xff] %v8931_v5  ;;  %11457 = vst [vmem:[#allocation76_spill] sm:$0xff] %v8937_v15  ;;  %v1355_v27 = vcombine.low %v8796_v58, %v8830_v10  ;;  %v1339_v10 = vcombine.low %v8720_v49, %v8740_v45  ;;  %v731_v3 = vcombine.low %v8812_v21, %v8846_v43 }
 0x26f   : > { %v8888_v29 = vpop.permute.xlu0 %623  ;;  %v8902_v12 = vrot.slane %v795_v0, %v8438_v9  ;;  %v8905_v24 = vrot.slane %v796_v59, %v8438_v9  ;;  %11458 = vst [vmem:[#allocation77_spill] sm:$0xff] %v8953_v22  ;;  %11459 = vst [vmem:[#allocation78_spill] sm:$0xff] %v8957_v39  ;;  %v1371_v0 = vcombine.low %v8792_v32, %v8822_v60 }
 0x270   : > { %v8907_v18 = vpop.permute.xlu1 %619  ;;  %v9054_v43 = vpack.c.bf16 %v8710_v61, %v8535_v36  ;;  %v9058_v21 = vpack.c.bf16 %v8714_v50, %v8538_v51  ;;  %v699_v36 = vcombine.low %v8722_v54, %v8742_v17  ;;  %v9072_v51 = vrot.slane %v731_v3, %v8363_v8 }
 0x271   : > { %11454 = vst [vmem:[#allocation74_spill] sm:$0xff] %v8905_v24  ;;  %4642 = vrot.lane.b32.xlu0 %v8869_v11, %s8035_s9  ;;  %v8980_v58 = vrot.slane %v1371_v0, %v8363_v8  ;;  %v9005_v0 = vrot.slane %v1339_v10, %v8363_v8 }
 0x272   : > { %4590 = vrot.lane.b32.xlu1 %v8876_v13, %s8035_s9  ;;  %11462 = vst [vmem:[#allocation81_spill] sm:$0xff] %v9054_v43  ;;  %11463 = vst [vmem:[#allocation82_spill] sm:$0xff] %v9058_v21  ;;  %v9106_v40 = vrot.slane %v699_v36, %v8363_v8 }
 0x273   : > { %v8927_v56 = vpop.permute.xlu0 %1271 }
 0x274   : > { %v8933_v19 = vpop.permute.xlu1 %1267  ;;  %v1475_v46 = vcombine.low %v8865_v38, %v8927_v56 }
 0x275   : > { %4748 = vrot.lane.b32.xlu0 %v8931_v5, %s8036_s29  ;;  %v1459_v57 = vcombine.low %v8872_v7, %v8933_v19 }
 0x276   : > { %4696 = vrot.lane.b32.xlu1 %v8937_v15, %s8036_s29  ;;  %v8993_v60 = vrot.slane %v1475_v46, %v8363_v8  ;;  %v9013_v46 = vpack.c.bf16 %v8702_v48, %v8508_v6  ;;  %v715_v48 = vcombine.low %v8814_v14, %v8850_v53 }
 0x277   : > { %v8943_v59 = vpop.permute.xlu0 %631  ;;  %v8996_v49 = vrot.slane %v1459_v57, %v8363_v8 }
 0x278   : > { %v8947_v25 = vpop.permute.xlu1 %627  ;;  %11461 = vst [vmem:[#allocation80_spill] sm:$0xff] %v9013_v46  ;;  %v835_v53 = vcombine.low %v8888_v29, %v8943_v59 }
 0x279   : > { %4746 = vrot.lane.b32.xlu0 %v8931_v5, %s8035_s9  ;;  %v1323_v5 = vcombine.low %v8734_v55, %v8752_v42  ;;  %v8983_v55 = vrot.slane %v1355_v27, %v8363_v8  ;;  %v9002_v27 = vpack.c.bf16 %v8698_v44, %v8505_v26  ;;  %v1523_v6 = vcombine.low %v8996_v49, %v8993_v60 }
 0x27a   : > { %4694 = vrot.lane.b32.xlu1 %v8937_v15, %s8035_s9  ;;  %v9095_v17 = vrot.slane %v835_v53, %v8363_v8 }
 0x27b   : > { %v8973_v15 = vpop.permute.xlu0 %1279  ;;  %v8988_v42 = vrot.slane %v1323_v5, %v8363_v8  ;;  %11460 = vst [vmem:[#allocation79_spill] sm:$0xff] %v9002_v27  ;;  %v1419_v57 = vcombine.low %v8983_v55, %v8980_v58 }
 0x27c   : > { %v8977_v32 = vpop.permute.xlu1 %1275 }
 0x27d   : > { %4852 = vrot.lane.b32.xlu0 %v8953_v22, %s8036_s29  ;;  %v1387_v26 = vcombine.low %v8988_v42, %v9005_v0  ;;  %v9046_v44 = vrot.slane %v1419_v57, %v8438_v9  ;;  %v819_v57 = vcombine.low %v8907_v18, %v8947_v25 }
 0x27e   : > { %4800 = vrot.lane.b32.xlu1 %v8957_v39, %s8036_s29 }
 0x27f   : > { %v1395_v14 = vrot.slane %v1387_v26, %v8438_v9  ;;  %v9075_v26 = vrot.slane %v715_v48, %v8363_v8 }
 0x281   : > { %4850 = vrot.lane.b32.xlu0 %v8953_v22, %s8035_s9 }
 0x282   : > { %4798 = vrot.lane.b32.xlu1 %v8957_v39, %s8035_s9 }
 0x283   : > { %v8998_v45 = vpop.permute.xlu0 %1287 }
 0x284   : > { %v1507_v5 = vcombine.low %v8973_v15, %v8998_v45  ;;  %v9009_v22 = vpop.permute.xlu1 %1283 }
 0x285   : > { %v1491_v39 = vcombine.low %v8977_v32, %v9009_v22  ;;  %4956 = vrot.lane.b32.xlu0 %v9002_v27, %s8036_s29 }
 0x286   : > { %v9024_v10 = vrot.slane %v1507_v5, %v8363_v8  ;;  %4904 = vrot.lane.b32.xlu1 %v9013_v46, %s8036_s29 }
 0x287   : > { %v9031_v11 = vrot.slane %v1491_v39, %v8363_v8  ;;  %v9033_v13 = vpop.permute.xlu0 %639  ;;  %v683_v39 = vcombine.low %v8732_v35, %v8758_v34  ;;  %v1531_v34 = vrot.slane %v1523_v6, %v8438_v9  ;;  %v1451_v6 = vcombine.low %v1395_v14, %v9046_v44 }
 0x288   : > { %v9039_v2 = vpop.permute.xlu1 %635 }
 0x289   : > { %v1555_v5 = vcombine.low %v9031_v11, %v9024_v10  ;;  %4954 = vrot.lane.b32.xlu0 %v9002_v27, %s8035_s9  ;;  %v9087_v3 = vrot.slane %v683_v39, %v8363_v8  ;;  %v1556_v63 = vcombine.high %v9031_v11, %v9024_v10  ;;  %v1420_v11 = vcombine.high %v8983_v55, %v8980_v58 }
 0x28a   : > { %4902 = vrot.lane.b32.xlu1 %v9013_v46, %s8035_s9 }
 0x28b   : > { %v9065_v35 = vpop.permute.xlu0 %647  ;;  %v1563_v27 = vrot.slane %v1555_v5, %v8438_v9  ;;  %v9098_v5 = vrot.slane %v819_v57, %v8363_v8 }
 0x28c   : > { %v867_v46 = vcombine.low %v9033_v13, %v9065_v35  ;;  %v9079_v50 = vpop.permute.xlu1 %643 }
 0x28d   : > { %v851_v61 = vcombine.low %v9039_v2, %v9079_v50  ;;  %5060 = vrot.lane.b32.xlu0 %v9054_v43, %s8036_s29  ;;  %v1587_v54 = vcombine.low %v1531_v34, %v1563_v27  ;;  %v883_v36 = vcombine.low %v9098_v5, %v9095_v17 }
 0x28e   : > { %v9090_v48 = vrot.slane %v867_v46, %v8363_v8  ;;  %5008 = vrot.lane.b32.xlu1 %v9058_v21, %s8036_s29  ;;  %v779_v46 = vcombine.low %v9075_v26, %v9072_v51 }
 0x28f   : > { %v9101_v52 = vrot.slane %v851_v61, %v8363_v8  ;;  %v9103_v31 = vpop.permute.xlu0 %1233  ;;  %v2427_v39 = vpack.c.bf16 %v1587_v54, %v1451_v6  ;;  %v747_v61 = vcombine.low %v9087_v3, %v9106_v40  ;;  %v9127_v54 = vpack.c.bf16 %v8768_v37, %v8549_v30 }
 0x290   : > { %v9110_v33 = vpop.permute.xlu1 %1229  ;;  %v1588_v30 = vcombine.high %v1531_v34, %v1563_v27  ;;  %v891_v10 = vrot.slane %v883_v36, %v8438_v9  ;;  %v1388_v27 = vcombine.high %v8988_v42, %v9005_v0  ;;  %v9158_v34 = vrot.slane %v1556_v63, %v8438_v9 }
 0x291   : > { %v915_v53 = vcombine.low %v9101_v52, %v9090_v48  ;;  %5058 = vrot.lane.b32.xlu0 %v9054_v43, %s8035_s9  ;;  %v2448_v57 = vsel %vm2443_vm2, %v2427_v39, 0  ;;  %11464 = vst [vmem:[#allocation83_spill] sm:$0xff] %v9127_v54  ;;  %v787_v43 = vrot.slane %v779_v46, %v8438_v9  ;;  %v9138_v39 = vpack.c.bf16 %v8778_v16, %v8552_v41 }
 0x292   : > { %5006 = vrot.lane.b32.xlu1 %v9058_v21, %s8035_s9  ;;  %7281 = vmatpush3.bf16.xpose.msra.mxu1 %v2448_v57  ;;  %v755_v46 = vrot.slane %v747_v61, %v8438_v9  ;;  %v1524_v41 = vcombine.high %v8996_v49, %v8993_v60  ;;  %v1508_v36 = vcombine.high %v8973_v15, %v8998_v45 }
 0x293   : > { %v9123_v6 = vpop.permute.xlu0 %1241  ;;  %11465 = vst [vmem:[#allocation84_spill] sm:$0xff] %v9138_v39  ;;  %7286 = vmatprep.subr.bf16.mxu1 %v11418_v47  ;;  %v923_v57 = vrot.slane %v915_v53, %v8438_v9  ;;  %v1452_v53 = vcombine.high %v1395_v14, %v9046_v44  ;;  %v1434_v14 = vrot.slane %v1420_v11, %v8438_v9 }
 0x294   : > { %v1612_v21 = vcombine.high %v9103_v31, %v9123_v6  ;;  %v9134_v24 = vpop.permute.xlu1 %1237  ;;  %v811_v58 = vcombine.low %v755_v46, %v787_v43  ;;  %v1538_v63 = vrot.slane %v1524_v41, %v8438_v9  ;;  %v1402_v11 = vrot.slane %v1388_v27, %v8438_v9 }
 0x295   : > { %5164 = vrot.lane.b32.xlu0 %v9127_v54, %s8036_s29  ;;  %v1596_v60 = vcombine.high %v9110_v33, %v9134_v24  ;;  %v947_v49 = vcombine.low %v891_v10, %v923_v57  ;;  %v2428_v44 = vpack.c.bf16 %v1588_v30, %v1452_v53  ;;  %v916_v45 = vcombine.high %v9101_v52, %v9090_v48 }
 0x296   : > { %5112 = vrot.lane.b32.xlu1 %v9138_v39, %s8036_s29  ;;  %v9163_v55 = vrot.slane %v1612_v21, %v8363_v8  ;;  %v1453_v15 = vcombine.low %v1402_v11, %v1434_v14  ;;  %v948_v27 = vcombine.high %v891_v10, %v923_v57 }
 0x297   : > { %v9152_v16 = vpop.permute.xlu0 %1249  ;;  %v9174_v42 = vrot.slane %v1596_v60, %v8363_v8  ;;  %v2411_v0 = vpack.c.bf16 %v947_v49, %v811_v58  ;;  %v2495_v58 = vsel %vm2443_vm2, %v2428_v44, 0  ;;  %v1589_v60 = vcombine.low %v1538_v63, %v9158_v34 }
 0x298   : > { %v9160_v61 = vpop.permute.xlu1 %1245  ;;  %v780_v44 = vcombine.high %v9075_v26, %v9072_v51  ;;  %v930_v26 = vrot.slane %v916_v45, %v8438_v9 }
 0x299   : > { %5162 = vrot.lane.b32.xlu0 %v9127_v54, %s8035_s9  ;;  %v1492_v54 = vcombine.high %v8977_v32, %v9009_v22  ;;  %v1675_v53 = vcombine.low %v9174_v42, %v9163_v55  ;;  %7283 = vmatmul.mubr.msk.bf16.vlgmr.msra.gmra.mrb[0].mxu1 %vm2443_vm2, %v2411_v0  ;;  %v1476_v22 = vcombine.high %v8865_v38, %v8927_v56 }
 0x29a   : > { %5110 = vrot.lane.b32.xlu1 %v9138_v39, %s8035_s9  ;;  %7287 = vmatpush3.bf16.xpose.msra.mxu1 %v2495_v58  ;;  %v1460_v32 = vcombine.high %v8872_v7, %v8933_v19  ;;  %v812_v0 = vcombine.high %v755_v46, %v787_v43  ;;  %v884_v38 = vcombine.high %v9098_v5, %v9095_v17 }
 0x29b   : > { %v9176_v21 = vpop.permute.xlu0 %1257  ;;  %7288 = vmatprep.mubr.msk.bf16.mxu1 %vm8040_vm1, %v11418_v47  ;;  %7292 = vmatprep.subr.bf16.mxu1 %v11418_v47  ;;  %v9210_v7 = vrot.slane %v1508_v36, %v8363_v8  ;;  %v9213_v52 = vrot.slane %v1492_v54, %v8363_v8  ;;  %v2429_v19 = vpack.c.bf16 %v1589_v60, %v1453_v15 }
 0x29c   : > { %v9182_v30 = vpop.permute.xlu1 %1253  ;;  %v748_v56 = vcombine.high %v9087_v3, %v9106_v40  ;;  %v9218_v51 = vrot.slane %v1476_v22, %v8363_v8  ;;  %v9221_v43 = vrot.slane %v1460_v32, %v8363_v8  ;;  %v2412_v48 = vpack.c.bf16 %v948_v27, %v812_v0 }
 0x29d   : > { %v794_v5 = vrot.slane %v780_v44, %v8438_v9  ;;  %v898_v54 = vrot.slane %v884_v38, %v8438_v9  ;;  %v1571_v40 = vcombine.low %v9213_v52, %v9210_v7  ;;  %v2542_v3 = vsel %vm2443_vm2, %v2429_v19, 0 }
 0x29e   : > { %v1590_v46 = vcombine.high %v1538_v63, %v9158_v34  ;;  %v762_v10 = vrot.slane %v748_v56, %v8438_v9  ;;  %v1454_v36 = vcombine.high %v1402_v11, %v1434_v14  ;;  %v1539_v60 = vcombine.low %v9221_v43, %v9218_v51 }
 0x29f   : > { %v9198_v49 = vpop.permute.xlu0 %1265  ;;  %v868_v15 = vcombine.high %v9033_v13, %v9065_v35  ;;  %v852_v22 = vcombine.high %v9039_v2, %v9079_v50  ;;  %v949_v32 = vcombine.low %v898_v54, %v930_v26  ;;  %v836_v14 = vcombine.high %v8888_v29, %v8943_v59 }
 0x2a0   : > { %v9204_v58 = vpop.permute.xlu1 %1261  ;;  %v813_v34 = vcombine.low %v762_v10, %v794_v5  ;;  %v820_v11 = vcombine.high %v8907_v18, %v8947_v25  ;;  %v1579_v27 = vrot.slane %v1571_v40, %v8438_v9  ;;  %v2430_v13 = vpack.c.bf16 %v1590_v46, %v1454_v36 }
 0x2a1   : > { %7289 = vmatmul.mubr.msk.bf16.vlgmr.msra.gmra.mrb[4].mxu1 %vm2443_vm2, %v2412_v48  ;;  %v1547_v35 = vrot.slane %v1539_v60, %v8438_v9  ;;  %v882_v2 = vrot.slane %v868_v15, %v8363_v8  ;;  %v866_v50 = vrot.slane %v852_v22, %v8363_v8  ;;  %v850_v19 = vrot.slane %v836_v14, %v8363_v8 }
 0x2a2   : > { %7293 = vmatpush3.bf16.xpose.msra.mxu1 %v2542_v3  ;;  %7294 = vmatprep.mubr.msk.bf16.mxu1 %vm8040_vm1, %v11418_v47  ;;  %v2413_v44 = vpack.c.bf16 %v949_v32, %v813_v34  ;;  %v834_v29 = vrot.slane %v820_v11, %v8363_v8  ;;  %v2589_v18 = vsel %vm2443_vm2, %v2430_v13, 0  ;;  %v950_v56 = vcombine.high %v898_v54, %v930_v26 }
 0x2a3   : > { %v9224_v17 = vpop.permute.xlu0 %1273  ;;  %7298 = vmatprep.subr.bf16.mxu1 %v11418_v47  ;;  %v1591_v59 = vcombine.low %v1547_v35, %v1579_v27  ;;  %v931_v25 = vcombine.low %v866_v50, %v882_v2  ;;  %v814_v3 = vcombine.high %v762_v10, %v794_v5  ;;  %v11466_v36 = vcombine.low %v8881_v28, %v8860_v23 }
 0x2a4   : > { %v9227_v57 = vpop.permute.xlu1 %1269  ;;  %v899_v46 = vcombine.low %v834_v29, %v850_v19  ;;  %v1572_v15 = vcombine.high %v9213_v52, %v9210_v7  ;;  %v1540_v22 = vcombine.high %v9221_v43, %v9218_v51  ;;  %v932_v32 = vcombine.high %v866_v50, %v882_v2 }
 0x2a5   : > { %v2431_v60 = vpack.c.bf16 %v1591_v59, %v11466_v36  ;;  %v939_v26 = vrot.slane %v931_v25, %v8438_v9  ;;  %v2414_v54 = vpack.c.bf16 %v950_v56, %v814_v3  ;;  %v900_v14 = vcombine.high %v834_v29, %v850_v19 }
 0x2a6   : > { %v1611_v5 = vcombine.low %v9103_v31, %v9123_v6  ;;  %v1595_v10 = vcombine.low %v9110_v33, %v9134_v24  ;;  %v1592_v13 = vcombine.high %v1547_v35, %v1579_v27  ;;  %v907_v7 = vrot.slane %v899_v46, %v8438_v9 }
 0x2a7   : > { %v9244_v45 = vpop.permute.xlu0 %1281  ;;  %v2636_v52 = vsel %vm2443_vm2, %v2431_v60, 0  ;;  %v1586_v51 = vrot.slane %v1572_v15, %v8438_v9  ;;  %v1554_v31 = vrot.slane %v1540_v22, %v8438_v9  ;;  %v946_v6 = vrot.slane %v932_v32, %v8438_v9 }
 0x2a8   : > { %v9247_v63 = vpop.permute.xlu1 %1277  ;;  %v951_v33 = vcombine.low %v907_v7, %v939_v26  ;;  %v914_v43 = vrot.slane %v900_v14, %v8438_v9  ;;  %v1619_v27 = vrot.slane %v1611_v5, %v8363_v8  ;;  %v1603_v35 = vrot.slane %v1595_v10, %v8363_v8 }
 0x2a9   : > { %7295 = vmatmul.mubr.msk.bf16.vlgmr.msra.gmra.mrb[8].mxu1 %vm2443_vm2, %v2413_v44  ;;  %v11467_v50 = vcombine.high %v8881_v28, %v8860_v23  ;;  %v1643_v19 = vcombine.low %v9152_v16, %v9176_v21  ;;  %v1644_v29 = vcombine.high %v9152_v16, %v9176_v21  ;;  %v1628_v59 = vcombine.high %v9160_v61, %v9182_v30 }
 0x2aa   : > { %7299 = vmatpush3.bf16.xpose.msra.mxu1 %v2589_v18  ;;  %7300 = vmatprep.mubr.msk.bf16.mxu1 %vm8040_vm1, %v11418_v47  ;;  %v1627_v18 = vcombine.low %v9160_v61, %v9182_v30  ;;  %v1593_v25 = vcombine.low %v1554_v31, %v1586_v51  ;;  %v952_v56 = vcombine.high %v907_v7, %v939_v26 }
 0x2ab   : > { %v9257_v0 = vpop.permute.xlu0 %593  ;;  %7304 = vmatprep.subr.bf16.mxu1 %v11418_v47  ;;  %v2432_v44 = vpack.c.bf16 %v1592_v13, %v11467_v50  ;;  %v953_v3 = vcombine.low %v914_v43, %v946_v6  ;;  %v954_v46 = vcombine.high %v914_v43, %v946_v6  ;;  %v11468_v23 = vcombine.low %v8899_v4, %v8902_v12  ;;  %v11471_v6 = vld [vmem:[#allocation74_spill] sm:$0xff] }
 0x2ac   : > { %v9259_v38 = vpop.permute.xlu1 %589  ;;  %v1659_v60 = vcombine.low %v1603_v35, %v1619_v27  ;;  %v1660_v15 = vcombine.high %v1603_v35, %v1619_v27  ;;  %v1594_v22 = vcombine.high %v1554_v31, %v1586_v51  ;;  %v1651_v32 = vrot.slane %v1643_v19, %v8363_v8 }
 0x2ad   : > { %v2415_v28 = vpack.c.bf16 %v951_v33, %v11468_v23  ;;  %v2683_v16 = vsel %vm2443_vm2, %v2432_v44, 0  ;;  %v9325_v61 = vrot.slane %v1644_v29, %v8363_v8  ;;  %v1635_v30 = vrot.slane %v1627_v18, %v8363_v8 }
 0x2ae   : > { %v9329_v26 = vrot.slane %v1628_v59, %v8363_v8  ;;  %v1731_v14 = vcombine.low %v9204_v58, %v9227_v57  ;;  %v11469_v5 = vcombine.low %v8884_v62, %v8863_v20  ;;  %v11470_v13 = vcombine.high %v8899_v4, %v8902_v12 }
 0x2af   : > { %v9267_v48 = vpop.permute.xlu0 %601  ;;  %v1732_v51 = vcombine.high %v9204_v58, %v9227_v57  ;;  %v11472_v33 = vcombine.low %v8913_v1, %v11471_v6  ;;  %v11473_v27 = vcombine.high %v8913_v1, %v11471_v6  ;;  %v9362_v12 = vrot.slane %v1659_v60, %v8438_v9 }
 0x2b0   : > { %v9270_v40 = vpop.permute.xlu1 %597  ;;  %v2433_v10 = vpack.c.bf16 %v1593_v25, %v11469_v5  ;;  %v2416_v7 = vpack.c.bf16 %v952_v56, %v11470_v13  ;;  %v11474_v58 = vcombine.high %v8884_v62, %v8863_v20  ;;  %v9370_v57 = vrot.slane %v1660_v15, %v8438_v9 }
 0x2b1   : > { %7301 = vmatmul.mubr.msk.bf16.vlgmr.msra.gmra.mrb[12].mxu1 %vm2443_vm2, %v2414_v54  ;;  %v1747_v54 = vcombine.low %v9198_v49, %v9224_v17  ;;  %v9354_v43 = vpack.c.bf16 %v953_v3, %v11472_v33  ;;  %v9359_v4 = vpack.c.bf16 %v954_v46, %v11473_v27  ;;  %v1691_v35 = vcombine.low %v1635_v30, %v1651_v32 }
 0x2b2   : > { %7305 = vmatpush3.bf16.xpose.msra.mxu1 %v2636_v52  ;;  %7306 = vmatprep.mubr.msk.bf16.mxu1 %vm8040_vm1, %v11418_v47  ;;  %v1748_v52 = vcombine.high %v9198_v49, %v9224_v17  ;;  %v2434_v17 = vpack.c.bf16 %v1594_v22, %v11474_v58  ;;  %v1692_v50 = vcombine.high %v1635_v30, %v1651_v32  ;;  %v2730_v20 = vsel %vm2443_vm2, %v2433_v10, 0 }
 0x2b3   : > { %v9280_v34 = vpop.permute.xlu0 %609  ;;  %7310 = vmatprep.subr.bf16.mxu1 %v11418_v47  ;;  %v1707_v44 = vcombine.low %v9329_v26, %v9325_v61  ;;  %v9378_v1 = vrot.slane %v1675_v53, %v8438_v9  ;;  %v1755_v19 = vrot.slane %v1747_v54, %v8363_v8  ;;  %v1739_v29 = vrot.slane %v1731_v14, %v8363_v8 }
 0x2b4   : > { %v9286_v11 = vpop.permute.xlu1 %605  ;;  %v1708_v62 = vcombine.high %v9329_v26, %v9325_v61  ;;  %v9386_v18 = vrot.slane %v1748_v52, %v8363_v8  ;;  %v9389_v59 = vrot.slane %v1732_v51, %v8363_v8  ;;  %v971_v25 = vcombine.low %v9257_v0, %v9267_v48 }
 0x2b5   : > { %v955_v56 = vcombine.low %v9259_v38, %v9270_v40  ;;  %v1699_v60 = vrot.slane %v1691_v35, %v8438_v9  ;;  %v9402_v15 = vrot.slane %v1692_v50, %v8438_v9  ;;  %v1795_v32 = vcombine.low %v1739_v29, %v1755_v19 }
 0x2b6   : > { %v1796_v30 = vcombine.high %v1739_v29, %v1755_v19  ;;  %v2777_v14 = vsel %vm2443_vm2, %v2434_v17, 0  ;;  %v1811_v5 = vcombine.low %v9389_v59, %v9386_v18  ;;  %v9416_v10 = vrot.slane %v971_v25, %v8363_v8 }
 0x2b7   : > { %v9296_v24 = vpop.permute.xlu0 %617  ;;  %v9426_v51 = vrot.slane %v955_v56, %v8363_v8  ;;  %v1723_v50 = vcombine.low %v9362_v12, %v1699_v60  ;;  %v1726_v25 = vcombine.high %v9370_v57, %v9402_v15  ;;  %v1803_v56 = vrot.slane %v1795_v32, %v8438_v9 }
 0x2b8   : > { %v9302_v2 = vpop.permute.xlu1 %613  ;;  %v1003_v3 = vcombine.low %v9280_v34, %v9296_v24 }
 0x2b9   : > { %7307 = vmatmul.mubr.msk.bf16.vlgmr.msra.gmra.mrb[16].mxu1 %vm2443_vm2, %v2415_v28  ;;  %v987_v46 = vcombine.low %v9286_v11, %v9302_v2 }
 0x2ba   : > { %7311 = vmatpush3.bf16.xpose.msra.mxu1 %v2683_v16  ;;  %7312 = vmatprep.mubr.msk.bf16.mxu1 %vm8040_vm1, %v11418_v47  ;;  %v9405_v16 = vrot.slane %v1707_v44, %v8438_v9  ;;  %v9429_v6 = vrot.slane %v1003_v3, %v8363_v8  ;;  %v1724_v44 = vcombine.high %v9362_v12, %v1699_v60 }
 0x2bb   : > { %v9318_v36 = vpop.permute.xlu0 %625  ;;  %7316 = vmatprep.subr.bf16.mxu1 %v11418_v47  ;;  %v9432_v33 = vrot.slane %v987_v46, %v8363_v8  ;;  %v9447_v3 = vrot.slane %v1796_v30, %v8438_v9  ;;  %v1019_v46 = vcombine.low %v9426_v51, %v9416_v10 }
 0x2bc   : > { %v9321_v21 = vpop.permute.xlu1 %621 }
 0x2bf   : > { %v9348_v31 = vpop.permute.xlu0 %633 }
 0x2c0   : > { %v9364_v49 = vpop.permute.xlu1 %629  ;;  %v1107_v13 = vcombine.low %v9318_v36, %v9348_v31 }
 0x2c1   : > { %7313 = vmatmul.mubr.msk.bf16.vlgmr.msra.gmra.mrb[20].mxu1 %vm2443_vm2, %v2416_v7  ;;  %v1091_v7 = vcombine.low %v9321_v21, %v9364_v49 }
 0x2c2   : > { %7317 = vmatpush3.bf16.xpose.msra.mxu1 %v2730_v20  ;;  %7318 = vmatprep.mubr.msk.bf16.mxu1 %vm8040_vm1, %v11418_v47  ;;  %v1725_v20 = vcombine.low %v9370_v57, %v9402_v15  ;;  %v1727_v57 = vcombine.low %v9378_v1, %v9405_v16 }
 0x2c3   : > { %v1290_v53 = vpop.permute.xlu0 %1289  ;;  %7322 = vmatprep.subr.bf16.mxu1 %v11418_v47 }
 0x2c4   : > { %v1779_v23 = vcombine.low %v9244_v45, %v1290_v53  ;;  %v1286_v28 = vpop.permute.xlu1 %1285  ;;  %v1780_v17 = vcombine.high %v9244_v45, %v1290_v53  ;;  %v9450_v45 = vrot.slane %v1107_v13, %v8363_v8  ;;  %v9456_v53 = vrot.slane %v1811_v5, %v8438_v9 }
 0x2c5   : > { %v1763_v22 = vcombine.low %v9247_v63, %v1286_v28  ;;  %v1764_v35 = vcombine.high %v9247_v63, %v1286_v28  ;;  %v9453_v63 = vrot.slane %v1091_v7, %v8363_v8 }
 0x2c6   : > { %v1787_v54 = vrot.slane %v1779_v23, %v8363_v8  ;;  %v1051_v23 = vcombine.low %v9432_v33, %v9429_v6 }
 0x2c7   : > { %v9422_v52 = vpop.permute.xlu0 %641  ;;  %v1771_v27 = vrot.slane %v1763_v22, %v8363_v8  ;;  %v9464_v22 = vrot.slane %v1780_v17, %v8363_v8  ;;  %v9467_v32 = vrot.slane %v1764_v35, %v8363_v8  ;;  %v1155_v17 = vcombine.low %v9453_v63, %v9450_v45 }
 0x2c8   : > { %v9435_v58 = vpop.permute.xlu1 %637 }
 0x2c9   : > { %v1827_v19 = vcombine.low %v1771_v27, %v1787_v54  ;;  %v1828_v29 = vcombine.high %v1771_v27, %v1787_v54  ;;  %7319 = vmatmul.mubr.msk.bf16.vlgmr.msra.gmra.mrb[24].mxu1 %vm2443_vm2, %v9354_v43  ;;  %v972_v27 = vcombine.high %v9257_v0, %v9267_v48  ;;  %v1004_v0 = vcombine.high %v9280_v34, %v9296_v24 }
 0x2ca   : > { %7323 = vmatpush3.bf16.xpose.msra.mxu1 %v2777_v14  ;;  %7324 = vmatprep.mubr.msk.bf16.mxu1 %vm8040_vm1, %v11418_v47  ;;  %v956_v14 = vcombine.high %v9259_v38, %v9270_v40  ;;  %v988_v48 = vcombine.high %v9286_v11, %v9302_v2 }
 0x2cb   : > { %v650_v12 = vpop.permute.xlu0 %649  ;;  %v1835_v28 = vrot.slane %v1827_v19, %v8438_v9  ;;  %v1842_v5 = vrot.slane %v1828_v29, %v8438_v9  ;;  %7334 = vmatprep.subr.bf16.mxu1 %v11418_v47  ;;  %v1059_v19 = vrot.slane %v1051_v23, %v8438_v9  ;;  %v9555_v15 = vrot.slane %v972_v27, %v8363_v8 }
 0x2cc   : > { %v646_v60 = vpop.permute.xlu1 %645  ;;  %v1139_v30 = vcombine.low %v9422_v52, %v650_v12  ;;  %v1140_v2 = vcombine.high %v9422_v52, %v650_v12  ;;  %v1156_v52 = vcombine.high %v9453_v63, %v9450_v45 }
 0x2cd   : > { %v1123_v54 = vcombine.low %v9435_v58, %v646_v60  ;;  %v1859_v13 = vcombine.low %v1803_v56, %v1835_v28  ;;  %v1860_v7 = vcombine.high %v1803_v56, %v1835_v28  ;;  %v1027_v56 = vrot.slane %v1019_v46, %v8438_v9 }
 0x2ce   : > { %v1147_v43 = vrot.slane %v1139_v30, %v8363_v8  ;;  %v1052_v30 = vcombine.high %v9432_v33, %v9429_v6  ;;  %v1861_v40 = vcombine.low %v9447_v3, %v1842_v5  ;;  %v1124_v6 = vcombine.high %v9435_v58, %v646_v60 }
 0x2cf   : > { %v1131_v35 = vrot.slane %v1123_v54, %v8363_v8  ;;  %v2435_v29 = vpack.c.bf16 %v1859_v13, %v1723_v50  ;;  %v2436_v41 = vpack.c.bf16 %v1860_v7, %v1724_v44  ;;  %v1843_v54 = vcombine.low %v9467_v32, %v9464_v22 }
 0x2d0   : > { %v1108_v50 = vcombine.high %v9318_v36, %v9348_v31  ;;  %v1163_v44 = vrot.slane %v1155_v17, %v8438_v9  ;;  %v1083_v24 = vcombine.low %v1027_v56, %v1059_v19  ;;  %v1092_v46 = vcombine.high %v9321_v21, %v9364_v49 }
 0x2d1   : > { %v1187_v28 = vcombine.low %v1131_v35, %v1147_v43  ;;  %v2824_v38 = vsel %vm2443_vm2, %v2435_v29, 0  ;;  %v2871_v11 = vsel %vm2443_vm2, %v2436_v41, 0  ;;  %v1188_v33 = vcombine.high %v1131_v35, %v1147_v43  ;;  %7325 = vmatmul.mubr.msk.bf16.vlgmr.msra.gmra.mrb[28].mxu1 %vm2443_vm2, %v9359_v4 }
 0x2d2   : > { %7329 = vmatpush3.bf16.xpose.msra.mxu0 %v2824_v38  ;;  %v1862_v31 = vcombine.high %v9447_v3, %v1842_v5  ;;  %v1020_v41 = vcombine.high %v9426_v51, %v9416_v10  ;;  %v1851_v58 = vrot.slane %v1843_v54, %v8438_v9  ;;  %7335 = vmatpush3.bf16.xpose.msra.mxu1 %v2871_v11 }
 0x2d3   : > { %v1195_v34 = vrot.slane %v1187_v28, %v8438_v9  ;;  %7340 = vmatprep.subr.bf16.mxu0 %v11418_v47  ;;  %v2437_v12 = vpack.c.bf16 %v1861_v40, %v1725_v20  ;;  %v9516_v60 = vrot.slane %v1004_v0, %v8363_v8  ;;  %v9519_v21 = vrot.slane %v988_v48, %v8363_v8 }
 0x2d4   : > { %v1084_v49 = vcombine.high %v1027_v56, %v1059_v19  ;;  %7336 = vmatprep.mubr.msk.bf16.mxu1 %vm8040_vm1, %v11418_v47  ;;  %v1066_v10 = vrot.slane %v1052_v30, %v8438_v9  ;;  %v9525_v51 = vrot.slane %v1140_v2, %v8363_v8  ;;  %v9528_v3 = vrot.slane %v1124_v6, %v8363_v8 }
 0x2d5   : > { %v1219_v23 = vcombine.low %v1163_v44, %v1195_v34  ;;  %v1220_v36 = vcombine.high %v1163_v44, %v1195_v34  ;;  %v1202_v20 = vrot.slane %v1188_v33, %v8438_v9  ;;  %7346 = vmatprep.subr.bf16.mxu1 %v11418_v47  ;;  %v9533_v45 = vrot.slane %v1108_v50, %v8363_v8 }
 0x2d6   : > { %v9536_v63 = vrot.slane %v1092_v46, %v8363_v8  ;;  %v2438_v13 = vpack.c.bf16 %v1862_v31, %v1726_v25  ;;  %v1170_v7 = vrot.slane %v1156_v52, %v8438_v9  ;;  %v1844_v17 = vcombine.high %v9467_v32, %v9464_v22 }
 0x2d7   : > { %v2419_v4 = vpack.c.bf16 %v1219_v23, %v1083_v24  ;;  %v2420_v5 = vpack.c.bf16 %v1220_v36, %v1084_v49  ;;  %v2918_v43 = vsel %vm2443_vm2, %v2437_v12, 0  ;;  %v1863_v35 = vcombine.low %v9456_v53, %v1851_v58 }
 0x2d8   : > { %v1812_v19 = vcombine.high %v9389_v59, %v9386_v18  ;;  %v1034_v29 = vrot.slane %v1020_v41, %v8438_v9  ;;  %v9558_v25 = vrot.slane %v956_v14, %v8363_v8  ;;  %v1203_v22 = vcombine.low %v9528_v3, %v9525_v51 }
 0x2d9   : > { %7331 = vmatmul.mubr.msk.bf16.vlgmr.msra.gmra.mrb[32].mxu0 %vm2443_vm2, %v2419_v4  ;;  %v1221_v32 = vcombine.low %v1170_v7, %v1202_v20  ;;  %v1067_v18 = vcombine.low %v9519_v21, %v9516_v60  ;;  %7337 = vmatmul.mubr.msk.bf16.vlgmr.msra.gmra.mrb[32].mxu1 %vm2443_vm2, %v2420_v5  ;;  %v2965_v56 = vsel %vm2443_vm2, %v2438_v13, 0  ;;  %v1864_v27 = vcombine.high %v9456_v53, %v1851_v58 }
 0x2da   : > { %7341 = vmatpush3.bf16.xpose.msra.mxu0 %v2918_v43  ;;  %7342 = vmatprep.mubr.msk.bf16.mxu0 %vm8040_vm1, %v11418_v47  ;;  %v1085_v59 = vcombine.low %v1034_v29, %v1066_v10  ;;  %v1171_v14 = vcombine.low %v9536_v63, %v9533_v45  ;;  %v1858_v0 = vrot.slane %v1844_v17, %v8438_v9 }
 0x2db   : > { %7352 = vmatprep.subr.bf16.mxu0 %v11418_v47  ;;  %7347 = vmatpush3.bf16.xpose.msra.mxu1 %v2965_v56  ;;  %v2439_v48 = vpack.c.bf16 %v1863_v35, %v1727_v57  ;;  %v1722_v28 = vrot.slane %v1708_v62, %v8438_v9  ;;  %v1222_v30 = vcombine.high %v1170_v7, %v1202_v20 }
 0x2dc   : > { %7348 = vmatprep.mubr.msk.bf16.mxu1 %vm8040_vm1, %v11418_v47  ;;  %7358 = vmatprep.subr.bf16.mxu1 %v11418_v47  ;;  %v1728_v53 = vcombine.high %v9378_v1, %v9405_v16  ;;  %v1826_v54 = vrot.slane %v1812_v19, %v8438_v9  ;;  %v1035_v38 = vcombine.low %v9558_v25, %v9555_v15  ;;  %v11476_v19 = vld [vmem:[#allocation47_spill] sm:$0xff] }
 0x2dd   : > { %v1211_v40 = vrot.slane %v1203_v22, %v8438_v9  ;;  %v2421_v50 = vpack.c.bf16 %v1221_v32, %v1085_v59  ;;  %v11475_v44 = vcombine.high %v9174_v42, %v9163_v55  ;;  %v1086_v26 = vcombine.high %v1034_v29, %v1066_v10  ;;  %v11477_v29 = vld [vmem:[#allocation48_spill] sm:$0xff] }
 0x2de   : > { %v2440_v62 = vpack.c.bf16 %v1864_v27, %v1728_v53  ;;  %v1075_v34 = vrot.slane %v1067_v18, %v8438_v9  ;;  %v1179_v11 = vrot.slane %v1171_v14, %v8438_v9  ;;  %v3012_v1 = vsel %vm2443_vm2, %v2439_v48, 0 }
 0x2df   : > { %v1690_v61 = vrot.slane %v11475_v44, %v8438_v9  ;;  %v1865_v16 = vcombine.low %v1826_v54, %v1858_v0  ;;  %v2422_v24 = vpack.c.bf16 %v1222_v30, %v1086_v26  ;;  %v1043_v2 = vrot.slane %v1035_v38, %v8438_v9 }
 0x2e0   : > { %v1204_v55 = vcombine.high %v9528_v3, %v9525_v51  ;;  %v1223_v42 = vcombine.low %v1179_v11, %v1211_v40  ;;  %v1068_v33 = vcombine.high %v9519_v21, %v9516_v60  ;;  %v3059_v46 = vsel %vm2443_vm2, %v2440_v62, 0 }
 0x2e1   : > { %7343 = vmatmul.mubr.msk.bf16.vlgmr.msra.gmra.mrb[36].mxu0 %vm2443_vm2, %v2421_v50  ;;  %v1729_v6 = vcombine.low %v1690_v61, %v1722_v28  ;;  %v1866_v23 = vcombine.high %v1826_v54, %v1858_v0  ;;  %v1087_v36 = vcombine.low %v1043_v2, %v1075_v34  ;;  %v1172_v31 = vcombine.high %v9536_v63, %v9533_v45 }
 0x2e2   : > { %7353 = vmatpush3.bf16.xpose.msra.mxu0 %v3012_v1  ;;  %7354 = vmatprep.mubr.msk.bf16.mxu0 %vm8040_vm1, %v11418_v47  ;;  %v1224_v52 = vcombine.high %v1179_v11, %v1211_v40  ;;  %v1730_v58 = vcombine.high %v1690_v61, %v1722_v28  ;;  %v1036_v12 = vcombine.high %v9558_v25, %v9555_v15  ;;  %v11479_v11 = vld [vmem:[#allocation45_spill] sm:$0xff] }
 0x2e3   : > { %7364 = vmatprep.subr.bf16.mxu0 %v11418_v47  ;;  %7349 = vmatmul.mubr.msk.bf16.vlgmr.msra.gmra.mrb[36].mxu1 %vm2443_vm2, %v2422_v24  ;;  %v2441_v41 = vpack.c.bf16 %v1865_v16, %v1729_v6  ;;  %v1218_v60 = vrot.slane %v1204_v55, %v8438_v9  ;;  %v2423_v21 = vpack.c.bf16 %v1223_v42, %v1087_v36  ;;  %v11480_v16 = vld [vmem:[#allocation55_spill] sm:$0xff]  ;;  %v11481_v24 = vld [vmem:[#allocation46_spill] sm:$0xff]  ;;  %v11483_v36 = vld [vmem:[#allocation57_spill] sm:$0xff] }
 0x2e4   : > { %7359 = vmatpush3.bf16.xpose.msra.mxu1 %v3059_v46  ;;  %7360 = vmatprep.mubr.msk.bf16.mxu1 %vm8040_vm1, %v11418_v47  ;;  %v1088_v49 = vcombine.high %v1043_v2, %v1075_v34  ;;  %v2442_v4 = vpack.c.bf16 %v1866_v23, %v1730_v58  ;;  %v1082_v10 = vrot.slane %v1068_v33, %v8438_v9  ;;  %v11478_v34 = vld [vmem:[#allocation53_spill] sm:$0xff]  ;;  %v11482_v23 = vld [vmem:[#allocation59_spill] sm:$0xff] }
 0x2e5   : > { %7370 = vmatprep.subr.bf16.mxu1 %v11418_v47  ;;  %v1186_v51 = vrot.slane %v1172_v31, %v8438_v9  ;;  %v3106_v3 = vsel %vm2443_vm2, %v2441_v41, 0  ;;  %v1050_v45 = vrot.slane %v1036_v12, %v8438_v9  ;;  %v2155_v1 = vcombine.low %v11479_v11, %v11478_v34  ;;  %v11484_v41 = vld [vmem:[#allocation60_spill] sm:$0xff] }
 0x2e6   : > { %v2424_v20 = vpack.c.bf16 %v1224_v52, %v1088_v49  ;;  %v3153_v5 = vsel %vm2443_vm2, %v2442_v4, 0  ;;  %v2139_v2 = vcombine.low %v11481_v24, %v11480_v16  ;;  %v2187_v31 = vcombine.low %v11483_v36, %v11482_v23  ;;  %v11485_v52 = vld [vmem:[#allocation58_spill] sm:$0xff] }
 0x2e7   : > { %v1225_v63 = vcombine.low %v1186_v51, %v1218_v60  ;;  %v1089_v13 = vcombine.low %v1050_v45, %v1082_v10  ;;  %v1226_v7 = vcombine.high %v1186_v51, %v1218_v60  ;;  %v1090_v43 = vcombine.high %v1050_v45, %v1082_v10 }
 0x2e8   : > { %v2171_v58 = vcombine.low %v11485_v52, %v11484_v41  ;;  %v2140_v45 = vcombine.high %v11481_v24, %v11480_v16 }
 0x2e9   : > { %7355 = vmatmul.mubr.msk.bf16.vlgmr.msra.gmra.mrb[40].mxu0 %vm2443_vm2, %v2423_v21  ;;  %v2425_v17 = vpack.c.bf16 %v1225_v63, %v1089_v13  ;;  %v2426_v35 = vpack.c.bf16 %v1226_v7, %v1090_v43  ;;  %v2147_v63 = vrot.slane %v2139_v2, %v8363_v8  ;;  %v9660_v7 = vrot.slane %v2187_v31, %v8363_v8 }
 0x2ea   : > { %7365 = vmatpush3.bf16.xpose.msra.mxu0 %v3106_v3  ;;  %7366 = vmatprep.mubr.msk.bf16.mxu0 %vm8040_vm1, %v11418_v47  ;;  %v2156_v3 = vcombine.high %v11479_v11, %v11478_v34 }
 0x2eb   : > { %7376 = vmatprep.subr.bf16.mxu0 %v11418_v47  ;;  %7361 = vmatmul.mubr.msk.bf16.vlgmr.msra.gmra.mrb[40].mxu1 %vm2443_vm2, %v2424_v20  ;;  %v2163_v20 = vrot.slane %v2155_v1, %v8363_v8 }
 0x2ec   : > { %7371 = vmatpush3.bf16.xpose.msra.mxu1 %v3153_v5  ;;  %7372 = vmatprep.mubr.msk.bf16.mxu1 %vm8040_vm1, %v11418_v47 }
 0x2ed   : > { %7382 = vmatprep.subr.bf16.mxu1 %v11418_v47 }
 0x2f1   : > { %7367 = vmatmul.mubr.msk.bf16.vlgmr.msra.gmra.mrb[44].mxu0 %vm2443_vm2, %v2425_v17  ;;  %v2179_v17 = vrot.slane %v2171_v58, %v8363_v8  ;;  %v11491_v58 = vld [vmem:[#allocation62_spill] sm:$0xff] }
 0x2f2   : > { %7377 = vmatpush3.bf16.msra.mxu0 %v11476_v19  ;;  %7378 = vmatprep.mubr.msk.bf16.mxu0 %vm8040_vm1, %v11418_v47 }
 0x2f3   : > { %7388 = vmatprep.subr.bf16.mxu0 %v11418_v47  ;;  %7373 = vmatmul.mubr.msk.bf16.vlgmr.msra.gmra.mrb[44].mxu1 %vm2443_vm2, %v2426_v35 }
 0x2f4   : > { %7383 = vmatpush3.bf16.msra.mxu1 %v11477_v29  ;;  %7384 = vmatprep.mubr.msk.bf16.mxu1 %vm8040_vm1, %v11418_v47  ;;  %v9666_v29 = vrot.slane %v2156_v3, %v8363_v8 }
 0x2f5   : > { %7394 = vmatprep.subr.bf16.mxu1 %v11418_v47 }
 0x2f6   : > { %11486 = vst [vmem:[#allocation74_spill] sm:$0xff] %v9666_v29 }
 0x36c   : > { %v2484_v57 = vpop.f32.mrb[0].mxu1 }
 0x36d   : > { %v7284_v15 = vpop.f32.mrb[1].mxu1  ;;  %v3197_v22 = vsel %vm3196_vm3, %v2484_v57, -inf }
 0x36e   : > { %v2487_v25 = vpop.f32.mrb[2].mxu1 }
 0x36f   : > { %v3198_v32 = vsel %vm3196_vm3, %v2487_v25, -inf  ;;  %v7285_v18 = vpop.f32.mrb[3].mxu1 }
 0x370   : > { %v3199_v59 = vmax.f32 %v3197_v22, %v3198_v32  ;;  %v2204_v22 = vcombine.high %v2147_v63, %v2163_v20  ;;  %v2188_v32 = vcombine.high %v11483_v36, %v11482_v23  ;;  %v11488_v23 = vld [vmem:[#allocation63_spill] sm:$0xff]  ;;  %v11489_v36 = vld [vmem:[#allocation61_spill] sm:$0xff] }
 0x371   : > { %v2291_v31 = vcombine.low %v11489_v36, %v11488_v23 }
 0x372   : > { %v3200_v56 = vrot.slane %v3199_v59, 4  ;;  %v9688_v34 = vrot.slane %v2188_v32, %v8363_v8  ;;  %v9694_v1 = vrot.slane %v2204_v22, %v8438_v9 }
 0x374   : > { %v3201_v27 = vmax.f32 %v3199_v59, %v3200_v56  ;;  %v2531_v14 = vpop.f32.mrb[4].mxu1 }
 0x375   : > { %v7290_v0 = vpop.f32.mrb[5].mxu1  ;;  %v3206_v30 = vsel %vm3196_vm3, %v2531_v14, -inf }
 0x376   : > { %v3202_v48 = vrot.slane %v3201_v27, 2  ;;  %v2534_v28 = vpop.f32.mrb[6].mxu1  ;;  %v2172_v0 = vcombine.high %v11485_v52, %v11484_v41  ;;  %v2292_v41 = vcombine.high %v11489_v36, %v11488_v23  ;;  %v11490_v52 = vld [vmem:[#allocation64_spill] sm:$0xff] }
 0x377   : > { %v3207_v53 = vsel %vm3196_vm3, %v2534_v28, -inf  ;;  %v7291_v54 = vpop.f32.mrb[7].mxu1 }
 0x378   : > { %v3203_v38 = vmax.f32 %v3201_v27, %v3202_v48  ;;  %v3208_v40 = vmax.f32 %v3206_v30, %v3207_v53  ;;  %v2235_v54 = vcombine.low %v2179_v17, %v9660_v7  ;;  %v9691_v11 = vrot.slane %v2172_v0, %v8363_v8 }
 0x37a   : > { %v3204_v50 = vrot.slane %v3203_v38, 1  ;;  %v3209_v44 = vrot.slane %v3208_v40, 4 }
 0x37c   : > { %v3205_v61 = vmax.f32 %v3203_v38, %v3204_v50  ;;  %v3210_v26 = vmax.f32 %v3208_v40, %v3209_v44  ;;  %v9637_v62 = vpop.f32.mrb[8].mxu1 }
 0x37d   : > { %v7296_v55 = vpop.f32.mrb[9].mxu1  ;;  %v3215_v12 = vsel %vm3196_vm3, %v9637_v62, -inf }
 0x37e   : > { %v3341_v42 = vsub.f32 %v2484_v57, %v3205_v61  ;;  %v3342_v6 = vsub.f32 %v2487_v25, %v3205_v61  ;;  %v3211_v33 = vrot.slane %v3210_v26, 2  ;;  %v9643_v46 = vpop.f32.mrb[10].mxu1  ;;  %v9669_v57 = vrot.slane %v2140_v45, %v8363_v8 }
 0x37f   : > { %v3216_v60 = vsel %vm3196_vm3, %v9643_v46, -inf  ;;  %v7297_v21 = vpop.f32.mrb[11].mxu1  ;;  %v2203_v25 = vcombine.low %v2147_v63, %v2163_v20  ;;  %v2276_v20 = vcombine.high %v11491_v58, %v11490_v52 }
 0x380   : > { %v3373_v49 = vmul.f32 1.442695, %v3341_v42  ;;  %v3375_v4 = vmul.f32 1.442695, %v3342_v6  ;;  %v3212_v10 = vmax.f32 %v3210_v26, %v3211_v33  ;;  %v3217_v51 = vmax.f32 %v3215_v12, %v3216_v60  ;;  %11487 = vst [vmem:[#allocation47_spill] sm:$0xff] %v9669_v57 }
 0x381   : > { %v9685_v26 = vrot.slane %v2203_v25, %v8438_v9  ;;  %v9701_v42 = vrot.slane %v2235_v54, %v8438_v9  ;;  %v2236_v6 = vcombine.high %v2179_v17, %v9660_v7  ;;  %v2275_v12 = vcombine.low %v11491_v58, %v11490_v52 }
 0x382   : > { %7735 = vpow2.f32 %v3373_v49  ;;  %v3213_v5 = vrot.slane %v3212_v10, 1  ;;  %v3218_v13 = vrot.slane %v3217_v51, 4 }
 0x383   : > { %7737 = vpow2.f32 %v3375_v4 }
 0x384   : > { %v3214_v43 = vmax.f32 %v3212_v10, %v3213_v5  ;;  %v3219_v35 = vmax.f32 %v3217_v51, %v3218_v13  ;;  %v9663_v19 = vpop.f32.mrb[12].mxu1 }
 0x385   : > { %v7302_v15 = vpop.f32.mrb[13].mxu1  ;;  %v3224_v48 = vsel %vm3196_vm3, %v9663_v19, -inf }
 0x386   : > { %v3343_v18 = vsub.f32 %v2531_v14, %v3214_v43  ;;  %v3344_v59 = vsub.f32 %v2534_v28, %v3214_v43  ;;  %v3220_v56 = vrot.slane %v3219_v35, 2  ;;  %v9673_v27 = vpop.f32.mrb[14].mxu1  ;;  %v9729_v15 = vrot.slane %v2236_v6, %v8438_v9 }
 0x387   : > { %v3225_v30 = vsel %vm3196_vm3, %v9673_v27, -inf  ;;  %v7303_v53 = vpop.f32.mrb[15].mxu1 }
 0x388   : > { %v3377_v38 = vmul.f32 1.442695, %v3343_v18  ;;  %v3379_v40 = vmul.f32 1.442695, %v3344_v59  ;;  %v3221_v50 = vmax.f32 %v3219_v35, %v3220_v56  ;;  %v3226_v14 = vmax.f32 %v3224_v48, %v3225_v30 }
 0x389   : > { %v9736_v59 = vrot.slane %v2291_v31, %v8363_v8  ;;  %v9739_v56 = vrot.slane %v2292_v41, %v8363_v8  ;;  %v9744_v30 = vrot.slane %v2275_v12, %v8363_v8  ;;  %v9747_v53 = vrot.slane %v2276_v20, %v8363_v8 }
 0x38a   : > { %7739 = vpow2.f32 %v3377_v38  ;;  %v3222_v44 = vrot.slane %v3221_v50, 1  ;;  %v3227_v61 = vrot.slane %v3226_v14, 4 }
 0x38b   : > { %7741 = vpow2.f32 %v3379_v40 }
 0x38c   : > { %v9696_v16 = vpop.eup %7735  ;;  %v3223_v24 = vmax.f32 %v3221_v50, %v3222_v44  ;;  %v3228_v2 = vmax.f32 %v3226_v14, %v3227_v61  ;;  %v9698_v55 = vpop.f32.mrb[16].mxu1  ;;  %v11492_v14 = vld [vmem:[#allocation65_spill] sm:$0xff]  ;;  %v11493_v61 = vld [vmem:[#allocation67_spill] sm:$0xff] }
 0x38d   : > { %v9704_v33 = vpop.eup %7737  ;;  %v3437_v60 = vsel %vm3196_vm3, %v9696_v16, 0.0  ;;  %v7308_v21 = vpop.f32.mrb[17].mxu1  ;;  %v3233_v63 = vsel %vm3196_vm3, %v9698_v55, -inf  ;;  %v2323_v44 = vcombine.low %v11492_v14, %v8768_v37 }
 0x38e   : > { %v3438_v49 = vsel %vm3196_vm3, %v9704_v33, 0.0  ;;  %v3345_v4 = vsub.f32 %v9637_v62, %v3223_v24  ;;  %v3346_v10 = vsub.f32 %v9643_v46, %v3223_v24  ;;  %v3229_v51 = vrot.slane %v3228_v2, 2  ;;  %v9718_v3 = vpop.f32.mrb[18].mxu1  ;;  %v11494_v24 = vld [vmem:[#allocation66_spill] sm:$0xff] }
 0x38f   : > { %v3439_v45 = vadd.f32 %v3438_v49, %v3437_v60  ;;  %v3234_v5 = vsel %vm3196_vm3, %v9718_v3, -inf  ;;  %v7309_v13 = vpop.f32.mrb[19].mxu1 }
 0x390   : > { %v3381_v7 = vmul.f32 1.442695, %v3345_v4  ;;  %v3383_v17 = vmul.f32 1.442695, %v3346_v10  ;;  %v3230_v43 = vmax.f32 %v3228_v2, %v3229_v51  ;;  %v3235_v62 = vmax.f32 %v3233_v63, %v3234_v5 }
 0x391   : > { %v3440_v35 = vrot.slane %v3439_v45, 4  ;;  %v2307_v2 = vcombine.low %v11494_v24, %v11493_v61 }
 0x392   : > { %7743 = vpow2.f32 %v3381_v7  ;;  %v3231_v22 = vrot.slane %v3230_v43, 1  ;;  %v3236_v32 = vrot.slane %v3235_v62, 4 }
 0x393   : > { %v3441_v0 = vadd.f32 %v3440_v35, %v3439_v45  ;;  %7745 = vpow2.f32 %v3383_v17 }
 0x394   : > { %v9741_v48 = vpop.eup %7739  ;;  %v3232_v54 = vmax.f32 %v3230_v43, %v3231_v22  ;;  %v3237_v38 = vmax.f32 %v3235_v62, %v3236_v32  ;;  %v9749_v40 = vpop.f32.mrb[20].mxu1  ;;  %v2339_v43 = vcombine.low %v9744_v30, %v9736_v59  ;;  %v2340_v22 = vcombine.high %v9744_v30, %v9736_v59 }
 0x395   : > { %v9751_v50 = vpop.eup %7741  ;;  %v3442_v6 = vrot.slane %v3441_v0, 2  ;;  %v3446_v23 = vsel %vm3196_vm3, %v9741_v48, 0.0  ;;  %v7314_v36 = vpop.f32.mrb[21].mxu1  ;;  %v3242_v49 = vsel %vm3196_vm3, %v9749_v40, -inf }
 0x396   : > { %v3447_v31 = vsel %vm3196_vm3, %v9751_v50, 0.0  ;;  %v3347_v41 = vsub.f32 %v9663_v19, %v3232_v54  ;;  %v3348_v52 = vsub.f32 %v9673_v27, %v3232_v54  ;;  %v3238_v58 = vrot.slane %v3237_v38, 2  ;;  %v9763_v12 = vpop.f32.mrb[22].mxu1 }
 0x397   : > { %v3443_v60 = vadd.f32 %v3442_v6, %v3441_v0  ;;  %v3448_v21 = vadd.f32 %v3447_v31, %v3446_v23  ;;  %v3243_v4 = vsel %vm3196_vm3, %v9763_v12, -inf  ;;  %v7315_v10 = vpop.f32.mrb[23].mxu1  ;;  %v2331_v19 = vrot.slane %v2323_v44, %v8363_v8 }
 0x398   : > { %v3385_v51 = vmul.f32 1.442695, %v3347_v41  ;;  %v3387_v20 = vmul.f32 1.442695, %v3348_v52  ;;  %v3239_v45 = vmax.f32 %v3237_v38, %v3238_v58  ;;  %v3244_v63 = vmax.f32 %v3242_v49, %v3243_v4 }
 0x399   : > { %v2315_v27 = vrot.slane %v2307_v2, %v8363_v8  ;;  %v3444_v5 = vrot.slane %v3443_v60, 1  ;;  %v3449_v13 = vrot.slane %v3448_v21, 4  ;;  %v2324_v0 = vcombine.high %v11492_v14, %v8768_v37 }
 0x39a   : > { %7747 = vpow2.f32 %v3385_v51  ;;  %v3240_v7 = vrot.slane %v3239_v45, 1  ;;  %v3245_v17 = vrot.slane %v3244_v63, 4  ;;  %v2308_v54 = vcombine.high %v11494_v24, %v11493_v61 }
 0x39b   : > { %v3445_v62 = vadd.f32 %v3444_v5, %v3443_v60  ;;  %v3450_v35 = vadd.f32 %v3449_v13, %v3448_v21  ;;  %7749 = vpow2.f32 %v3387_v20  ;;  %v2371_v30 = vcombine.low %v2315_v27, %v2331_v19 }
 0x39c   : > { %v9775_v32 = vpop.eup %7743  ;;  %v3241_v38 = vmax.f32 %v3239_v45, %v3240_v7  ;;  %v3246_v44 = vmax.f32 %v3244_v63, %v3245_v17  ;;  %v9781_v2 = vpop.f32.mrb[24].mxu1  ;;  %v2372_v45 = vcombine.high %v2315_v27, %v2331_v19  ;;  %v9801_v13 = vrot.slane %v2340_v22, %v8438_v9 }
 0x39d   : > { %v9783_v6 = vpop.eup %7745  ;;  %7751 = vrcp.f32 %v3445_v62  ;;  %v3451_v23 = vrot.slane %v3450_v35, 2  ;;  %v3455_v36 = vsel %vm3196_vm3, %v9775_v32, 0.0  ;;  %v7320_v59 = vpop.f32.mrb[25].mxu1  ;;  %v3251_v58 = vsel %vm3196_vm3, %v9781_v2, -inf }
 0x39e   : > { %v3456_v31 = vsel %vm3196_vm3, %v9783_v6, 0.0  ;;  %v3349_v37 = vsub.f32 %v9698_v55, %v3241_v38  ;;  %v3350_v14 = vsub.f32 %v9718_v3, %v3241_v38  ;;  %v3247_v61 = vrot.slane %v3246_v44, 2  ;;  %v9791_v24 = vpop.f32.mrb[26].mxu1 }
 0x39f   : > { %v3452_v41 = vadd.f32 %v3451_v23, %v3450_v35  ;;  %v3457_v52 = vadd.f32 %v3456_v31, %v3455_v36  ;;  %v3252_v60 = vsel %vm3196_vm3, %v9791_v24, -inf  ;;  %v7321_v21 = vpop.f32.mrb[27].mxu1  ;;  %v9798_v3 = vrot.slane %v2339_v43, %v8438_v9 }
 0x3a0   : > { %v3389_v49 = vmul.f32 1.442695, %v3349_v37  ;;  %v3391_v4 = vmul.f32 1.442695, %v3350_v14  ;;  %v3248_v10 = vmax.f32 %v3246_v44, %v3247_v61  ;;  %v3253_v51 = vmax.f32 %v3251_v58, %v3252_v60 }
 0x3a1   : > { %v3453_v20 = vrot.slane %v3452_v41, 1  ;;  %v3458_v55 = vrot.slane %v3457_v52, 4  ;;  %v9804_v7 = vrot.slane %v2324_v0, %v8363_v8  ;;  %v9809_v38 = vrot.slane %v2308_v54, %v8363_v8 }
 0x3a2   : > { %7753 = vpow2.f32 %v3389_v49  ;;  %v3249_v63 = vrot.slane %v3248_v10, 1  ;;  %v3254_v5 = vrot.slane %v3253_v51, 4  ;;  %v9814_v27 = vrot.slane %v2371_v30, %v8438_v9 }
 0x3a3   : > { %v3454_v17 = vadd.f32 %v3453_v20, %v3452_v41  ;;  %v3459_v62 = vadd.f32 %v3458_v55, %v3457_v52  ;;  %7755 = vpow2.f32 %v3391_v4  ;;  %v9821_v59 = vrot.slane %v2372_v45, %v8438_v9 }
 0x3a4   : > { %v9806_v35 = vpop.eup %7747  ;;  %v3250_v43 = vmax.f32 %v3248_v10, %v3249_v63  ;;  %v3255_v44 = vmax.f32 %v3253_v51, %v3254_v5  ;;  %v9811_v19 = vpop.f32.mrb[28].mxu1 }
 0x3a5   : > { %v9816_v22 = vpop.eup %7749  ;;  %7757 = vrcp.f32 %v3454_v17  ;;  %v3460_v0 = vrot.slane %v3459_v62, 2  ;;  %v3464_v23 = vsel %vm3196_vm3, %v9806_v35, 0.0  ;;  %v7326_v36 = vpop.f32.mrb[29].mxu1  ;;  %v3260_v58 = vsel %vm3196_vm3, %v9811_v19, -inf }
 0x3a6   : > { %v3465_v54 = vsel %vm3196_vm3, %v9816_v22, 0.0  ;;  %v3351_v31 = vsub.f32 %v9749_v40, %v3250_v43  ;;  %v3352_v37 = vsub.f32 %v9763_v12, %v3250_v43  ;;  %v3256_v30 = vrot.slane %v3255_v44, 2  ;;  %v9827_v14 = vpop.f32.mrb[30].mxu1 }
 0x3a7   : > { %v7752_v61 = vpop.eup %7751  ;;  %v3461_v41 = vadd.f32 %v3460_v0, %v3459_v62  ;;  %v3466_v52 = vadd.f32 %v3465_v54, %v3464_v23  ;;  %v3261_v60 = vsel %vm3196_vm3, %v9827_v14, -inf  ;;  %v7327_v21 = vpop.f32.mrb[31].mxu1 }
 0x3a8   : > { %v3598_v49 = vmul.f32 %v7752_v61, %v9704_v33  ;;  %v3393_v4 = vmul.f32 1.442695, %v3351_v31  ;;  %v3395_v10 = vmul.f32 1.442695, %v3352_v37  ;;  %v3257_v40 = vmax.f32 %v3255_v44, %v3256_v30 }
 0x3a9   : > { %v3462_v51 = vrot.slane %v3461_v41, 1  ;;  %v3467_v12 = vrot.slane %v3466_v52, 4  ;;  %v3262_v20 = vmax.f32 %v3260_v58, %v3261_v60  ;;  %v3597_v55 = vmul.f32 %v7752_v61, %v9696_v16 }
 0x3aa   : > { %7759 = vpow2.f32 %v3393_v4  ;;  %v3258_v63 = vrot.slane %v3257_v40, 1 }
 0x3ab   : > { %v3463_v33 = vadd.f32 %v3462_v51, %v3461_v41  ;;  %v3468_v43 = vadd.f32 %v3467_v12, %v3466_v52  ;;  %7761 = vpow2.f32 %v3395_v10  ;;  %v3263_v44 = vrot.slane %v3262_v20, 4 }
 0x3ac   : > { %v9835_v45 = vpop.f32.mrb[32].mxu0  ;;  %v9843_v23 = vpop.eup %7753  ;;  %v3259_v16 = vmax.f32 %v3257_v40, %v3258_v63  ;;  %v3629_v36 = vpack.c.bf16 %v3598_v49, %v3597_v55 }
 0x3ad   : > { %v7332_v5 = vpop.f32.mrb[33].mxu0  ;;  %v3269_v54 = vsel %vm3196_vm3, %v9835_v45, -inf  ;;  %v9847_v31 = vpop.f32.mrb[32].mxu1  ;;  %7763 = vrcp.f32 %v3463_v33  ;;  %v3469_v41 = vrot.slane %v3468_v43, 2  ;;  %v3473_v52 = vsel %vm3196_vm3, %v9843_v23, 0.0 }
 0x3ae   : > { %v9841_v0 = vpop.f32.mrb[34].mxu0  ;;  %v9851_v61 = vpop.eup %7755  ;;  %v3264_v58 = vmax.f32 %v3262_v20, %v3263_v44  ;;  %v3353_v49 = vsub.f32 %v9781_v2, %v3259_v16  ;;  %v3354_v4 = vsub.f32 %v9791_v24, %v3259_v16  ;;  %7379 = vmatmul.mubr.msk.bf16.vlgmr.msra.gmra.mrb[48].mxu0 %vm3196_vm3, %v3629_v36  ;;  %v3278_v10 = vsel %vm3196_vm3, %v9847_v31, -inf  ;;  %v11495_v20 = vld [vmem:[#allocation49_spill] sm:$0xff] }
 0x3af   : > { %v3270_v37 = vsel %vm3196_vm3, %v9841_v0, -inf  ;;  %v7333_v30 = vpop.f32.mrb[35].mxu0  ;;  %v7338_v60 = vpop.f32.mrb[33].mxu1  ;;  %v3474_v21 = vsel %vm3196_vm3, %v9851_v61, 0.0  ;;  %v3470_v12 = vadd.f32 %v3469_v41, %v3468_v43  ;;  %7389 = vmatpush3.bf16.msra.mxu0 %v11495_v20  ;;  %7390 = vmatprep.mubr.msk.bf16.mxu0 %vm8040_vm1, %v11418_v47 }
 0x3b0   : > { %v9862_v40 = vpop.f32.mrb[34].mxu1  ;;  %v7758_v51 = vpop.eup %7757  ;;  %v3475_v55 = vadd.f32 %v3474_v21, %v3473_v52  ;;  %v3265_v63 = vrot.slane %v3264_v58, 2  ;;  %v3271_v5 = vmax.f32 %v3269_v54, %v3270_v37  ;;  %v3397_v24 = vmul.f32 1.442695, %v3353_v49  ;;  %7400 = vmatprep.subr.bf16.mxu0 %v11418_v47 }
 0x3b1   : > { %v7339_v33 = vpop.f32.mrb[35].mxu1  ;;  %v3600_v2 = vmul.f32 %v7758_v51, %v9751_v50  ;;  %v3399_v44 = vmul.f32 1.442695, %v3354_v4  ;;  %v3279_v16 = vsel %vm3196_vm3, %v9862_v40, -inf  ;;  %v3471_v36 = vrot.slane %v3470_v12, 1 }
 0x3b2   : > { %v3476_v43 = vrot.slane %v3475_v55, 4  ;;  %v3266_v30 = vmax.f32 %v3264_v58, %v3265_v63  ;;  %v3272_v41 = vrot.slane %v3271_v5, 4  ;;  %7765 = vpow2.f32 %v3397_v24 }
 0x3b3   : > { %v3280_v54 = vmax.f32 %v3278_v10, %v3279_v16  ;;  %v3599_v37 = vmul.f32 %v7758_v51, %v9741_v48  ;;  %v3472_v21 = vadd.f32 %v3471_v36, %v3470_v12  ;;  %7767 = vpow2.f32 %v3399_v44 }
 0x3b4   : > { %v9871_v52 = vpop.f32.mrb[36].mxu0  ;;  %v3477_v49 = vadd.f32 %v3476_v43, %v3475_v55  ;;  %v3267_v4 = vrot.slane %v3266_v30, 1  ;;  %v9878_v33 = vpop.eup %7759  ;;  %v3273_v58 = vmax.f32 %v3271_v5, %v3272_v41 }
 0x3b5   : > { %v3287_v50 = vsel %vm3196_vm3, %v9871_v52, -inf  ;;  %v7344_v60 = vpop.f32.mrb[37].mxu0  ;;  %v3281_v63 = vrot.slane %v3280_v54, 4  ;;  %v3630_v28 = vpack.c.bf16 %v3600_v2, %v3599_v37  ;;  %v9884_v51 = vpop.eup %7761  ;;  %7769 = vrcp.f32 %v3472_v21 }
 0x3b6   : > { %v9876_v20 = vpop.f32.mrb[38].mxu0  ;;  %v9880_v25 = vpop.f32.mrb[36].mxu1  ;;  %v3478_v12 = vrot.slane %v3477_v49, 2  ;;  %v3482_v55 = vsel %vm3196_vm3, %v9878_v33, 0.0  ;;  %v3268_v24 = vmax.f32 %v3266_v30, %v3267_v4  ;;  %v3483_v5 = vsel %vm3196_vm3, %v9884_v51, 0.0  ;;  %v11496_v4 = vld [vmem:[#allocation50_spill] sm:$0xff] }
 0x3b7   : > { %v3288_v48 = vsel %vm3196_vm3, %v9876_v20, -inf  ;;  %v7345_v10 = vpop.f32.mrb[39].mxu0  ;;  %v7350_v44 = vpop.f32.mrb[37].mxu1  ;;  %v3274_v16 = vrot.slane %v3273_v58, 2  ;;  %v3282_v2 = vmax.f32 %v3280_v54, %v3281_v63  ;;  %7385 = vmatmul.mubr.msk.bf16.vlgmr.msra.gmra.mrb[48].mxu1 %vm3196_vm3, %v3630_v28  ;;  %v3296_v36 = vsel %vm3196_vm3, %v9880_v25, -inf }
 0x3b8   : > { %v9893_v43 = vpop.f32.mrb[38].mxu1  ;;  %v9895_v41 = vpop.eup %7763  ;;  %v3479_v37 = vadd.f32 %v3478_v12, %v3477_v49  ;;  %v3484_v60 = vadd.f32 %v3483_v5, %v3482_v55  ;;  %v3355_v21 = vsub.f32 %v9811_v19, %v3268_v24  ;;  %v3356_v30 = vsub.f32 %v9827_v14, %v3268_v24  ;;  %7395 = vmatpush3.bf16.msra.mxu1 %v11496_v4 }
 0x3b9   : > { %v7351_v10 = vpop.f32.mrb[39].mxu1  ;;  %v9902_v54 = vmul.f32 %v9895_v41, %v9783_v6  ;;  %v3275_v28 = vmax.f32 %v3273_v58, %v3274_v16  ;;  %v3283_v63 = vrot.slane %v3282_v2, 2  ;;  %v3289_v44 = vmax.f32 %v3287_v50, %v3288_v48  ;;  %7396 = vmatprep.mubr.msk.bf16.mxu1 %vm8040_vm1, %v11418_v47  ;;  %7406 = vmatprep.subr.bf16.mxu1 %v11418_v47 }
 0x3ba   : > { %v3480_v49 = vrot.slane %v3479_v37, 1  ;;  %v3485_v12 = vrot.slane %v3484_v60, 4  ;;  %v3401_v19 = vmul.f32 1.442695, %v3355_v21  ;;  %v3403_v55 = vmul.f32 1.442695, %v3356_v30 }
 0x3bb   : > { %v3276_v14 = vrot.slane %v3275_v28, 1  ;;  %v3284_v24 = vmax.f32 %v3282_v2, %v3283_v63  ;;  %v3290_v5 = vrot.slane %v3289_v44, 4  ;;  %v3297_v4 = vsel %vm3196_vm3, %v9893_v43, -inf }
 0x3bc   : > { %v9909_v6 = vpop.f32.mrb[40].mxu0  ;;  %v3481_v58 = vadd.f32 %v3480_v49, %v3479_v37  ;;  %v3486_v16 = vadd.f32 %v3485_v12, %v3484_v60  ;;  %7771 = vpow2.f32 %v3401_v19  ;;  %v3298_v50 = vmax.f32 %v3296_v36, %v3297_v4  ;;  %v9911_v10 = vpop.eup %7765 }
 0x3bd   : > { %v7356_v48 = vpop.f32.mrb[41].mxu0  ;;  %7773 = vpow2.f32 %v3403_v55  ;;  %v3277_v62 = vmax.f32 %v3275_v28, %v3276_v14  ;;  %v3285_v18 = vrot.slane %v3284_v24, 1  ;;  %v3291_v21 = vmax.f32 %v3289_v44, %v3290_v5  ;;  %v9917_v63 = vpop.eup %7767 }
 0x3be   : > { %v9913_v30 = vpop.f32.mrb[40].mxu1  ;;  %v9915_v2 = vpop.f32.mrb[42].mxu0  ;;  %7775 = vrcp.f32 %v3481_v58  ;;  %v3487_v17 = vrot.slane %v3486_v16, 2  ;;  %v3491_v37 = vsel %vm3196_vm3, %v9911_v10, 0.0  ;;  %v3299_v60 = vrot.slane %v3298_v50, 4 }
 0x3bf   : > { %v7362_v36 = vpop.f32.mrb[41].mxu1  ;;  %v7357_v49 = vpop.f32.mrb[43].mxu0  ;;  %v3492_v12 = vsel %vm3196_vm3, %v9917_v63, 0.0  ;;  %v3357_v28 = vsub.f32 %v9835_v45, %v3277_v62  ;;  %v3358_v44 = vsub.f32 %v9841_v0, %v3277_v62  ;;  %v3286_v19 = vmax.f32 %v3284_v24, %v3285_v18 }
 0x3c0   : > { %v9925_v55 = vpop.f32.mrb[42].mxu1  ;;  %v9927_v14 = vpop.eup %7769  ;;  %v3488_v5 = vadd.f32 %v3487_v17, %v3486_v16  ;;  %v3493_v4 = vadd.f32 %v3492_v12, %v3491_v37  ;;  %v3292_v58 = vrot.slane %v3291_v21, 2  ;;  %v3300_v48 = vmax.f32 %v3298_v50, %v3299_v60 }
 0x3c1   : > { %v7363_v46 = vpop.f32.mrb[43].mxu1  ;;  %v9931_v36 = vmul.f32 %v9927_v14, %v9816_v22  ;;  %v3405_v49 = vmul.f32 1.442695, %v3357_v28  ;;  %v3407_v39 = vmul.f32 1.442695, %v3358_v44  ;;  %v3359_v45 = vsub.f32 %v9847_v31, %v3286_v19 }
 0x3c2   : > { %v3489_v8 = vrot.slane %v3488_v5, 1  ;;  %v3494_v62 = vrot.slane %v3493_v4, 4  ;;  %v3360_v18 = vsub.f32 %v9862_v40, %v3286_v19  ;;  %v3293_v0 = vmax.f32 %v3291_v21, %v3292_v58 }
 0x3c3   : > { %7777 = vpow2.f32 %v3405_v49  ;;  %v3409_v17 = vmul.f32 1.442695, %v3359_v45  ;;  %v3301_v16 = vrot.slane %v3300_v48, 2  ;;  %v3601_v46 = vmul.f32 %v9895_v41, %v9775_v32 }
 0x3c4   : > { %v9935_v24 = vpop.f32.mrb[44].mxu0  ;;  %v3490_v22 = vadd.f32 %v3489_v8, %v3488_v5  ;;  %v3495_v37 = vadd.f32 %v3494_v62, %v3493_v4  ;;  %7779 = vpow2.f32 %v3407_v39  ;;  %v3411_v60 = vmul.f32 1.442695, %v3360_v18  ;;  %v11497_v18 = vld [vmem:[#allocation51_spill] sm:$0xff] }
 0x3c5   : > { %v7368_v50 = vpop.f32.mrb[45].mxu0  ;;  %7781 = vpow2.f32 %v3409_v17  ;;  %v3294_v31 = vrot.slane %v3293_v0, 1  ;;  %v3302_v28 = vmax.f32 %v3300_v48, %v3301_v16  ;;  %v3631_v40 = vpack.c.bf16 %v9902_v54, %v3601_v46 }
 0x3c6   : > { %v9939_v12 = vpop.f32.mrb[46].mxu0  ;;  %v9942_v21 = vpop.f32.mrb[44].mxu1  ;;  %7783 = vrcp.f32 %v3490_v22  ;;  %v3496_v58 = vrot.slane %v3495_v37, 2  ;;  %v3305_v8 = vsel %vm3196_vm3, %v9909_v6, -inf  ;;  %v3314_v39 = vsel %vm3196_vm3, %v9913_v30, -inf }
 0x3c7   : > { %v7369_v44 = vpop.f32.mrb[47].mxu0  ;;  %v9944_v19 = vpop.eup %7771  ;;  %7785 = vpow2.f32 %v3411_v60  ;;  %v3295_v54 = vmax.f32 %v3293_v0, %v3294_v31  ;;  %v3303_v4 = vrot.slane %v3302_v28, 1  ;;  %7391 = vmatmul.mubr.msk.bf16.vlgmr.msra.gmra.mrb[52].mxu0 %vm3196_vm3, %v3631_v40  ;;  %v3306_v17 = vsel %vm3196_vm3, %v9915_v2, -inf }
 0x3c8   : > { %v7374_v32 = vpop.f32.mrb[45].mxu1  ;;  %v9950_v41 = vpop.eup %7773  ;;  %v3500_v5 = vsel %vm3196_vm3, %v9944_v19, 0.0  ;;  %v3497_v45 = vadd.f32 %v3496_v58, %v3495_v37  ;;  %7401 = vmatpush3.bf16.msra.mxu0 %v11497_v18  ;;  %v3315_v16 = vsel %vm3196_vm3, %v9925_v55, -inf  ;;  %7402 = vmatprep.mubr.msk.bf16.mxu0 %vm8040_vm1, %v11418_v47  ;;  %v3307_v40 = vmax.f32 %v3305_v8, %v3306_v17 }
 0x3c9   : > { %v9955_v48 = vpop.f32.mrb[46].mxu1  ;;  %v9957_v49 = vpop.eup %7775  ;;  %v3501_v62 = vsel %vm3196_vm3, %v9950_v41, 0.0  ;;  %v3361_v22 = vsub.f32 %v9871_v52, %v3295_v54  ;;  %v3362_v37 = vsub.f32 %v9876_v20, %v3295_v54  ;;  %7412 = vmatprep.subr.bf16.mxu0 %v11418_v47  ;;  %v3304_v31 = vmax.f32 %v3302_v28, %v3303_v4 }
 0x3ca   : > { %v7375_v0 = vpop.f32.mrb[47].mxu1  ;;  %v9970_v46 = vmul.f32 %v9957_v49, %v9851_v61  ;;  %v3502_v50 = vadd.f32 %v3501_v62, %v3500_v5  ;;  %v3498_v60 = vrot.slane %v3497_v45, 1  ;;  %v3316_v44 = vmax.f32 %v3314_v39, %v3315_v16 }
 0x3cb   : > { %v3413_v32 = vmul.f32 1.442695, %v3361_v22  ;;  %v3415_v18 = vmul.f32 1.442695, %v3362_v37  ;;  %v3603_v0 = vmul.f32 %v9927_v14, %v9806_v35  ;;  %v3363_v61 = vsub.f32 %v9880_v25, %v3304_v31 }
 0x3cc   : > { %v3503_v58 = vrot.slane %v3502_v50, 4  ;;  %v3499_v29 = vadd.f32 %v3498_v60, %v3497_v45  ;;  %v3364_v5 = vsub.f32 %v9893_v43, %v3304_v31  ;;  %v3308_v52 = vrot.slane %v3307_v40, 4 }
 0x3cd   : > { %v9979_v62 = vpop.eup %7777  ;;  %7787 = vpow2.f32 %v3413_v32  ;;  %v3317_v54 = vrot.slane %v3316_v44, 4  ;;  %v3632_v28 = vpack.c.bf16 %v9931_v36, %v3603_v0  ;;  %v3417_v35 = vmul.f32 1.442695, %v3363_v61 }
 0x3ce   : > { %v3504_v20 = vadd.f32 %v3503_v58, %v3502_v50  ;;  %v9982_v8 = vpop.eup %7779  ;;  %7789 = vrcp.f32 %v3499_v29  ;;  %v3509_v39 = vsel %vm3196_vm3, %v9979_v62, 0.0  ;;  %v3419_v14 = vmul.f32 1.442695, %v3364_v5  ;;  %v11498_v50 = vld [vmem:[#allocation52_spill] sm:$0xff] }
 0x3cf   : > { %v9986_v4 = vpop.eup %7781  ;;  %v3510_v43 = vsel %vm3196_vm3, %v9982_v8, 0.0  ;;  %7791 = vpow2.f32 %v3415_v18  ;;  %v3309_v45 = vmax.f32 %v3307_v40, %v3308_v52  ;;  %7397 = vmatmul.mubr.msk.bf16.vlgmr.msra.gmra.mrb[52].mxu1 %vm3196_vm3, %v3632_v28  ;;  %v3318_v16 = vmax.f32 %v3316_v44, %v3317_v54 }
 0x3d0   : > { %v3505_v25 = vrot.slane %v3504_v20, 2  ;;  %v9991_v17 = vpop.eup %7783  ;;  %v3511_v36 = vadd.f32 %v3510_v43, %v3509_v39  ;;  %v3518_v29 = vsel %vm3196_vm3, %v9986_v4, 0.0  ;;  %7793 = vpow2.f32 %v3417_v35  ;;  %7407 = vmatpush3.bf16.msra.mxu1 %v11498_v50  ;;  %7408 = vmatprep.mubr.msk.bf16.mxu1 %vm8040_vm1, %v11418_v47 }
 0x3d1   : > { %v9998_v22 = vpop.eup %7785  ;;  %v10002_v37 = vmul.f32 %v9991_v17, %v9884_v51  ;;  %7795 = vpow2.f32 %v3419_v14  ;;  %v3310_v31 = vrot.slane %v3309_v45, 2  ;;  %7418 = vmatprep.subr.bf16.mxu1 %v11418_v47  ;;  %v3319_v58 = vrot.slane %v3318_v16, 2 }
 0x3d2   : > { %v3506_v60 = vadd.f32 %v3505_v25, %v3504_v20  ;;  %v3512_v40 = vrot.slane %v3511_v36, 4  ;;  %v3519_v44 = vsel %vm3196_vm3, %v9998_v22, 0.0  ;;  %v3323_v32 = vsel %vm3196_vm3, %v9935_v24, -inf }
 0x3d3   : > { %v3520_v0 = vadd.f32 %v3519_v44, %v3518_v29  ;;  %v3311_v61 = vmax.f32 %v3309_v45, %v3310_v31  ;;  %v3332_v51 = vsel %vm3196_vm3, %v9942_v21, -inf  ;;  %v3320_v52 = vmax.f32 %v3318_v16, %v3319_v58 }
 0x3d4   : > { %v3507_v18 = vrot.slane %v3506_v60, 1  ;;  %v3513_v5 = vadd.f32 %v3512_v40, %v3511_v36  ;;  %v3324_v20 = vsel %vm3196_vm3, %v9939_v12, -inf  ;;  %v3333_v54 = vsel %vm3196_vm3, %v9955_v48, -inf }
 0x3d5   : > { %v3521_v39 = vrot.slane %v3520_v0, 4  ;;  %v3312_v35 = vrot.slane %v3311_v61, 1  ;;  %v3325_v14 = vmax.f32 %v3323_v32, %v3324_v20  ;;  %v3321_v43 = vrot.slane %v3320_v52, 1 }
 0x3d6   : > { %v3508_v28 = vadd.f32 %v3507_v18, %v3506_v60  ;;  %v3514_v25 = vrot.slane %v3513_v5, 2  ;;  %v3334_v50 = vmax.f32 %v3332_v51, %v3333_v54  ;;  %v3605_v45 = vmul.f32 %v9957_v49, %v9843_v23 }
 0x3d7   : > { %v10017_v29 = vpop.eup %7787  ;;  %v3522_v36 = vadd.f32 %v3521_v39, %v3520_v0  ;;  %v3313_v16 = vmax.f32 %v3311_v61, %v3312_v35  ;;  %v3326_v31 = vrot.slane %v3325_v14, 4  ;;  %v3322_v58 = vmax.f32 %v3320_v52, %v3321_v43 }
 0x3d8   : > { %11499 = vst [vmem:[#allocation48_spill] sm:$0xff] %v10017_v29  ;;  %7797 = vrcp.f32 %v3508_v28  ;;  %v7790_v40 = vpop.eup %7789  ;;  %v3515_v44 = vadd.f32 %v3514_v25, %v3513_v5  ;;  %v3527_v60 = vsel %vm3196_vm3, %v10017_v29, 0.0  ;;  %v3335_v18 = vrot.slane %v3334_v50, 4 }
 0x3d9   : > { %v10021_v32 = vpop.eup %7791  ;;  %v10024_v51 = vmul.f32 %v7790_v40, %v9917_v63  ;;  %v3523_v20 = vrot.slane %v3522_v36, 2  ;;  %v3365_v23 = vsub.f32 %v9909_v6, %v3313_v16  ;;  %v3366_v49 = vsub.f32 %v9915_v2, %v3313_v16 }
 0x3da   : > { %11500 = vst [vmem:[#allocation53_spill] sm:$0xff] %v10021_v32  ;;  %v10028_v0 = vpop.eup %7793  ;;  %v3516_v61 = vrot.slane %v3515_v44, 1  ;;  %v3528_v5 = vsel %vm3196_vm3, %v10021_v32, 0.0  ;;  %v3367_v54 = vsub.f32 %v9913_v30, %v3322_v58  ;;  %v3368_v52 = vsub.f32 %v9925_v55, %v3322_v58 }
 0x3db   : > { %v10034_v28 = vpop.eup %7795  ;;  %v3524_v39 = vadd.f32 %v3523_v20, %v3522_v36  ;;  %v3529_v63 = vadd.f32 %v3528_v5, %v3527_v60  ;;  %v3536_v35 = vsel %vm3196_vm3, %v10028_v0, 0.0  ;;  %v3421_v6 = vmul.f32 1.442695, %v3365_v23 }
 0x3dc   : > { %v3517_v25 = vadd.f32 %v3516_v61, %v3515_v44  ;;  %v3537_v2 = vsel %vm3196_vm3, %v10034_v28, 0.0  ;;  %v3423_v43 = vmul.f32 1.442695, %v3366_v49  ;;  %v3425_v16 = vmul.f32 1.442695, %v3367_v54 }
 0x3dd   : > { %v3525_v29 = vrot.slane %v3524_v39, 1  ;;  %v3530_v32 = vrot.slane %v3529_v63, 4  ;;  %v3538_v57 = vadd.f32 %v3537_v2, %v3536_v35  ;;  %7799 = vpow2.f32 %v3421_v6 }
 0x3de   : > { %7801 = vrcp.f32 %v3517_v25  ;;  %v3427_v30 = vmul.f32 1.442695, %v3368_v52  ;;  %v3327_v55 = vmax.f32 %v3325_v14, %v3326_v31  ;;  %v3336_v58 = vmax.f32 %v3334_v50, %v3335_v18  ;;  %v11501_v18 = vld [vmem:[#allocation54_spill] sm:$0xff] }
 0x3df   : > { %v3526_v36 = vadd.f32 %v3525_v29, %v3524_v39  ;;  %v3531_v60 = vadd.f32 %v3530_v32, %v3529_v63  ;;  %v3539_v20 = vrot.slane %v3538_v57, 4  ;;  %7803 = vpow2.f32 %v3423_v43 }
 0x3e0   : > { %7805 = vpow2.f32 %v3425_v16  ;;  %v3328_v23 = vrot.slane %v3327_v55, 2  ;;  %v3337_v44 = vrot.slane %v3336_v58, 2  ;;  %v3633_v61 = vpack.c.bf16 %v9970_v46, %v3605_v45 }
 0x3e1   : > { %7807 = vrcp.f32 %v3526_v36  ;;  %v3532_v49 = vrot.slane %v3531_v60, 2  ;;  %v3540_v54 = vadd.f32 %v3539_v20, %v3538_v57  ;;  %v3607_v35 = vmul.f32 %v9991_v17, %v9878_v33 }
 0x3e2   : > { %v7798_v5 = vpop.eup %7797  ;;  %7809 = vpow2.f32 %v3427_v30  ;;  %v3329_v14 = vmax.f32 %v3327_v55, %v3328_v23  ;;  %v3338_v50 = vmax.f32 %v3336_v58, %v3337_v44  ;;  %7403 = vmatmul.mubr.msk.bf16.vlgmr.msra.gmra.mrb[56].mxu0 %vm3196_vm3, %v3633_v61  ;;  %v3609_v57 = vmul.f32 %v7790_v40, %v9911_v10  ;;  %v11502_v40 = vld [vmem:[#allocation56_spill] sm:$0xff] }
 0x3e3   : > { %v10044_v52 = vmul.f32 %v7798_v5, %v9950_v41  ;;  %v3533_v29 = vadd.f32 %v3532_v49, %v3531_v60  ;;  %v3541_v31 = vrot.slane %v3540_v54, 2  ;;  %7413 = vmatpush3.bf16.msra.mxu0 %v11501_v18  ;;  %v3634_v46 = vpack.c.bf16 %v10002_v37, %v3607_v35  ;;  %7414 = vmatprep.mubr.msk.bf16.mxu0 %vm8040_vm1, %v11418_v47 }
 0x3e4   : > { %v3330_v33 = vrot.slane %v3329_v14, 1  ;;  %v3339_v17 = vrot.slane %v3338_v50, 1  ;;  %7424 = vmatprep.subr.bf16.mxu0 %v11418_v47  ;;  %v3611_v41 = vmul.f32 %v7798_v5, %v9944_v19  ;;  %v2387_v45 = vcombine.low %v9809_v38, %v9804_v7 }
 0x3e5   : > { %v3534_v32 = vrot.slane %v3533_v29, 1  ;;  %v3542_v39 = vadd.f32 %v3541_v31, %v3540_v54  ;;  %7409 = vmatmul.mubr.msk.bf16.vlgmr.msra.gmra.mrb[56].mxu1 %vm3196_vm3, %v3634_v46  ;;  %v3635_v37 = vpack.c.bf16 %v10024_v51, %v3609_v57  ;;  %v2405_v63 = vcombine.low %v9801_v13, %v9821_v59 }
 0x3e6   : > { %v3331_v6 = vmax.f32 %v3329_v14, %v3330_v33  ;;  %v3340_v10 = vmax.f32 %v3338_v50, %v3339_v17  ;;  %7419 = vmatpush3.bf16.msra.mxu1 %v11502_v40  ;;  %7420 = vmatprep.mubr.msk.bf16.mxu1 %vm8040_vm1, %v11418_v47  ;;  %v3636_v19 = vpack.c.bf16 %v10044_v52, %v3611_v41 }
 0x3e7   : > { %v10064_v25 = vpop.eup %7799  ;;  %v3535_v2 = vadd.f32 %v3534_v32, %v3533_v29  ;;  %v3543_v43 = vrot.slane %v3542_v39, 1  ;;  %v11503_v16 = vcombine.low %v9685_v26, %v9701_v42  ;;  %v11504_v51 = vcombine.low %v9798_v3, %v9814_v27  ;;  %7430 = vmatprep.subr.bf16.mxu1 %v11418_v47 }
 0x3e8   : > { %v11505_v55 = vcombine.high %v9685_v26, %v9701_v42  ;;  %v11506_v58 = vcombine.high %v9798_v3, %v9814_v27  ;;  %v7802_v60 = vpop.eup %7801  ;;  %v3545_v20 = vsel %vm3196_vm3, %v10064_v25, 0.0  ;;  %v3369_v23 = vsub.f32 %v9935_v24, %v3331_v6 }
 0x3e9   : > { %v3653_v30 = vpack.c.bf16 %v11504_v51, %v11503_v16  ;;  %v3370_v44 = vsub.f32 %v9939_v12, %v3331_v6  ;;  %v3371_v61 = vsub.f32 %v9942_v21, %v3340_v10  ;;  %v10084_v5 = vpop.eup %7803  ;;  %v3614_v49 = vmul.f32 %v7802_v60, %v9982_v8  ;;  %v11511_v16 = vld [vmem:[#allocation53_spill] sm:$0xff] }
 0x3ea   : > { %v3654_v36 = vpack.c.bf16 %v11506_v58, %v11505_v55  ;;  %7811 = vrcp.f32 %v3535_v2  ;;  %v3544_v26 = vadd.f32 %v3543_v43, %v3542_v39  ;;  %v3372_v42 = vsub.f32 %v9955_v48, %v3340_v10  ;;  %v10088_v3 = vpop.eup %7805  ;;  %7415 = vmatmul.mubr.msk.bf16.vlgmr.msra.gmra.mrb[60].mxu0 %vm3196_vm3, %v3635_v37  ;;  %v11512_v55 = vld [vmem:[#allocation48_spill] sm:$0xff] }
 0x3eb   : > { %v3546_v27 = vsel %vm3196_vm3, %v10084_v5, 0.0  ;;  %v3429_v54 = vmul.f32 1.442695, %v3369_v23  ;;  %v3431_v35 = vmul.f32 1.442695, %v3370_v44  ;;  %v3613_v24 = vmul.f32 %v7802_v60, %v9979_v62  ;;  %v7808_v12 = vpop.eup %7807  ;;  %7425 = vmatpush3.bf16.msra.mxu0 %v3653_v30  ;;  %7426 = vmatprep.mubr.msk.bf16.mxu0 %vm8040_vm1, %v11418_v47 }
 0x3ec   : > { %7813 = vrcp.f32 %v3544_v26  ;;  %v3547_v21 = vadd.f32 %v3546_v27, %v3545_v20  ;;  %v3554_v8 = vsel %vm3196_vm3, %v10088_v3, 0.0  ;;  %v3433_v52 = vmul.f32 1.442695, %v3371_v61  ;;  %v10098_v48 = vpop.eup %7809  ;;  %7436 = vmatprep.subr.bf16.mxu0 %v11418_v47  ;;  %v10144_v27 = vpop.permute.xlu1 %4384 }
 0x3ed   : > { %v3616_v14 = vmul.f32 %v7808_v12, %v9998_v22  ;;  %7815 = vpow2.f32 %v3429_v54  ;;  %v3435_v50 = vmul.f32 1.442695, %v3372_v42  ;;  %v3637_v62 = vpack.c.bf16 %v3614_v49, %v3613_v24  ;;  %7421 = vmatmul.mubr.msk.bf16.vlgmr.msra.gmra.mrb[60].mxu1 %vm3196_vm3, %v3636_v19 }
 0x3ee   : > { %v3548_v29 = vrot.slane %v3547_v21, 4  ;;  %v3555_v31 = vsel %vm3196_vm3, %v10098_v48, 0.0  ;;  %7817 = vpow2.f32 %v3431_v35  ;;  %v3615_v18 = vmul.f32 %v7808_v12, %v9986_v4  ;;  %7431 = vmatpush3.bf16.msra.mxu1 %v3654_v36  ;;  %7432 = vmatprep.mubr.msk.bf16.mxu1 %vm8040_vm1, %v11418_v47 }
 0x3ef   : > { %v3556_v46 = vadd.f32 %v3555_v31, %v3554_v8  ;;  %7819 = vpow2.f32 %v3433_v52  ;;  %v2269_v22 = vcombine.low %v9694_v1, %v9729_v15  ;;  %v2355_v57 = vcombine.low %v9747_v53, %v9739_v56  ;;  %7442 = vmatprep.subr.bf16.mxu1 %v11418_v47 }
 0x3f0   : > { %v3549_v33 = vadd.f32 %v3548_v29, %v3547_v21  ;;  %7821 = vpow2.f32 %v3435_v50  ;;  %v3638_v17 = vpack.c.bf16 %v3616_v14, %v3615_v18  ;;  %v2406_v4 = vcombine.high %v9801_v13, %v9821_v59  ;;  %v10156_v50 = vpop.permute.xlu0 %4436 }
 0x3f1   : > { %v3557_v41 = vrot.slane %v3556_v46, 4  ;;  %v2395_v32 = vrot.slane %v2387_v45, %v8438_v9  ;;  %v3655_v37 = vpack.c.bf16 %v2405_v63, %v2269_v22  ;;  %v2270_v6 = vcombine.high %v9694_v1, %v9729_v15  ;;  %v11508_v45 = vld [vmem:[#allocation47_spill] sm:$0xff]  ;;  %v11509_v1 = vld [vmem:[#allocation74_spill] sm:$0xff] }
 0x3f2   : > { %v3550_v39 = vrot.slane %v3549_v33, 2  ;;  %v11507_v10 = vcombine.low %v9691_v11, %v9688_v34  ;;  %7427 = vmatmul.mubr.msk.bf16.vlgmr.msra.gmra.mrb[64].mxu0 %vm3196_vm3, %v3637_v62  ;;  %v2363_v13 = vrot.slane %v2355_v57, %v8438_v9  ;;  %v11510_v15 = vcombine.low %v11508_v45, %v11509_v1 }
 0x3f3   : > { %v3558_v19 = vadd.f32 %v3557_v41, %v3556_v46  ;;  %7437 = vmatpush3.bf16.msra.mxu0 %v3655_v37  ;;  %v3656_v43 = vpack.c.bf16 %v2406_v4, %v2270_v6  ;;  %7438 = vmatprep.mubr.msk.bf16.mxu0 %vm8040_vm1, %v11418_v47  ;;  %v2388_v22 = vcombine.high %v9809_v38, %v9804_v7 }
 0x3f4   : > { %v2259_v40 = vrot.slane %v11507_v10, %v8438_v9  ;;  %v7812_v59 = vpop.eup %7811  ;;  %v3551_v2 = vadd.f32 %v3550_v39, %v3549_v33  ;;  %v2227_v63 = vrot.slane %v11510_v15, %v8438_v9  ;;  %7448 = vmatprep.subr.bf16.mxu0 %v11418_v47  ;;  %v2407_v36 = vcombine.low %v2363_v13, %v2395_v32  ;;  %v10180_v6 = vpop.permute.xlu0 %4434 }
 0x3f5   : > { %v3618_v51 = vmul.f32 %v7812_v59, %v11511_v16  ;;  %v3559_v30 = vrot.slane %v3558_v19, 2  ;;  %v3617_v58 = vmul.f32 %v7812_v59, %v11512_v55  ;;  %7433 = vmatmul.mubr.msk.bf16.vlgmr.msra.gmra.mrb[64].mxu1 %vm3196_vm3, %v3638_v17  ;;  %v2408_v52 = vcombine.high %v2363_v13, %v2395_v32  ;;  %v10172_v32 = vpop.permute.xlu1 %4382 }
 0x3f6   : > { %v7814_v60 = vpop.eup %7813  ;;  %v3552_v20 = vrot.slane %v3551_v2, 1  ;;  %v2271_v23 = vcombine.low %v2227_v63, %v2259_v40  ;;  %7443 = vmatpush3.bf16.msra.mxu1 %v3656_v43  ;;  %7444 = vmatprep.mubr.msk.bf16.mxu1 %vm8040_vm1, %v11418_v47  ;;  %v2272_v46 = vcombine.high %v2227_v63, %v2259_v40  ;;  %v2252_v4 = vcombine.high %v9691_v11, %v9688_v34 }
 0x3f7   : > { %v10137_v44 = vpop.eup %7815  ;;  %v3620_v61 = vmul.f32 %v7814_v60, %v10034_v28  ;;  %v3560_v49 = vadd.f32 %v3559_v30, %v3558_v19  ;;  %v3639_v26 = vpack.c.bf16 %v3618_v51, %v3617_v58  ;;  %7454 = vmatprep.subr.bf16.mxu1 %v11418_v47  ;;  %v3619_v24 = vmul.f32 %v7814_v60, %v10028_v0 }
 0x3f8   : > { %v10142_v42 = vpop.eup %7817  ;;  %v3553_v54 = vadd.f32 %v3552_v20, %v3551_v2  ;;  %v3563_v35 = vsel %vm3196_vm3, %v10137_v44, 0.0  ;;  %v3657_v8 = vpack.c.bf16 %v2407_v36, %v2271_v23  ;;  %v3658_v17 = vpack.c.bf16 %v2408_v52, %v2272_v46  ;;  %v4541_v16 = vpop.permute.xlu0 %4540 }
 0x3f9   : > { %v10150_v12 = vpop.eup %7819  ;;  %v3561_v28 = vrot.slane %v3560_v49, 1  ;;  %v3564_v21 = vsel %vm3196_vm3, %v10142_v42, 0.0  ;;  %v3640_v31 = vpack.c.bf16 %v3620_v61, %v3619_v24  ;;  %v2356_v41 = vcombine.high %v9747_v53, %v9739_v56  ;;  %v4489_v2 = vpop.permute.xlu1 %4488 }
 0x3fa   : > { %v10154_v14 = vpop.eup %7821  ;;  %7823 = vrcp.f32 %v3553_v54  ;;  %v3565_v62 = vadd.f32 %v3564_v21, %v3563_v35  ;;  %v3572_v29 = vsel %vm3196_vm3, %v10150_v12, 0.0  ;;  %7439 = vmatmul.mubr.msk.bf16.vlgmr.msra.gmra.mrb[68].mxu0 %vm3196_vm3, %v3639_v26  ;;  %v2220_v38 = vcombine.high %v11508_v45, %v11509_v1 }
 0x3fb   : > { %v3562_v18 = vadd.f32 %v3561_v28, %v3560_v49  ;;  %v3573_v0 = vsel %vm3196_vm3, %v10154_v14, 0.0  ;;  %7449 = vmatpush3.bf16.msra.mxu0 %v3657_v8  ;;  %7450 = vmatprep.mubr.msk.bf16.mxu0 %vm8040_vm1, %v11418_v47  ;;  %v2402_v37 = vrot.slane %v2388_v22, %v8438_v9  ;;  %v2266_v56 = vrot.slane %v2252_v4, %v8438_v9 }
 0x3fc   : > { %v3566_v57 = vrot.slane %v3565_v62, 4  ;;  %v3574_v33 = vadd.f32 %v3573_v0, %v3572_v29  ;;  %7460 = vmatprep.subr.bf16.mxu0 %v11418_v47  ;;  %v2370_v53 = vrot.slane %v2356_v41, %v8438_v9  ;;  %v2234_v19 = vrot.slane %v2220_v38, %v8438_v9  ;;  %v4539_v54 = vpop.permute.xlu0 %4538 }
 0x3fd   : > { %7825 = vrcp.f32 %v3562_v18  ;;  %7445 = vmatmul.mubr.msk.bf16.vlgmr.msra.gmra.mrb[68].mxu1 %vm3196_vm3, %v3640_v31  ;;  %v4390_v31 = vsel %vm2443_vm2, %v10144_v27, 0 }
 0x3fe   : > { %v3567_v39 = vadd.f32 %v3566_v57, %v3565_v62  ;;  %v3575_v7 = vrot.slane %v3574_v33, 4  ;;  %7455 = vmatpush3.bf16.msra.mxu1 %v3658_v17  ;;  %7456 = vmatprep.mubr.msk.bf16.mxu1 %vm8040_vm1, %v11418_v47  ;;  %v2409_v13 = vcombine.low %v2370_v53, %v2402_v37  ;;  %v2273_v63 = vcombine.low %v2234_v19, %v2266_v56 }
 0x3ff   : > { %7466 = vmatprep.subr.bf16.mxu1 %v11418_v47  ;;  %v2410_v60 = vcombine.high %v2370_v53, %v2402_v37  ;;  %v2274_v49 = vcombine.high %v2234_v19, %v2266_v56 }
 0x400   : > { %v3568_v34 = vrot.slane %v3567_v39, 2  ;;  %v3576_v11 = vadd.f32 %v3575_v7, %v3574_v33  ;;  %v3659_v36 = vpack.c.bf16 %v2409_v13, %v2273_v63  ;;  %v4645_v35 = vpop.permute.xlu0 %4644 }
 0x401   : > { %v3660_v26 = vpack.c.bf16 %v2410_v60, %v2274_v49  ;;  %v4650_v33 = vsel %vm2443_vm2, %v4645_v35, 0 }
 0x402   : > { %v3569_v10 = vadd.f32 %v3568_v34, %v3567_v39  ;;  %v3577_v40 = vrot.slane %v3576_v11, 2 }
 0x404   : > { %v7824_v59 = vpop.eup %7823  ;;  %v3570_v43 = vrot.slane %v3569_v10, 1  ;;  %v3578_v45 = vadd.f32 %v3577_v40, %v3576_v11  ;;  %v4643_v0 = vpop.permute.xlu0 %4642 }
 0x405   : > { %v3622_v1 = vmul.f32 %v7824_v59, %v10084_v5  ;;  %v3621_v15 = vmul.f32 %v7824_v59, %v10064_v25  ;;  %v4487_v5 = vpop.permute.xlu1 %4486 }
 0x406   : > { %v3571_v51 = vadd.f32 %v3570_v43, %v3569_v10  ;;  %v3579_v30 = vrot.slane %v3578_v45, 1 }
 0x407   : > { %v7826_v55 = vpop.eup %7825  ;;  %v3641_v58 = vpack.c.bf16 %v3622_v1, %v3621_v15 }
 0x408   : > { %v3624_v20 = vmul.f32 %v7826_v55, %v10098_v48  ;;  %7827 = vrcp.f32 %v3571_v51  ;;  %v3580_v23 = vadd.f32 %v3579_v30, %v3578_v45  ;;  %v3623_v61 = vmul.f32 %v7826_v55, %v10088_v3  ;;  %v4749_v27 = vpop.permute.xlu0 %4748  ;;  %v11513_v51 = vld [vmem:[#allocation69_spill] sm:$0xff]  ;;  %v11514_v30 = vld [vmem:[#allocation68_spill] sm:$0xff] }
 0x409   : > { %7451 = vmatmul.mubr.msk.bf16.vlgmr.msra.gmra.mrb[72].mxu0 %vm3196_vm3, %v3641_v58  ;;  %v4593_v3 = vpop.permute.xlu1 %4592  ;;  %v4754_v39 = vsel %vm2443_vm2, %v4749_v27, 0 }
 0x40a   : > { %7829 = vrcp.f32 %v3580_v23  ;;  %v3642_v25 = vpack.c.bf16 %v3624_v20, %v3623_v61  ;;  %7461 = vmatpush3.bf16.msra.mxu0 %v3659_v36  ;;  %7462 = vmatprep.mubr.msk.bf16.mxu0 %vm8040_vm1, %v11418_v47  ;;  %v4598_v22 = vsel %vm2443_vm2, %v4593_v3, 0 }
 0x40b   : > { %7472 = vmatprep.subr.bf16.mxu0 %v11418_v47 }
 0x40c   : > { %7457 = vmatmul.mubr.msk.bf16.vlgmr.msra.gmra.mrb[72].mxu1 %vm3196_vm3, %v3642_v25  ;;  %v4747_v46 = vpop.permute.xlu0 %4746 }
 0x40d   : > { %7467 = vmatpush3.bf16.msra.mxu1 %v3660_v26  ;;  %7468 = vmatprep.mubr.msk.bf16.mxu1 %vm8040_vm1, %v11418_v47  ;;  %v4591_v29 = vpop.permute.xlu1 %4590 }
 0x40e   : > { %7478 = vmatprep.subr.bf16.mxu1 %v11418_v47 }
 0x410   : > { %v4853_v17 = vpop.permute.xlu0 %4852 }
 0x412   : > { %v7828_v48 = vpop.eup %7827 }
 0x413   : > { %v3626_v24 = vmul.f32 %v7828_v48, %v10142_v42  ;;  %v3625_v28 = vmul.f32 %v7828_v48, %v10137_v44  ;;  %v4442_v44 = vsel %vm2443_vm2, %v10156_v50, 0  ;;  %v4697_v42 = vpop.permute.xlu1 %4696 }
 0x414   : > { %v7830_v21 = vpop.eup %7829  ;;  %v4702_v41 = vsel %vm2443_vm2, %v4697_v42, 0 }
 0x415   : > { %v3628_v8 = vmul.f32 %v7830_v21, %v10154_v14  ;;  %v3643_v52 = vpack.c.bf16 %v3626_v24, %v3625_v28  ;;  %v3627_v62 = vmul.f32 %v7830_v21, %v10150_v12  ;;  %v4494_v12 = vsel %vm2443_vm2, %v4489_v2, 0 }
 0x416   : > { %v4546_v14 = vsel %vm2443_vm2, %v4541_v16, 0 }
 0x417   : > { %7463 = vmatmul.mubr.msk.bf16.vlgmr.msra.gmra.mrb[76].mxu0 %vm3196_vm3, %v3643_v52  ;;  %v3644_v18 = vpack.c.bf16 %v3628_v8, %v3627_v62  ;;  %v4695_v50 = vpop.permute.xlu1 %4694  ;;  %v11515_v62 = vld [vmem:[#allocation44_spill] sm:$0xff] }
 0x418   : > { %7473 = vmatpush3.bf16.xpose.msra.mxu0 %v4390_v31  ;;  %7474 = vmatprep.mubr.msk.bf16.mxu0 %vm8040_vm1, %v11418_v47 }
 0x419   : > { %7469 = vmatmul.mubr.msk.bf16.vlgmr.msra.gmra.mrb[76].mxu1 %vm3196_vm3, %v3644_v18  ;;  %7484 = vmatprep.subr.bf16.mxu0 %v11418_v47 }
 0x41a   : > { %7479 = vmatpush3.bf16.xpose.msra.mxu1 %v4442_v44  ;;  %7480 = vmatprep.mubr.msk.bf16.mxu1 %vm8040_vm1, %v11418_v47 }
 0x41b   : > { %7490 = vmatprep.subr.bf16.mxu1 %v11418_v47  ;;  %v4801_v57 = vpop.permute.xlu1 %4800 }
 0x41c   : > { %v4806_v37 = vsel %vm2443_vm2, %v4801_v57, 0 }
 0x41f   : > { %7475 = vmatmul.mubr.msk.bf16.vlgmr.msra.gmra.mrb[80].mxu0 %vm2443_vm2, %v10172_v32  ;;  %v4799_v4 = vpop.permute.xlu1 %4798  ;;  %v4851_v32 = vpop.permute.xlu0 %4850 }
 0x420   : > { %7485 = vmatpush3.bf16.xpose.msra.mxu0 %v4494_v12  ;;  %7486 = vmatprep.mubr.msk.bf16.mxu0 %vm8040_vm1, %v11418_v47 }
 0x421   : > { %7481 = vmatmul.mubr.msk.bf16.vlgmr.msra.gmra.mrb[80].mxu1 %vm2443_vm2, %v10180_v6  ;;  %7496 = vmatprep.subr.bf16.mxu0 %v11418_v47  ;;  %v4858_v6 = vsel %vm2443_vm2, %v4853_v17, 0 }
 0x422   : > { %7491 = vmatpush3.bf16.xpose.msra.mxu1 %v4546_v14  ;;  %7492 = vmatprep.mubr.msk.bf16.mxu1 %vm8040_vm1, %v11418_v47 }
 0x423   : > { %7502 = vmatprep.subr.bf16.mxu1 %v11418_v47  ;;  %v4905_v7 = vpop.permute.xlu1 %4904  ;;  %v4957_v38 = vpop.permute.xlu0 %4956 }
 0x424   : > { %v4910_v56 = vsel %vm2443_vm2, %v4905_v7, 0  ;;  %v4962_v10 = vsel %vm2443_vm2, %v4957_v38, 0 }
 0x427   : > { %7487 = vmatmul.mubr.msk.bf16.vlgmr.msra.gmra.mrb[84].mxu0 %vm2443_vm2, %v4487_v5  ;;  %v4903_v34 = vpop.permute.xlu1 %4902  ;;  %v4955_v11 = vpop.permute.xlu0 %4954 }
 0x428   : > { %7497 = vmatpush3.bf16.xpose.msra.mxu0 %v4598_v22  ;;  %7498 = vmatprep.mubr.msk.bf16.mxu0 %vm8040_vm1, %v11418_v47 }
 0x429   : > { %7493 = vmatmul.mubr.msk.bf16.vlgmr.msra.gmra.mrb[84].mxu1 %vm2443_vm2, %v4539_v54  ;;  %7508 = vmatprep.subr.bf16.mxu0 %v11418_v47 }
 0x42a   : > { %7503 = vmatpush3.bf16.xpose.msra.mxu1 %v4650_v33  ;;  %7504 = vmatprep.mubr.msk.bf16.mxu1 %vm8040_vm1, %v11418_v47 }
 0x42b   : > { %7514 = vmatprep.subr.bf16.mxu1 %v11418_v47  ;;  %v5009_v53 = vpop.permute.xlu1 %5008  ;;  %v5061_v40 = vpop.permute.xlu0 %5060 }
 0x42c   : > { %v5014_v13 = vsel %vm2443_vm2, %v5009_v53, 0  ;;  %v5066_v2 = vsel %vm2443_vm2, %v5061_v40, 0 }
 0x42f   : > { %7499 = vmatmul.mubr.msk.bf16.vlgmr.msra.gmra.mrb[88].mxu0 %vm2443_vm2, %v4591_v29  ;;  %v5007_v19 = vpop.permute.xlu1 %5006  ;;  %v5059_v59 = vpop.permute.xlu0 %5058 }
 0x430   : > { %7509 = vmatpush3.bf16.xpose.msra.mxu0 %v4702_v41  ;;  %7510 = vmatprep.mubr.msk.bf16.mxu0 %vm8040_vm1, %v11418_v47 }
 0x431   : > { %7505 = vmatmul.mubr.msk.bf16.vlgmr.msra.gmra.mrb[88].mxu1 %vm2443_vm2, %v4643_v0  ;;  %7520 = vmatprep.subr.bf16.mxu0 %v11418_v47 }
 0x432   : > { %7515 = vmatpush3.bf16.xpose.msra.mxu1 %v4754_v39  ;;  %7516 = vmatprep.mubr.msk.bf16.mxu1 %vm8040_vm1, %v11418_v47 }
 0x433   : > { %7526 = vmatprep.subr.bf16.mxu1 %v11418_v47  ;;  %v5113_v43 = vpop.permute.xlu1 %5112  ;;  %v5165_v45 = vpop.permute.xlu0 %5164 }
 0x434   : > { %v5118_v1 = vsel %vm2443_vm2, %v5113_v43, 0  ;;  %v5170_v15 = vsel %vm2443_vm2, %v5165_v45, 0 }
 0x437   : > { %7511 = vmatmul.mubr.msk.bf16.vlgmr.msra.gmra.mrb[92].mxu0 %vm2443_vm2, %v4695_v50  ;;  %v5111_v63 = vpop.permute.xlu1 %5110  ;;  %v5163_v16 = vpop.permute.xlu0 %5162 }
 0x438   : > { %7521 = vmatpush3.bf16.xpose.msra.mxu0 %v4806_v37  ;;  %7522 = vmatprep.mubr.msk.bf16.mxu0 %vm8040_vm1, %v11418_v47 }
 0x439   : > { %7517 = vmatmul.mubr.msk.bf16.vlgmr.msra.gmra.mrb[92].mxu1 %vm2443_vm2, %v4747_v46  ;;  %7532 = vmatprep.subr.bf16.mxu0 %v11418_v47 }
 0x43a   : > { %7527 = vmatpush3.bf16.xpose.msra.mxu1 %v4858_v6  ;;  %7528 = vmatprep.mubr.msk.bf16.mxu1 %vm8040_vm1, %v11418_v47 }
 0x43b   : > { %7538 = vmatprep.subr.bf16.mxu1 %v11418_v47 }
 0x43f   : > { %7523 = vmatmul.mubr.msk.bf16.vlgmr.msra.gmra.mrb[96].mxu0 %vm2443_vm2, %v4799_v4 }
 0x440   : > { %7533 = vmatpush3.bf16.xpose.msra.mxu0 %v4910_v56  ;;  %7534 = vmatprep.mubr.msk.bf16.mxu0 %vm8040_vm1, %v11418_v47 }
 0x441   : > { %7529 = vmatmul.mubr.msk.bf16.vlgmr.msra.gmra.mrb[96].mxu1 %vm2443_vm2, %v4851_v32  ;;  %7544 = vmatprep.subr.bf16.mxu0 %v11418_v47 }
 0x442   : > { %7539 = vmatpush3.bf16.xpose.msra.mxu1 %v4962_v10  ;;  %7540 = vmatprep.mubr.msk.bf16.mxu1 %vm8040_vm1, %v11418_v47 }
 0x443   : > { %7550 = vmatprep.subr.bf16.mxu1 %v11418_v47 }
 0x447   : > { %7535 = vmatmul.mubr.msk.bf16.vlgmr.msra.gmra.mrb[100].mxu0 %vm2443_vm2, %v4903_v34 }
 0x448   : > { %7545 = vmatpush3.bf16.xpose.msra.mxu0 %v5014_v13  ;;  %7546 = vmatprep.mubr.msk.bf16.mxu0 %vm8040_vm1, %v11418_v47 }
 0x449   : > { %7541 = vmatmul.mubr.msk.bf16.vlgmr.msra.gmra.mrb[100].mxu1 %vm2443_vm2, %v4955_v11  ;;  %7556 = vmatprep.subr.bf16.mxu0 %v11418_v47 }
 0x44a   : > { %7551 = vmatpush3.bf16.xpose.msra.mxu1 %v5066_v2  ;;  %7552 = vmatprep.mubr.msk.bf16.mxu1 %vm8040_vm1, %v11418_v47 }
 0x44b   : > { %7562 = vmatprep.subr.bf16.mxu1 %v11418_v47 }
 0x44f   : > { %7547 = vmatmul.mubr.msk.bf16.vlgmr.msra.gmra.mrb[104].mxu0 %vm2443_vm2, %v5007_v19 }
 0x450   : > { %7557 = vmatpush3.bf16.xpose.msra.mxu0 %v5118_v1  ;;  %7558 = vmatprep.mubr.msk.bf16.mxu0 %vm8040_vm1, %v11418_v47 }
 0x451   : > { %7553 = vmatmul.mubr.msk.bf16.vlgmr.msra.gmra.mrb[104].mxu1 %vm2443_vm2, %v5059_v59  ;;  %7568 = vmatprep.subr.bf16.mxu0 %v11418_v47 }
 0x452   : > { %7563 = vmatpush3.bf16.xpose.msra.mxu1 %v5170_v15  ;;  %7564 = vmatprep.mubr.msk.bf16.mxu1 %vm8040_vm1, %v11418_v47 }
 0x453   : > { %7574 = vmatprep.subr.bf16.mxu1 %v11418_v47 }
 0x457   : > { %7559 = vmatmul.mubr.msk.bf16.vlgmr.msra.gmra.mrb[108].mxu0 %vm2443_vm2, %v5111_v63 }
 0x458   : > { %7569 = vmatpush3.bf16.msra.mxu0 %v11513_v51  ;;  %7570 = vmatprep.mubr.msk.bf16.mxu0 %vm8040_vm1, %v11418_v47 }
 0x459   : > { %7565 = vmatmul.mubr.msk.bf16.vlgmr.msra.gmra.mrb[108].mxu1 %vm2443_vm2, %v5163_v16  ;;  %7580 = vmatprep.subr.bf16.mxu0 %v11418_v47 }
 0x45a   : > { %7575 = vmatpush3.bf16.msra.mxu1 %v11514_v30  ;;  %7576 = vmatprep.mubr.msk.bf16.mxu1 %vm8040_vm1, %v11418_v47 }
 0x45b   : > { %7586 = vmatprep.subr.bf16.mxu1 %v11418_v47 }
 0x481   : > { %v3698_v55 = vpop.f32.mrb[48].mxu0 }
 0x482   : > { %v7380_v58 = vpop.f32.mrb[49].mxu0 }
 0x483   : > { %v3701_v36 = vpop.f32.mrb[50].mxu0 }
 0x484   : > { %v7381_v60 = vpop.f32.mrb[51].mxu0 }
 0x48a   : > { %v3742_v20 = vpop.f32.mrb[48].mxu1 }
 0x48b   : > { %v7386_v23 = vpop.f32.mrb[49].mxu1 }
 0x48c   : > { %v3745_v61 = vpop.f32.mrb[50].mxu1 }
 0x48d   : > { %v7387_v49 = vpop.f32.mrb[51].mxu1 }
 0x49a   : > { %v3786_v5 = vpop.f32.mrb[52].mxu0 }
 0x49b   : > { %v6187_v25 = vcombine.low %v3698_v55, %v3786_v5  ;;  %v6188_v26 = vcombine.high %v3698_v55, %v3786_v5  ;;  %v7392_v54 = vpop.f32.mrb[53].mxu0 }
 0x49c   : > { %v3789_v3 = vpop.f32.mrb[54].mxu0 }
 0x49d   : > { %v6459_v48 = vcombine.low %v3701_v36, %v3789_v3  ;;  %v6460_v35 = vcombine.high %v3701_v36, %v3789_v3  ;;  %v7393_v24 = vpop.f32.mrb[55].mxu0  ;;  %v6195_v29 = vrot.slane %v6187_v25, %v11515_v62  ;;  %v6202_v31 = vrot.slane %v6188_v26, %v11515_v62 }
 0x49f   : > { %v6467_v57 = vrot.slane %v6459_v48, %v11515_v62  ;;  %v10302_v33 = vrot.slane %v6460_v35, %v11515_v62 }
 0x4a2   : > { %v3830_v28 = vpop.f32.mrb[52].mxu1 }
 0x4a3   : > { %v6203_v21 = vcombine.low %v3742_v20, %v3830_v28  ;;  %v6204_v8 = vcombine.high %v3742_v20, %v3830_v28  ;;  %v7398_v52 = vpop.f32.mrb[53].mxu1 }
 0x4a4   : > { %v3833_v18 = vpop.f32.mrb[54].mxu1 }
 0x4a5   : > { %v6211_v0 = vrot.slane %v6203_v21, %v11515_v62  ;;  %v6218_v44 = vrot.slane %v6204_v8, %v11515_v62  ;;  %v6475_v42 = vcombine.low %v3745_v61, %v3833_v18  ;;  %v6476_v27 = vcombine.high %v3745_v61, %v3833_v18  ;;  %v7399_v12 = vpop.f32.mrb[55].mxu1 }
 0x4a7   : > { %v6251_v14 = vcombine.low %v6195_v29, %v6211_v0  ;;  %v6252_v50 = vcombine.high %v6195_v29, %v6211_v0  ;;  %v6267_v46 = vcombine.low %v6202_v31, %v6218_v44  ;;  %v6268_v22 = vcombine.high %v6202_v31, %v6218_v44 }
 0x4a8   : > { %v6483_v17 = vrot.slane %v6475_v42, %v11515_v62  ;;  %v10306_v4 = vrot.slane %v6476_v27, %v11515_v62 }
 0x4a9   : > { %v10315_v36 = vrot.slane %v6251_v14, %v8438_v9  ;;  %v10318_v60 = vrot.slane %v6252_v50, %v8438_v9  ;;  %v10323_v25 = vrot.slane %v6267_v46, %v8438_v9  ;;  %v10326_v26 = vrot.slane %v6268_v22, %v8438_v9 }
 0x4aa   : > { %v6523_v41 = vcombine.low %v6467_v57, %v6483_v17  ;;  %v6524_v32 = vcombine.high %v6467_v57, %v6483_v17  ;;  %v6539_v39 = vcombine.low %v10302_v33, %v10306_v4  ;;  %v6540_v7 = vcombine.high %v10302_v33, %v10306_v4 }
 0x4ac   : > { %v10329_v54 = vrot.slane %v6523_v41, %v8438_v9  ;;  %v10332_v3 = vrot.slane %v6524_v32, %v8438_v9 }
 0x4ae   : > { %11516 = vst [vmem:[#allocation45_spill] sm:$0xff] %v10329_v54  ;;  %11517 = vst [vmem:[#allocation55_spill] sm:$0xff] %v10332_v3 }
 0x4b5   : > { %v3874_v38 = vpop.f32.mrb[56].mxu0 }
 0x4b6   : > { %v7404_v37 = vpop.f32.mrb[57].mxu0 }
 0x4b7   : > { %v3877_v6 = vpop.f32.mrb[58].mxu0 }
 0x4b8   : > { %v7405_v34 = vpop.f32.mrb[59].mxu0  ;;  %v3918_v11 = vpop.f32.mrb[56].mxu1 }
 0x4b9   : > { %v7410_v56 = vpop.f32.mrb[57].mxu1 }
 0x4ba   : > { %v3921_v53 = vpop.f32.mrb[58].mxu1 }
 0x4bb   : > { %v7411_v10 = vpop.f32.mrb[59].mxu1 }
 0x4bd   : > { %v3962_v40 = vpop.f32.mrb[60].mxu0 }
 0x4be   : > { %v6219_v19 = vcombine.low %v3874_v38, %v3962_v40  ;;  %v6220_v13 = vcombine.high %v3874_v38, %v3962_v40  ;;  %v7416_v59 = vpop.f32.mrb[61].mxu0 }
 0x4bf   : > { %v3965_v2 = vpop.f32.mrb[62].mxu0 }
 0x4c0   : > { %v6491_v43 = vcombine.low %v3877_v6, %v3965_v2  ;;  %v6492_v45 = vcombine.high %v3877_v6, %v3965_v2  ;;  %v7417_v1 = vpop.f32.mrb[63].mxu0  ;;  %v4006_v15 = vpop.f32.mrb[60].mxu1  ;;  %v6227_v30 = vrot.slane %v6219_v19, %v11515_v62  ;;  %v6234_v55 = vrot.slane %v6220_v13, %v11515_v62 }
 0x4c1   : > { %v6235_v63 = vcombine.low %v3918_v11, %v4006_v15  ;;  %v6236_v16 = vcombine.high %v3918_v11, %v4006_v15  ;;  %v7422_v51 = vpop.f32.mrb[61].mxu1 }
 0x4c2   : > { %v4009_v58 = vpop.f32.mrb[62].mxu1  ;;  %v6499_v8 = vrot.slane %v6491_v43, %v11515_v62  ;;  %v6506_v52 = vrot.slane %v6492_v45, %v11515_v62  ;;  %v10382_v43 = vrot.slane %v6539_v39, %v8438_v9  ;;  %v10388_v45 = vrot.slane %v6540_v7, %v8438_v9 }
 0x4c3   : > { %v6243_v20 = vrot.slane %v6235_v63, %v11515_v62  ;;  %v6250_v23 = vrot.slane %v6236_v16, %v11515_v62  ;;  %v6507_v61 = vcombine.low %v3921_v53, %v4009_v58  ;;  %v6508_v49 = vcombine.high %v3921_v53, %v4009_v58  ;;  %v7423_v5 = vpop.f32.mrb[63].mxu1 }
 0x4c4   : > { %11522 = vst [vmem:[#allocation58_spill] sm:$0xff] %v10382_v43  ;;  %11523 = vst [vmem:[#allocation63_spill] sm:$0xff] %v10388_v45 }
 0x4c5   : > { %v6283_v48 = vcombine.low %v6227_v30, %v6243_v20  ;;  %v6284_v35 = vcombine.high %v6227_v30, %v6243_v20  ;;  %v6299_v24 = vcombine.low %v6234_v55, %v6250_v23  ;;  %v6300_v28 = vcombine.high %v6234_v55, %v6250_v23  ;;  %v4050_v21 = vpop.f32.mrb[64].mxu0 }
 0x4c6   : > { %v6515_v29 = vrot.slane %v6507_v61, %v11515_v62  ;;  %v6522_v31 = vrot.slane %v6508_v49, %v11515_v62  ;;  %v7428_v18 = vpop.f32.mrb[65].mxu0 }
 0x4c7   : > { %v4053_v0 = vpop.f32.mrb[66].mxu0  ;;  %v10339_v44 = vrot.slane %v6283_v48, %v8438_v9  ;;  %v10342_v42 = vrot.slane %v6284_v35, %v8438_v9  ;;  %v10345_v27 = vrot.slane %v6299_v24, %v8438_v9  ;;  %v10348_v12 = vrot.slane %v6300_v28, %v8438_v9 }
 0x4c8   : > { %v6555_v14 = vcombine.low %v6499_v8, %v6515_v29  ;;  %v6556_v50 = vcombine.high %v6499_v8, %v6515_v29  ;;  %v6571_v46 = vcombine.low %v6506_v52, %v6522_v31  ;;  %v6572_v22 = vcombine.high %v6506_v52, %v6522_v31  ;;  %v4094_v57 = vpop.f32.mrb[64].mxu1  ;;  %v7429_v17 = vpop.f32.mrb[67].mxu0 }
 0x4c9   : > { %v7434_v41 = vpop.f32.mrb[65].mxu1 }
 0x4ca   : > { %v4097_v34 = vpop.f32.mrb[66].mxu1  ;;  %v10367_v19 = vrot.slane %v6555_v14, %v8438_v9  ;;  %v10370_v13 = vrot.slane %v6556_v50, %v8438_v9  ;;  %v10373_v59 = vrot.slane %v6571_v46, %v8438_v9  ;;  %v10376_v2 = vrot.slane %v6572_v22, %v8438_v9 }
 0x4cb   : > { %v7435_v40 = vpop.f32.mrb[67].mxu1 }
 0x4cc   : > { %11518 = vst [vmem:[#allocation46_spill] sm:$0xff] %v10367_v19  ;;  %11519 = vst [vmem:[#allocation59_spill] sm:$0xff] %v10370_v13 }
 0x4cd   : > { %11520 = vst [vmem:[#allocation57_spill] sm:$0xff] %v10373_v59  ;;  %11521 = vst [vmem:[#allocation60_spill] sm:$0xff] %v10376_v2  ;;  %v4138_v1 = vpop.f32.mrb[68].mxu0 }
 0x4ce   : > { %v6323_v51 = vcombine.low %v4050_v21, %v4138_v1  ;;  %v6324_v30 = vcombine.high %v4050_v21, %v4138_v1  ;;  %v7440_v55 = vpop.f32.mrb[69].mxu0 }
 0x4cf   : > { %v4141_v7 = vpop.f32.mrb[70].mxu0 }
 0x4d0   : > { %v4182_v23 = vpop.f32.mrb[68].mxu1  ;;  %v6595_v61 = vcombine.low %v4053_v0, %v4141_v7  ;;  %v6596_v49 = vcombine.high %v4053_v0, %v4141_v7  ;;  %v7441_v5 = vpop.f32.mrb[71].mxu0  ;;  %v6331_v48 = vrot.slane %v6323_v51, %v11515_v62  ;;  %v10408_v35 = vrot.slane %v6324_v30, %v11515_v62 }
 0x4d1   : > { %v6339_v24 = vcombine.low %v4094_v57, %v4182_v23  ;;  %v6340_v28 = vcombine.high %v4094_v57, %v4182_v23  ;;  %v7446_v21 = vpop.f32.mrb[69].mxu1 }
 0x4d2   : > { %v4185_v8 = vpop.f32.mrb[70].mxu1  ;;  %v10415_v0 = vrot.slane %v6595_v61, %v11515_v62  ;;  %v10418_v50 = vrot.slane %v6596_v49, %v11515_v62 }
 0x4d3   : > { %v6347_v52 = vrot.slane %v6339_v24, %v11515_v62  ;;  %v10412_v29 = vrot.slane %v6340_v28, %v11515_v62  ;;  %v6611_v31 = vcombine.low %v4097_v34, %v4185_v8  ;;  %v6612_v18 = vcombine.high %v4097_v34, %v4185_v8  ;;  %v7447_v14 = vpop.f32.mrb[71].mxu1 }
 0x4d5   : > { %v6387_v46 = vcombine.low %v6331_v48, %v6347_v52  ;;  %v6388_v22 = vcombine.high %v6331_v48, %v6347_v52  ;;  %v6403_v57 = vcombine.low %v10408_v35, %v10412_v29  ;;  %v6404_v17 = vcombine.high %v10408_v35, %v10412_v29 }
 0x4d6   : > { %v10425_v41 = vrot.slane %v6611_v31, %v11515_v62  ;;  %v10428_v34 = vrot.slane %v6612_v18, %v11515_v62 }
 0x4d8   : > { %v6659_v40 = vcombine.low %v10415_v0, %v10425_v41  ;;  %v6660_v1 = vcombine.high %v10415_v0, %v10425_v41  ;;  %v6675_v51 = vcombine.low %v10418_v50, %v10428_v34  ;;  %v6676_v30 = vcombine.high %v10418_v50, %v10428_v34 }
 0x4dc   : > { %v4226_v55 = vpop.f32.mrb[72].mxu0 }
 0x4dd   : > { %v7452_v7 = vpop.f32.mrb[73].mxu0 }
 0x4de   : > { %v4229_v23 = vpop.f32.mrb[74].mxu0 }
 0x4df   : > { %v4270_v61 = vpop.f32.mrb[72].mxu1  ;;  %v7453_v49 = vpop.f32.mrb[75].mxu0 }
 0x4e0   : > { %v7458_v5 = vpop.f32.mrb[73].mxu1 }
 0x4e1   : > { %v4273_v48 = vpop.f32.mrb[74].mxu1 }
 0x4e2   : > { %v7459_v35 = vpop.f32.mrb[75].mxu1 }
 0x4ea   : > { %v4314_v24 = vpop.f32.mrb[76].mxu0 }
 0x4eb   : > { %v6355_v28 = vcombine.low %v4226_v55, %v4314_v24  ;;  %v6356_v21 = vcombine.high %v4226_v55, %v4314_v24  ;;  %v7464_v8 = vpop.f32.mrb[77].mxu0 }
 0x4ec   : > { %v4358_v52 = vpop.f32.mrb[76].mxu1  ;;  %v4317_v29 = vpop.f32.mrb[78].mxu0 }
 0x4ed   : > { %v6363_v31 = vrot.slane %v6355_v28, %v11515_v62  ;;  %v6370_v18 = vrot.slane %v6356_v21, %v11515_v62  ;;  %v6371_v14 = vcombine.low %v4270_v61, %v4358_v52  ;;  %v6372_v20 = vcombine.high %v4270_v61, %v4358_v52  ;;  %v7470_v58 = vpop.f32.mrb[77].mxu1  ;;  %v7465_v7 = vpop.f32.mrb[79].mxu0 }
 0x4ee   : > { %v6627_v4 = vcombine.low %v4229_v23, %v4317_v29  ;;  %v6628_v33 = vcombine.high %v4229_v23, %v4317_v29  ;;  %v4361_v49 = vpop.f32.mrb[78].mxu1  ;;  %v10449_v29 = vrot.slane %v6387_v46, %v8438_v9 }
 0x4ef   : > { %v6379_v5 = vrot.slane %v6371_v14, %v11515_v62  ;;  %v6386_v35 = vrot.slane %v6372_v20, %v11515_v62  ;;  %v6643_v39 = vcombine.low %v4273_v48, %v4361_v49  ;;  %v6644_v55 = vcombine.high %v4273_v48, %v4361_v49  ;;  %v7471_v24 = vpop.f32.mrb[79].mxu1 }
 0x4f0   : > { %v6635_v8 = vrot.slane %v6627_v4, %v11515_v62  ;;  %v6642_v28 = vrot.slane %v6628_v33, %v11515_v62  ;;  %v10452_v20 = vrot.slane %v6388_v22, %v8438_v9 }
 0x4f1   : > { %v6419_v16 = vcombine.low %v6363_v31, %v6379_v5  ;;  %v6420_v21 = vcombine.high %v6363_v31, %v6379_v5  ;;  %v6435_v63 = vcombine.low %v6370_v18, %v6386_v35  ;;  %v6436_v61 = vcombine.high %v6370_v18, %v6386_v35 }
 0x4f2   : > { %v6651_v58 = vrot.slane %v6643_v39, %v11515_v62  ;;  %v6658_v23 = vrot.slane %v6644_v55, %v11515_v62  ;;  %v10446_v52 = vpop.f32.mrb[80].mxu0  ;;  %v10461_v31 = vrot.slane %v6403_v57, %v8438_v9  ;;  %v10475_v35 = vrot.slane %v6404_v17, %v8438_v9 }
 0x4f3   : > { %v7476_v48 = vpop.f32.mrb[81].mxu0  ;;  %v10455_v4 = vrot.slane %v6419_v16, %v8438_v9  ;;  %v10458_v33 = vrot.slane %v6420_v21, %v8438_v9  ;;  %v10464_v62 = vrot.slane %v6435_v63, %v8438_v9  ;;  %v10478_v63 = vrot.slane %v6659_v40, %v8438_v9 }
 0x4f4   : > { %v6691_v39 = vcombine.low %v6635_v8, %v6651_v58  ;;  %v6692_v18 = vcombine.high %v6635_v8, %v6651_v58  ;;  %v6707_v46 = vcombine.low %v6642_v28, %v6658_v23  ;;  %v6708_v14 = vcombine.high %v6642_v28, %v6658_v23  ;;  %v10466_v7 = vpop.f32.mrb[80].mxu1  ;;  %v10468_v22 = vpop.f32.mrb[82].mxu0 }
 0x4f5   : > { %v7482_v49 = vpop.f32.mrb[81].mxu1  ;;  %v7477_v16 = vpop.f32.mrb[83].mxu0  ;;  %11524 = vst [vmem:[#allocation61_spill] sm:$0xff] %v10478_v63  ;;  %v10491_v17 = vrot.slane %v6436_v61, %v8438_v9  ;;  %v10500_v23 = vrot.slane %v6660_v1, %v8438_v9  ;;  %v5244_v15 = vsel %vm3196_vm3, %v10468_v22, -inf }
 0x4f6   : > { %v10480_v55 = vpop.f32.mrb[82].mxu1  ;;  %v10494_v40 = vrot.slane %v6691_v39, %v8438_v9  ;;  %v10503_v48 = vrot.slane %v6692_v18, %v8438_v9  ;;  %v10509_v49 = vrot.slane %v6675_v51, %v8438_v9  ;;  %v10512_v61 = vrot.slane %v6707_v46, %v8438_v9 }
 0x4f7   : > { %v7483_v58 = vpop.f32.mrb[83].mxu1  ;;  %11526 = vst [vmem:[#allocation62_spill] sm:$0xff] %v10500_v23  ;;  %v10518_v39 = vrot.slane %v6676_v30, %v8438_v9  ;;  %v10521_v0 = vrot.slane %v6708_v14, %v8438_v9  ;;  %v5213_v14 = vsel %vm3196_vm3, %v10446_v52, -inf  ;;  %v5214_v30 = vsel %vm3196_vm3, %v10466_v7, -inf }
 0x4f8   : > { %11525 = vst [vmem:[#allocation64_spill] sm:$0xff] %v10494_v40  ;;  %11527 = vst [vmem:[#allocation65_spill] sm:$0xff] %v10503_v48  ;;  %v5245_v10 = vsel %vm3196_vm3, %v10480_v55, -inf }
 0x4f9   : > { %11528 = vst [vmem:[#allocation67_spill] sm:$0xff] %v10509_v49  ;;  %11529 = vst [vmem:[#allocation66_spill] sm:$0xff] %v10512_v61 }
 0x4fa   : > { %11530 = vst [vmem:[#allocation49_spill] sm:$0xff] %v10518_v39  ;;  %11531 = vst [vmem:[#allocation50_spill] sm:$0xff] %v10521_v0  ;;  %v10531_v46 = vpop.f32.mrb[84].mxu0 }
 0x4fb   : > { %v5215_v16 = vsel %vm3196_vm3, %v10531_v46, -inf  ;;  %v7488_v58 = vpop.f32.mrb[85].mxu0 }
 0x4fc   : > { %v5216_v9 = vmax.f32 %v5213_v14, %v5215_v16  ;;  %v10549_v51 = vpop.f32.mrb[84].mxu1  ;;  %v10551_v34 = vpop.f32.mrb[86].mxu0 }
 0x4fd   : > { %v5217_v58 = vsel %vm3196_vm3, %v10549_v51, -inf  ;;  %v7494_v1 = vpop.f32.mrb[85].mxu1  ;;  %v5246_v18 = vsel %vm3196_vm3, %v10551_v34, -inf  ;;  %v7489_v41 = vpop.f32.mrb[87].mxu0 }
 0x4fe   : > { %v5218_v50 = vmax.f32 %v5214_v30, %v5217_v58  ;;  %v5247_v14 = vmax.f32 %v5244_v15, %v5246_v18  ;;  %v10561_v16 = vpop.f32.mrb[86].mxu1 }
 0x4ff   : > { %v5248_v53 = vsel %vm3196_vm3, %v10561_v16, -inf  ;;  %v7495_v21 = vpop.f32.mrb[87].mxu1 }
 0x500   : > { %v5249_v28 = vmax.f32 %v5245_v10, %v5248_v53 }
 0x502   : > { %v10567_v56 = vpop.f32.mrb[88].mxu0 }
 0x503   : > { %v5219_v1 = vsel %vm3196_vm3, %v10567_v56, -inf  ;;  %v7500_v11 = vpop.f32.mrb[89].mxu0 }
 0x504   : > { %v5220_v8 = vmax.f32 %v5216_v9, %v5219_v1  ;;  %v10571_v41 = vpop.f32.mrb[88].mxu1  ;;  %v10573_v15 = vpop.f32.mrb[90].mxu0 }
 0x505   : > { %v5221_v18 = vsel %vm3196_vm3, %v10571_v41, -inf  ;;  %v7506_v30 = vpop.f32.mrb[89].mxu1  ;;  %v5250_v58 = vsel %vm3196_vm3, %v10573_v15, -inf  ;;  %v7501_v21 = vpop.f32.mrb[91].mxu0 }
 0x506   : > { %v5222_v53 = vmax.f32 %v5218_v50, %v5221_v18  ;;  %v5251_v10 = vmax.f32 %v5247_v14, %v5250_v58  ;;  %v10579_v24 = vpop.f32.mrb[90].mxu1 }
 0x507   : > { %v5252_v11 = vsel %vm3196_vm3, %v10579_v24, -inf  ;;  %v7507_v9 = vpop.f32.mrb[91].mxu1 }
 0x508   : > { %v5253_v1 = vmax.f32 %v5249_v28, %v5252_v11 }
 0x50a   : > { %v10583_v6 = vpop.f32.mrb[92].mxu0 }
 0x50b   : > { %v5223_v37 = vsel %vm3196_vm3, %v10583_v6, -inf  ;;  %v7512_v57 = vpop.f32.mrb[93].mxu0 }
 0x50c   : > { %v5224_v30 = vmax.f32 %v5220_v8, %v5223_v37  ;;  %v10587_v5 = vpop.f32.mrb[92].mxu1  ;;  %v10589_v38 = vpop.f32.mrb[94].mxu0 }
 0x50d   : > { %v5225_v50 = vsel %vm3196_vm3, %v10587_v5, -inf  ;;  %v7518_v14 = vpop.f32.mrb[93].mxu1  ;;  %v5254_v18 = vsel %vm3196_vm3, %v10589_v38, -inf  ;;  %v7513_v58 = vpop.f32.mrb[95].mxu0 }
 0x50e   : > { %v5226_v28 = vmax.f32 %v5222_v53, %v5225_v50  ;;  %v5255_v21 = vmax.f32 %v5251_v10, %v5254_v18  ;;  %v10595_v11 = vpop.f32.mrb[94].mxu1 }
 0x50f   : > { %v5256_v57 = vsel %vm3196_vm3, %v10595_v11, -inf  ;;  %v7519_v37 = vpop.f32.mrb[95].mxu1 }
 0x510   : > { %v5257_v8 = vmax.f32 %v5253_v1, %v5256_v57 }
 0x512   : > { %v10599_v9 = vpop.f32.mrb[96].mxu0 }
 0x513   : > { %v5227_v32 = vsel %vm3196_vm3, %v10599_v9, -inf  ;;  %v7524_v0 = vpop.f32.mrb[97].mxu0 }
 0x514   : > { %v5228_v14 = vmax.f32 %v5224_v30, %v5227_v32  ;;  %v10603_v39 = vpop.f32.mrb[96].mxu1  ;;  %v10605_v2 = vpop.f32.mrb[98].mxu0 }
 0x515   : > { %v5229_v53 = vsel %vm3196_vm3, %v10603_v39, -inf  ;;  %v7530_v10 = vpop.f32.mrb[97].mxu1  ;;  %v5258_v50 = vsel %vm3196_vm3, %v10605_v2, -inf  ;;  %v7525_v18 = vpop.f32.mrb[99].mxu0 }
 0x516   : > { %v5230_v1 = vmax.f32 %v5226_v28, %v5229_v53  ;;  %v5259_v58 = vmax.f32 %v5255_v21, %v5258_v50  ;;  %v10611_v57 = vpop.f32.mrb[98].mxu1 }
 0x517   : > { %v5260_v0 = vsel %vm3196_vm3, %v10611_v57, -inf  ;;  %v7531_v32 = vpop.f32.mrb[99].mxu1 }
 0x518   : > { %v5261_v30 = vmax.f32 %v5257_v8, %v5260_v0 }
 0x51a   : > { %v10615_v37 = vpop.f32.mrb[100].mxu0 }
 0x51b   : > { %v5231_v45 = vsel %vm3196_vm3, %v10615_v37, -inf  ;;  %v7536_v61 = vpop.f32.mrb[101].mxu0 }
 0x51c   : > { %v5232_v10 = vmax.f32 %v5228_v14, %v5231_v45  ;;  %v10619_v49 = vpop.f32.mrb[100].mxu1  ;;  %v10621_v59 = vpop.f32.mrb[102].mxu0 }
 0x51d   : > { %v5233_v28 = vsel %vm3196_vm3, %v10619_v49, -inf  ;;  %v7542_v21 = vpop.f32.mrb[101].mxu1  ;;  %v5262_v53 = vsel %vm3196_vm3, %v10621_v59, -inf  ;;  %v7537_v50 = vpop.f32.mrb[103].mxu0 }
 0x51e   : > { %v5234_v8 = vmax.f32 %v5230_v1, %v5233_v28  ;;  %v5263_v18 = vmax.f32 %v5259_v58, %v5262_v53  ;;  %v10627_v0 = vpop.f32.mrb[102].mxu1 }
 0x51f   : > { %v5264_v61 = vsel %vm3196_vm3, %v10627_v0, -inf  ;;  %v7543_v45 = vpop.f32.mrb[103].mxu1 }
 0x520   : > { %v5265_v14 = vmax.f32 %v5261_v30, %v5264_v61 }
 0x522   : > { %v10631_v32 = vpop.f32.mrb[104].mxu0 }
 0x523   : > { %v5235_v43 = vsel %vm3196_vm3, %v10631_v32, -inf  ;;  %v7548_v48 = vpop.f32.mrb[105].mxu0 }
 0x524   : > { %v5236_v21 = vmax.f32 %v5232_v10, %v5235_v43  ;;  %v10635_v23 = vpop.f32.mrb[104].mxu1  ;;  %v10637_v13 = vpop.f32.mrb[106].mxu0 }
 0x525   : > { %v5237_v1 = vsel %vm3196_vm3, %v10635_v23, -inf  ;;  %v7554_v58 = vpop.f32.mrb[105].mxu1  ;;  %v5266_v28 = vsel %vm3196_vm3, %v10637_v13, -inf  ;;  %v7549_v53 = vpop.f32.mrb[107].mxu0 }
 0x526   : > { %v5238_v30 = vmax.f32 %v5234_v8, %v5237_v1  ;;  %v5267_v50 = vmax.f32 %v5263_v18, %v5266_v28  ;;  %v10643_v61 = vpop.f32.mrb[106].mxu1 }
 0x527   : > { %v5268_v48 = vsel %vm3196_vm3, %v10643_v61, -inf  ;;  %v7555_v43 = vpop.f32.mrb[107].mxu1 }
 0x528   : > { %v5269_v10 = vmax.f32 %v5265_v14, %v5268_v48 }
 0x52a   : > { %v10647_v45 = vpop.f32.mrb[108].mxu0 }
 0x52b   : > { %v5239_v3 = vsel %vm3196_vm3, %v10647_v45, -inf  ;;  %v7560_v40 = vpop.f32.mrb[109].mxu0 }
 0x52c   : > { %v5240_v58 = vmax.f32 %v5236_v21, %v5239_v3  ;;  %v10651_v63 = vpop.f32.mrb[108].mxu1  ;;  %v10653_v19 = vpop.f32.mrb[110].mxu0 }
 0x52d   : > { %v5241_v8 = vsel %vm3196_vm3, %v10651_v63, -inf  ;;  %v7566_v18 = vpop.f32.mrb[109].mxu1  ;;  %v5270_v1 = vsel %vm3196_vm3, %v10653_v19, -inf  ;;  %v7561_v28 = vpop.f32.mrb[111].mxu0 }
 0x52e   : > { %v5242_v14 = vmax.f32 %v5238_v30, %v5241_v8  ;;  %v5271_v53 = vmax.f32 %v5267_v50, %v5270_v1  ;;  %v10659_v48 = vpop.f32.mrb[110].mxu1 }
 0x52f   : > { %v5272_v40 = vsel %vm3196_vm3, %v10659_v48, -inf  ;;  %v7567_v3 = vpop.f32.mrb[111].mxu1 }
 0x530   : > { %v10663_v21 = vmax.f32 %v5240_v58, %v5242_v14  ;;  %v5273_v43 = vmax.f32 %v5269_v10, %v5272_v40 }
 0x532   : > { %v5275_v54 = vsub.f32 %v10446_v52, %v10663_v21  ;;  %v5277_v18 = vsub.f32 %v10466_v7, %v10663_v21  ;;  %v5279_v28 = vsub.f32 %v10531_v46, %v10663_v21  ;;  %v5281_v30 = vsub.f32 %v10549_v51, %v10663_v21 }
 0x533   : > { %v5283_v50 = vsub.f32 %v10567_v56, %v10663_v21  ;;  %v5285_v58 = vsub.f32 %v10571_v41, %v10663_v21  ;;  %v5287_v10 = vsub.f32 %v10583_v6, %v10663_v21  ;;  %v5289_v52 = vsub.f32 %v10587_v5, %v10663_v21 }
 0x534   : > { %v5291_v7 = vsub.f32 %v10599_v9, %v10663_v21  ;;  %v5293_v46 = vsub.f32 %v10603_v39, %v10663_v21  ;;  %v5295_v51 = vsub.f32 %v10615_v37, %v10663_v21  ;;  %v5297_v56 = vsub.f32 %v10619_v49, %v10663_v21 }
 0x535   : > { %v5299_v41 = vsub.f32 %v10631_v32, %v10663_v21  ;;  %v5301_v6 = vsub.f32 %v10635_v23, %v10663_v21  ;;  %v5305_v9 = vsub.f32 %v10651_v63, %v10663_v21  ;;  %v5307_v8 = vmul.f32 1.442695, %v5275_v54 }
 0x536   : > { %v5311_v39 = vmul.f32 1.442695, %v5277_v18  ;;  %v5315_v1 = vmul.f32 1.442695, %v5279_v28  ;;  %v10697_v14 = vmax.f32 %v5271_v53, %v5273_v43  ;;  %v5319_v37 = vmul.f32 1.442695, %v5281_v30 }
 0x537   : > { %7831 = vpow2.f32 %v5307_v8  ;;  %v5323_v49 = vmul.f32 1.442695, %v5283_v50  ;;  %v5327_v32 = vmul.f32 1.442695, %v5285_v58  ;;  %v5331_v5 = vmul.f32 1.442695, %v5287_v10 }
 0x538   : > { %7833 = vpow2.f32 %v5311_v39  ;;  %v5276_v40 = vsub.f32 %v10468_v22, %v10697_v14  ;;  %v5278_v3 = vsub.f32 %v10480_v55, %v10697_v14  ;;  %v5280_v54 = vsub.f32 %v10551_v34, %v10697_v14 }
 0x539   : > { %7835 = vpow2.f32 %v5315_v1  ;;  %v5282_v53 = vsub.f32 %v10561_v16, %v10697_v14  ;;  %v5284_v43 = vsub.f32 %v10573_v15, %v10697_v14  ;;  %v5286_v18 = vsub.f32 %v10579_v24, %v10697_v14 }
 0x53a   : > { %7837 = vpow2.f32 %v5319_v37  ;;  %v5288_v22 = vsub.f32 %v10589_v38, %v10697_v14  ;;  %v5290_v55 = vsub.f32 %v10595_v11, %v10697_v14  ;;  %v5335_v28 = vmul.f32 1.442695, %v5289_v52 }
 0x53b   : > { %7839 = vpow2.f32 %v5323_v49  ;;  %v5292_v34 = vsub.f32 %v10605_v2, %v10697_v14  ;;  %v5294_v16 = vsub.f32 %v10611_v57, %v10697_v14  ;;  %v5296_v15 = vsub.f32 %v10621_v59, %v10697_v14 }
 0x53c   : > { %7841 = vpow2.f32 %v5327_v32  ;;  %v5298_v24 = vsub.f32 %v10627_v0, %v10697_v14  ;;  %v5339_v30 = vmul.f32 1.442695, %v5291_v7  ;;  %v5343_v10 = vmul.f32 1.442695, %v5293_v46 }
 0x53d   : > { %7843 = vpow2.f32 %v5331_v5  ;;  %v5347_v8 = vmul.f32 1.442695, %v5295_v51  ;;  %v5351_v1 = vmul.f32 1.442695, %v5297_v56  ;;  %v5309_v32 = vmul.f32 1.442695, %v5276_v40 }
 0x53e   : > { %7845 = vpow2.f32 %v5335_v28  ;;  %v5313_v5 = vmul.f32 1.442695, %v5278_v3  ;;  %v5317_v56 = vmul.f32 1.442695, %v5280_v54  ;;  %v5321_v11 = vmul.f32 1.442695, %v5282_v53 }
 0x53f   : > { %7847 = vpow2.f32 %v5339_v30  ;;  %v5355_v30 = vmul.f32 1.442695, %v5299_v41  ;;  %v5325_v3 = vmul.f32 1.442695, %v5284_v43  ;;  %v5329_v53 = vmul.f32 1.442695, %v5286_v18 }
 0x540   : > { %7849 = vpow2.f32 %v5343_v10  ;;  %v5367_v18 = vmul.f32 1.442695, %v5305_v9  ;;  %v5341_v63 = vmul.f32 1.442695, %v5292_v34  ;;  %v5349_v57 = vmul.f32 1.442695, %v5296_v15 }
 0x541   : > { %v10731_v52 = vpop.eup %7831  ;;  %7851 = vpow2.f32 %v5347_v8  ;;  %v5359_v8 = vmul.f32 1.442695, %v5301_v6  ;;  %v5333_v6 = vmul.f32 1.442695, %v5288_v22 }
 0x542   : > { %v10733_v39 = vpop.eup %7833  ;;  %v5371_v37 = vsel %vm3196_vm3, %v10731_v52, 0.0  ;;  %7853 = vpow2.f32 %v5351_v1 }
 0x543   : > { %v10737_v49 = vpop.eup %7835  ;;  %v5372_v7 = vsel %vm3196_vm3, %v10733_v39, 0.0  ;;  %7855 = vpow2.f32 %v5309_v32 }
 0x544   : > { %v10741_v58 = vpop.eup %7837  ;;  %v5373_v46 = vadd.f32 %v5372_v7, %v5371_v37  ;;  %v5374_v51 = vsel %vm3196_vm3, %v10737_v49, 0.0  ;;  %7857 = vpow2.f32 %v5313_v5  ;;  %v11532_v37 = vsub.f32 %v10647_v45, %v10663_v21 }
 0x545   : > { %v10745_v28 = vpop.eup %7839  ;;  %v5376_v38 = vsel %vm3196_vm3, %v10741_v58, 0.0  ;;  %7859 = vpow2.f32 %v5317_v56 }
 0x546   : > { %v5375_v50 = vadd.f32 %v5374_v51, %v5373_v46  ;;  %v10749_v40 = vpop.eup %7841  ;;  %v5378_v54 = vsel %vm3196_vm3, %v10745_v28, 0.0  ;;  %7861 = vpow2.f32 %v5321_v11  ;;  %v5337_v46 = vmul.f32 1.442695, %v5290_v55 }
 0x547   : > { %v10756_v1 = vpop.eup %7843  ;;  %7863 = vpow2.f32 %v5355_v30  ;;  %v5380_v43 = vsel %vm3196_vm3, %v10749_v40, 0.0 }
 0x548   : > { %v5377_v10 = vadd.f32 %v5376_v38, %v5375_v50  ;;  %v5363_v38 = vmul.f32 1.442695, %v11532_v37  ;;  %v10763_v50 = vpop.eup %7845  ;;  %7865 = vpow2.f32 %v5325_v3  ;;  %v5382_v11 = vsel %vm3196_vm3, %v10756_v1, 0.0 }
 0x549   : > { %v10765_v7 = vpop.eup %7847  ;;  %7867 = vpow2.f32 %v5359_v8  ;;  %v5384_v22 = vsel %vm3196_vm3, %v10763_v50, 0.0 }
 0x54a   : > { %v5379_v41 = vadd.f32 %v5378_v54, %v5377_v10  ;;  %v10772_v45 = vpop.eup %7849  ;;  %7869 = vpow2.f32 %v5329_v53  ;;  %v5386_v9 = vsel %vm3196_vm3, %v10765_v7, 0.0  ;;  %v5345_v10 = vmul.f32 1.442695, %v5294_v16 }
 0x54b   : > { %v10774_v5 = vpop.eup %7851  ;;  %7871 = vpow2.f32 %v5363_v38  ;;  %v5388_v2 = vsel %vm3196_vm3, %v10772_v45, 0.0 }
 0x54c   : > { %v5381_v23 = vadd.f32 %v5380_v43, %v5379_v41  ;;  %v10778_v51 = vpop.eup %7853  ;;  %7873 = vpow2.f32 %v5333_v6  ;;  %v5390_v37 = vsel %vm3196_vm3, %v10774_v5, 0.0  ;;  %v5353_v6 = vmul.f32 1.442695, %v5298_v24 }
 0x54d   : > { %v10783_v21 = vpop.eup %7855  ;;  %7875 = vpow2.f32 %v5367_v18  ;;  %v5392_v15 = vsel %vm3196_vm3, %v10778_v51, 0.0 }
 0x54e   : > { %v5383_v32 = vadd.f32 %v5382_v11, %v5381_v23  ;;  %v10787_v55 = vpop.eup %7857  ;;  %7877 = vpow2.f32 %v5337_v46  ;;  %v5402_v3 = vsel %vm3196_vm3, %v10783_v21, 0.0 }
 0x54f   : > { %v10794_v8 = vpop.eup %7859  ;;  %v5403_v34 = vsel %vm3196_vm3, %v10787_v55, 0.0  ;;  %7879 = vpow2.f32 %v5341_v63 }
 0x550   : > { %v5385_v56 = vadd.f32 %v5384_v22, %v5383_v32  ;;  %v10800_v54 = vpop.eup %7861  ;;  %v5404_v16 = vadd.f32 %v5403_v34, %v5402_v3  ;;  %v5405_v38 = vsel %vm3196_vm3, %v10794_v8, 0.0  ;;  %7881 = vpow2.f32 %v5345_v10 }
 0x551   : > { %v10805_v53 = vpop.eup %7863  ;;  %v5407_v11 = vsel %vm3196_vm3, %v10800_v54, 0.0  ;;  %7883 = vpow2.f32 %v5349_v57  ;;  %v11533_v22 = vsub.f32 %v10637_v13, %v10697_v14  ;;  %v11535_v13 = vsub.f32 %v10653_v19, %v10697_v14 }
 0x552   : > { %v5387_v30 = vadd.f32 %v5386_v9, %v5385_v56  ;;  %v10811_v43 = vpop.eup %7865  ;;  %v5406_v18 = vadd.f32 %v5405_v38, %v5404_v16  ;;  %v5394_v24 = vsel %vm3196_vm3, %v10805_v53, 0.0  ;;  %v11534_v9 = vsub.f32 %v10643_v61, %v10697_v14 }
 0x553   : > { %v10816_v59 = vpop.eup %7867  ;;  %v5357_v56 = vmul.f32 1.442695, %v11533_v22  ;;  %v5409_v10 = vsel %vm3196_vm3, %v10811_v43, 0.0  ;;  %7885 = vpow2.f32 %v5353_v6  ;;  %v5365_v34 = vmul.f32 1.442695, %v11535_v13 }
 0x554   : > { %v5389_v41 = vadd.f32 %v5388_v2, %v5387_v30  ;;  %v10822_v32 = vpop.eup %7869  ;;  %v5408_v63 = vadd.f32 %v5407_v11, %v5406_v18  ;;  %v5361_v30 = vmul.f32 1.442695, %v11534_v9  ;;  %v5396_v16 = vsel %vm3196_vm3, %v10816_v59, 0.0 }
 0x555   : > { %v10827_v0 = vpop.eup %7871  ;;  %v11536_v61 = vsub.f32 %v10659_v48, %v10697_v14  ;;  %v5411_v38 = vsel %vm3196_vm3, %v10822_v32, 0.0  ;;  %7887 = vpow2.f32 %v5357_v56 }
 0x556   : > { %v5391_v23 = vadd.f32 %v5390_v37, %v5389_v41  ;;  %v10836_v3 = vpop.eup %7873  ;;  %v5410_v41 = vadd.f32 %v5409_v10, %v5408_v63  ;;  %v5398_v19 = vsel %vm3196_vm3, %v10827_v0, 0.0  ;;  %7889 = vpow2.f32 %v5361_v30 }
 0x557   : > { %v7876_v57 = vpop.eup %7875  ;;  %v5369_v37 = vmul.f32 1.442695, %v11536_v61  ;;  %7891 = vpow2.f32 %v5365_v34 }
 0x558   : > { %v5393_v46 = vadd.f32 %v5392_v15, %v5391_v23  ;;  %v10848_v23 = vpop.eup %7877  ;;  %v5412_v6 = vadd.f32 %v5411_v38, %v5410_v41  ;;  %v5413_v15 = vsel %vm3196_vm3, %v10836_v3, 0.0  ;;  %v5400_v14 = vsel %vm3196_vm3, %v7876_v57, 0.0 }
 0x559   : > { %v10854_v11 = vpop.eup %7879  ;;  %7893 = vpow2.f32 %v5369_v37  ;;  %v5415_v22 = vsel %vm3196_vm3, %v10848_v23, 0.0 }
 0x55a   : > { %v5395_v2 = vadd.f32 %v5394_v24, %v5393_v46  ;;  %v5414_v48 = vadd.f32 %v5413_v15, %v5412_v6  ;;  %v10859_v56 = vpop.eup %7881  ;;  %v5417_v9 = vsel %vm3196_vm3, %v10854_v11, 0.0 }
 0x55b   : > { %v10863_v30 = vpop.eup %7883 }
 0x55c   : > { %v5397_v18 = vadd.f32 %v5396_v16, %v5395_v2  ;;  %v5416_v24 = vadd.f32 %v5415_v22, %v5414_v48  ;;  %v5419_v2 = vsel %vm3196_vm3, %v10859_v56, 0.0  ;;  %v5421_v41 = vsel %vm3196_vm3, %v10863_v30, 0.0 }
 0x55d   : > { %v7886_v13 = vpop.eup %7885 }
 0x55e   : > { %v5399_v46 = vadd.f32 %v5398_v19, %v5397_v18  ;;  %v5418_v10 = vadd.f32 %v5417_v9, %v5416_v24  ;;  %v5423_v38 = vsel %vm3196_vm3, %v7886_v13, 0.0 }
 0x55f   : > { %v7888_v16 = vpop.eup %7887 }
 0x560   : > { %v5401_v63 = vadd.f32 %v5400_v14, %v5399_v46  ;;  %v5420_v34 = vadd.f32 %v5419_v2, %v5418_v10  ;;  %v7890_v37 = vpop.eup %7889  ;;  %v5425_v15 = vsel %vm3196_vm3, %v7888_v16, 0.0 }
 0x561   : > { %v10870_v18 = vpop.eup %7891  ;;  %v5427_v48 = vsel %vm3196_vm3, %v7890_v37, 0.0 }
 0x562   : > { %7895 = vrcp.f32 %v5401_v63  ;;  %v5422_v61 = vadd.f32 %v5421_v41, %v5420_v34  ;;  %v5429_v63 = vsel %vm3196_vm3, %v10870_v18, 0.0 }
 0x563   : > { %v7894_v19 = vpop.eup %7893 }
 0x564   : > { %v5424_v6 = vadd.f32 %v5423_v38, %v5422_v61  ;;  %v5431_v24 = vsel %vm3196_vm3, %v7894_v19, 0.0 }
 0x566   : > { %v5426_v46 = vadd.f32 %v5425_v15, %v5424_v6 }
 0x568   : > { %v5428_v22 = vadd.f32 %v5427_v48, %v5426_v46 }
 0x56a   : > { %v5430_v41 = vadd.f32 %v5429_v63, %v5428_v22 }
 0x56c   : > { %v7896_v14 = vpop.eup %7895 }
 0x56d   : > { %v10877_v9 = vmul.f32 %v7896_v14, %v7876_v57  ;;  %v5435_v10 = vmul.f32 %v7896_v14, %v10731_v52  ;;  %v5437_v2 = vmul.f32 %v7896_v14, %v10733_v39  ;;  %v5439_v34 = vmul.f32 %v7896_v14, %v10737_v49 }
 0x56e   : > { %v5441_v61 = vmul.f32 %v7896_v14, %v10741_v58  ;;  %v10884_v38 = vmul.f32 %v7896_v14, %v10745_v28  ;;  %v10887_v6 = vmul.f32 %v7896_v14, %v10749_v40  ;;  %v10890_v15 = vmul.f32 %v7896_v14, %v10756_v1 }
 0x56f   : > { %v10893_v57 = vmul.f32 %v7896_v14, %v10763_v50  ;;  %v10896_v52 = vmul.f32 %v7896_v14, %v10765_v7  ;;  %v10899_v39 = vmul.f32 %v7896_v14, %v10772_v45  ;;  %v5432_v49 = vadd.f32 %v5431_v24, %v5430_v41 }
 0x570   : > { %v10902_v58 = vmul.f32 %v7896_v14, %v10774_v5  ;;  %v10905_v28 = vmul.f32 %v7896_v14, %v10778_v51  ;;  %v10908_v40 = vmul.f32 %v7896_v14, %v10805_v53  ;;  %v10911_v1 = vmul.f32 %v7896_v14, %v10816_v59 }
 0x571   : > { %v10914_v50 = vmul.f32 %v7896_v14, %v10827_v0  ;;  %7897 = vrcp.f32 %v5432_v49  ;;  %v11545_v49 = vld [vmem:[#allocation80_spill] sm:$0xff] }
 0x57b   : > { %v7898_v7 = vpop.eup %7897 }
 0x57c   : > { %v10916_v45 = vmul.f32 %v7898_v7, %v7894_v19  ;;  %v5436_v46 = vmul.f32 %v7898_v7, %v10783_v21  ;;  %v5438_v5 = vmul.f32 %v7898_v7, %v10787_v55  ;;  %v5440_v51 = vmul.f32 %v7898_v7, %v10794_v8 }
 0x57d   : > { %v5442_v48 = vmul.f32 %v7898_v7, %v10800_v54  ;;  %v5444_v53 = vmul.f32 %v7898_v7, %v10811_v43  ;;  %v5446_v59 = vmul.f32 %v7898_v7, %v10822_v32  ;;  %v5448_v22 = vmul.f32 %v7898_v7, %v10836_v3  ;;  %v11537_v3 = vld [vmem:[#allocation71_spill] sm:$0xff] }
 0x57e   : > { %v5467_v0 = vpack.c.bf16 %v5436_v46, %v5435_v10  ;;  %v5468_v14 = vpack.c.bf16 %v5438_v5, %v5437_v2  ;;  %v5469_v63 = vpack.c.bf16 %v5440_v51, %v5439_v34  ;;  %v5450_v19 = vmul.f32 %v7898_v7, %v10848_v23  ;;  %v11538_v23 = vld [vmem:[#allocation70_spill] sm:$0xff] }
 0x57f   : > { %v5470_v24 = vpack.c.bf16 %v5442_v48, %v5441_v61  ;;  %v5471_v21 = vpack.c.bf16 %v5444_v53, %v10884_v38  ;;  %v5472_v55 = vpack.c.bf16 %v5446_v59, %v10887_v6  ;;  %v5473_v8 = vpack.c.bf16 %v5448_v22, %v10890_v15 }
 0x580   : > { %7571 = vmatmul.mubr.msk.bf16.vlgmr.msra.gmra.mrb[112].mxu0 %vm3196_vm3, %v5467_v0  ;;  %7577 = vmatmul.mubr.msk.bf16.vlgmr.msra.gmra.mrb[112].mxu1 %vm3196_vm3, %v5468_v14  ;;  %v5474_v54 = vpack.c.bf16 %v5450_v19, %v10893_v57  ;;  %v5452_v43 = vmul.f32 %v7898_v7, %v10854_v11  ;;  %v5454_v32 = vmul.f32 %v7898_v7, %v10859_v56  ;;  %v11540_v57 = vld [vmem:[#allocation72_spill] sm:$0xff] }
 0x581   : > { %7581 = vmatpush3.bf16.msra.mxu0 %v11537_v3  ;;  %7587 = vmatpush3.bf16.msra.mxu1 %v11538_v23  ;;  %v5456_v10 = vmul.f32 %v7898_v7, %v10863_v30  ;;  %v5458_v2 = vmul.f32 %v7898_v7, %v7886_v13  ;;  %v5460_v34 = vmul.f32 %v7898_v7, %v7888_v16  ;;  %v11556_v23 = vld [vmem:[#allocation14_spill] sm:$0xff] }
 0x582   : > { %7582 = vmatprep.mubr.msk.bf16.mxu0 %vm8040_vm1, %v11418_v47  ;;  %7588 = vmatprep.mubr.msk.bf16.mxu1 %vm8040_vm1, %v11418_v47  ;;  %v5475_v41 = vpack.c.bf16 %v5452_v43, %v10896_v52  ;;  %v5476_v11 = vpack.c.bf16 %v5454_v32, %v10899_v39  ;;  %v5462_v61 = vmul.f32 %v7898_v7, %v7890_v37  ;;  %v11539_v37 = vld [vmem:[#allocation73_spill] sm:$0xff]  ;;  %v11543_v52 = vld [vmem:[#allocation78_spill] sm:$0xff] }
 0x583   : > { %7592 = vmatprep.subr.bf16.mxu0 %v11418_v47  ;;  %7598 = vmatprep.subr.bf16.mxu1 %v11418_v47  ;;  %v5477_v56 = vpack.c.bf16 %v5456_v10, %v10902_v58  ;;  %v5478_v30 = vpack.c.bf16 %v5458_v2, %v10905_v28  ;;  %v5479_v13 = vpack.c.bf16 %v5460_v34, %v10908_v40  ;;  %v11544_v39 = vld [vmem:[#allocation77_spill] sm:$0xff]  ;;  %v11546_v58 = vld [vmem:[#allocation79_spill] sm:$0xff]  ;;  %v11547_v28 = vld [vmem:[#allocation82_spill] sm:$0xff] }
 0x584   : > { %v5480_v16 = vpack.c.bf16 %v5462_v61, %v10911_v1  ;;  %v5464_v38 = vmul.f32 %v7898_v7, %v10870_v18  ;;  %v5482_v6 = vpack.c.bf16 %v10916_v45, %v10877_v9  ;;  %v11541_v18 = vld [vmem:[#allocation76_spill] sm:$0xff]  ;;  %v11542_v9 = vld [vmem:[#allocation75_spill] sm:$0xff]  ;;  %v11548_v40 = vld [vmem:[#allocation81_spill] sm:$0xff]  ;;  %v11013_v7 = vstv %s233_s30 }
 0x585   : > { %v11549_v1 = vld [vmem:[#allocation84_spill] sm:$0xff]  ;;  %v11551_v5 = vcombine.low %v10315_v36, %v10339_v44  ;;  %v11552_v48 = vcombine.high %v10315_v36, %v10339_v44  ;;  %v11557_v2 = vcombine.low %v10318_v60, %v10342_v42 }
 0x586   : > { %v5481_v15 = vpack.c.bf16 %v5464_v38, %v10914_v50  ;;  %v11550_v50 = vld [vmem:[#allocation83_spill] sm:$0xff] }
 0x588   : > { %7583 = vmatmul.mubr.msk.bf16.vlgmr.msra.gmra.mrb[116].mxu0 %vm3196_vm3, %v5469_v63  ;;  %7589 = vmatmul.mubr.msk.bf16.vlgmr.msra.gmra.mrb[116].mxu1 %vm3196_vm3, %v5470_v24  ;;  %v11553_v63 = vcombine.low %v10449_v29, %v10455_v4  ;;  %v11554_v24 = vcombine.high %v10449_v29, %v10455_v4  ;;  %v11558_v29 = vcombine.high %v10318_v60, %v10342_v42 }
 0x589   : > { %7593 = vmatpush3.bf16.msra.mxu0 %v11539_v37  ;;  %7599 = vmatpush3.bf16.msra.mxu1 %v11540_v57  ;;  %v11561_v37 = vld [vmem:[#allocation16_spill] sm:$0xff] }
 0x58a   : > { %7594 = vmatprep.mubr.msk.bf16.mxu0 %vm8040_vm1, %v11418_v47  ;;  %7600 = vmatprep.mubr.msk.bf16.mxu1 %vm8040_vm1, %v11418_v47 }
 0x58b   : > { %7604 = vmatprep.subr.bf16.mxu0 %v11418_v47  ;;  %7610 = vmatprep.subr.bf16.mxu1 %v11418_v47 }
 0x590   : > { %7595 = vmatmul.mubr.msk.bf16.vlgmr.msra.gmra.mrb[120].mxu0 %vm3196_vm3, %v5471_v21  ;;  %7601 = vmatmul.mubr.msk.bf16.vlgmr.msra.gmra.mrb[120].mxu1 %vm3196_vm3, %v5472_v55 }
 0x591   : > { %7605 = vmatpush3.bf16.msra.mxu0 %v11541_v18  ;;  %7611 = vmatpush3.bf16.msra.mxu1 %v11542_v9  ;;  %v11562_v9 = vld [vmem:[#allocation17_spill] sm:$0xff] }
 0x592   : > { %7606 = vmatprep.mubr.msk.bf16.mxu0 %vm8040_vm1, %v11418_v47  ;;  %7612 = vmatprep.mubr.msk.bf16.mxu1 %vm8040_vm1, %v11418_v47 }
 0x593   : > { %7616 = vmatprep.subr.bf16.mxu0 %v11418_v47  ;;  %7622 = vmatprep.subr.bf16.mxu1 %v11418_v47 }
 0x598   : > { %7607 = vmatmul.mubr.msk.bf16.vlgmr.msra.gmra.mrb[124].mxu0 %vm3196_vm3, %v5473_v8  ;;  %7613 = vmatmul.mubr.msk.bf16.vlgmr.msra.gmra.mrb[124].mxu1 %vm3196_vm3, %v5474_v54  ;;  %v11555_v54 = vld [vmem:[#allocation12_spill] sm:$0xff] }
 0x599   : > { %7617 = vmatpush3.bf16.msra.mxu0 %v11543_v52  ;;  %7623 = vmatpush3.bf16.msra.mxu1 %v11544_v39 }
 0x59a   : > { %7618 = vmatprep.mubr.msk.bf16.mxu0 %vm8040_vm1, %v11418_v47  ;;  %7624 = vmatprep.mubr.msk.bf16.mxu1 %vm8040_vm1, %v11418_v47 }
 0x59b   : > { %7628 = vmatprep.subr.bf16.mxu0 %v11418_v47  ;;  %7634 = vmatprep.subr.bf16.mxu1 %v11418_v47 }
 0x5a0   : > { %7619 = vmatmul.mubr.msk.bf16.vlgmr.msra.gmra.mrb[128].mxu0 %vm3196_vm3, %v5475_v41  ;;  %7625 = vmatmul.mubr.msk.bf16.vlgmr.msra.gmra.mrb[128].mxu1 %vm3196_vm3, %v5476_v11 }
 0x5a1   : > { %7629 = vmatpush3.bf16.msra.mxu0 %v11545_v49  ;;  %7635 = vmatpush3.bf16.msra.mxu1 %v11546_v58  ;;  %v11563_v49 = vcombine.low %v10323_v25, %v10345_v27 }
 0x5a2   : > { %7630 = vmatprep.mubr.msk.bf16.mxu0 %vm8040_vm1, %v11418_v47  ;;  %7636 = vmatprep.mubr.msk.bf16.mxu1 %vm8040_vm1, %v11418_v47 }
 0x5a3   : > { %7640 = vmatprep.subr.bf16.mxu0 %v11418_v47  ;;  %7646 = vmatprep.subr.bf16.mxu1 %v11418_v47 }
 0x5a8   : > { %7631 = vmatmul.mubr.msk.bf16.vlgmr.msra.gmra.mrb[132].mxu0 %vm3196_vm3, %v5477_v56  ;;  %7637 = vmatmul.mubr.msk.bf16.vlgmr.msra.gmra.mrb[132].mxu1 %vm3196_vm3, %v5478_v30  ;;  %v11559_v30 = vcombine.low %v10452_v20, %v10458_v33 }
 0x5a9   : > { %7641 = vmatpush3.bf16.msra.mxu0 %v11547_v28  ;;  %7647 = vmatpush3.bf16.msra.mxu1 %v11548_v40 }
 0x5aa   : > { %7642 = vmatprep.mubr.msk.bf16.mxu0 %vm8040_vm1, %v11418_v47  ;;  %7648 = vmatprep.mubr.msk.bf16.mxu1 %vm8040_vm1, %v11418_v47 }
 0x5ab   : > { %7652 = vmatprep.subr.bf16.mxu0 %v11418_v47  ;;  %7658 = vmatprep.subr.bf16.mxu1 %v11418_v47 }
 0x5b0   : > { %7643 = vmatmul.mubr.msk.bf16.vlgmr.msra.gmra.mrb[136].mxu0 %vm3196_vm3, %v5479_v13  ;;  %7649 = vmatmul.mubr.msk.bf16.vlgmr.msra.gmra.mrb[136].mxu1 %vm3196_vm3, %v5480_v16  ;;  %v11560_v16 = vcombine.high %v10452_v20, %v10458_v33  ;;  %v11564_v20 = vcombine.high %v10323_v25, %v10345_v27 }
 0x5b1   : > { %7653 = vmatpush3.bf16.msra.mxu0 %v11549_v1  ;;  %7659 = vmatpush3.bf16.msra.mxu1 %v11550_v50 }
 0x5b2   : > { %7654 = vmatprep.mubr.msk.bf16.mxu0 %vm8040_vm1, %v11418_v47  ;;  %7660 = vmatprep.mubr.msk.bf16.mxu1 %vm8040_vm1, %v11418_v47 }
 0x5b8   : > { %7655 = vmatmul.mubr.msk.bf16.vlgmr.msra.gmra.mrb[140].mxu0 %vm3196_vm3, %v5481_v15  ;;  %7661 = vmatmul.mubr.msk.bf16.vlgmr.msra.gmra.mrb[140].mxu1 %vm3196_vm3, %v5482_v6 }
 0x653   : > { %v5520_v45 = vpop.f32.mrb[112].mxu0  ;;  %v5564_v46 = vpop.f32.mrb[112].mxu1 }
 0x654   : > { %v6731_v51 = vadd.f32 %v11551_v5, %v5520_v45  ;;  %v6733_v53 = vadd.f32 %v11552_v48, %v5564_v46  ;;  %v7572_v59 = vpop.f32.mrb[113].mxu0  ;;  %v7578_v22 = vpop.f32.mrb[113].mxu1  ;;  %v11565_v45 = vcombine.low %v10461_v31, %v10464_v62  ;;  %v11566_v5 = vcombine.high %v10461_v31, %v10464_v62 }
 0x655   : > { %v5523_v47 = vpop.f32.mrb[114].mxu0  ;;  %v5567_v0 = vpop.f32.mrb[114].mxu1  ;;  %v11567_v59 = vld [vmem:[#allocation19_spill] sm:$0xff]  ;;  %v11570_v62 = vcombine.high %v10326_v26, %v10348_v12 }
 0x656   : > { %v6764_v14 = vmul.f32 %v11013_v7, %v6731_v51  ;;  %v6732_v19 = vadd.f32 %v11553_v63, %v5523_v47  ;;  %v6734_v21 = vadd.f32 %v11554_v24, %v5567_v0  ;;  %v7573_v55 = vpop.f32.mrb[115].mxu0  ;;  %v7579_v8 = vpop.f32.mrb[115].mxu1  ;;  %v6766_v3 = vmul.f32 %v11013_v7, %v6733_v53 }
 0x658   : > { %v6796_v43 = vadd.f32 %v6764_v14, %v11555_v54  ;;  %v6765_v36 = vmul.f32 %v11013_v7, %v6732_v19  ;;  %v6798_v57 = vadd.f32 %v6766_v3, %v11561_v37  ;;  %v6767_v60 = vmul.f32 %v11013_v7, %v6734_v21  ;;  %v11568_v14 = vld [vmem:[#allocation21_spill] sm:$0xff] }
 0x659   : > { %v11569_v19 = vcombine.low %v10326_v26, %v10348_v12  ;;  %v11573_v26 = vld [vmem:[#allocation22_spill] sm:$0xff]  ;;  %v11579_v37 = vld [vmem:[#allocation61_spill] sm:$0xff] }
 0x65a   : > { %6828 = vxpose.xlu1.b32.start [1/16] (narrow) %v6796_v43, 32  ;;  %v6797_v10 = vadd.f32 %v6765_v36, %v11556_v23  ;;  %v6799_v52 = vadd.f32 %v6767_v60, %v11562_v9  ;;  %v11571_v43 = vcombine.low %v10475_v35, %v10491_v17 }
 0x65b   : > { %v5608_v44 = vpop.f32.mrb[116].mxu0  ;;  %v5652_v32 = vpop.f32.mrb[116].mxu1 }
 0x65c   : > { %v6735_v34 = vadd.f32 %v11557_v2, %v5608_v44  ;;  %v6737_v4 = vadd.f32 %v11558_v29, %v5652_v32  ;;  %v7584_v41 = vpop.f32.mrb[117].mxu0  ;;  %v7590_v11 = vpop.f32.mrb[117].mxu1  ;;  %v11572_v44 = vcombine.high %v10475_v35, %v10491_v17  ;;  %v11574_v29 = vld [vmem:[#allocation24_spill] sm:$0xff] }
 0x65d   : > { %v5611_v61 = vpop.f32.mrb[118].mxu0  ;;  %v5655_v56 = vpop.f32.mrb[118].mxu1  ;;  %v11575_v11 = vld [vmem:[#allocation45_spill] sm:$0xff] }
 0x65e   : > { %v6736_v13 = vadd.f32 %v11559_v30, %v5611_v61  ;;  %v6738_v38 = vadd.f32 %v11560_v16, %v5655_v56  ;;  %v7585_v6 = vpop.f32.mrb[119].mxu0  ;;  %v7591_v15 = vpop.f32.mrb[119].mxu1  ;;  %6829 = vxpose.xlu1.b32.cont [2/16] (narrow) %v6797_v10, 32  ;;  %v6768_v39 = vmul.f32 %v11013_v7, %v6735_v34  ;;  %v6770_v0 = vmul.f32 %v11013_v7, %v6737_v4  ;;  %v11576_v61 = vld [vmem:[#allocation46_spill] sm:$0xff] }
 0x65f   : > { %v11577_v56 = vcombine.low %v11575_v11, %v11576_v61  ;;  %v11578_v17 = vcombine.high %v11575_v11, %v11576_v61  ;;  %v11597_v61 = vld [vmem:[#allocation20_spill] sm:$0xff] }
 0x660   : > { %v6800_v22 = vadd.f32 %v6768_v39, %v11567_v59  ;;  %v6769_v25 = vmul.f32 %v11013_v7, %v6736_v13  ;;  %v6802_v12 = vadd.f32 %v6770_v0, %v11573_v26  ;;  %v6771_v10 = vmul.f32 %v11013_v7, %v6738_v38  ;;  %v11586_v59 = vld [vmem:[#allocation55_spill] sm:$0xff] }
 0x662   : > { %6830 = vxpose.xlu1.b32.cont [3/16] (narrow) %v6798_v57, 32  ;;  %v6801_v63 = vadd.f32 %v6769_v25, %v11568_v14  ;;  %v6803_v4 = vadd.f32 %v6771_v10, %v11574_v29  ;;  %v11580_v57 = vld [vmem:[#allocation64_spill] sm:$0xff]  ;;  %v11595_v10 = vld [vmem:[#allocation18_spill] sm:$0xff] }
 0x663   : > { %v5696_v42 = vpop.f32.mrb[120].mxu0  ;;  %v5740_v18 = vpop.f32.mrb[120].mxu1  ;;  %v11581_v60 = vcombine.low %v11579_v37, %v11580_v57 }
 0x664   : > { %v6739_v58 = vadd.f32 %v11563_v49, %v5696_v42  ;;  %v6741_v33 = vadd.f32 %v11564_v20, %v5740_v18  ;;  %v7596_v28 = vpop.f32.mrb[121].mxu0  ;;  %v7602_v40 = vpop.f32.mrb[121].mxu1  ;;  %v11582_v18 = vcombine.high %v11579_v37, %v11580_v57  ;;  %v11583_v49 = vld [vmem:[#allocation26_spill] sm:$0xff]  ;;  %v11584_v20 = vld [vmem:[#allocation13_spill] sm:$0xff]  ;;  %v11602_v57 = vld [vmem:[#allocation31_spill] sm:$0xff] }
 0x665   : > { %v5699_v1 = vpop.f32.mrb[122].mxu0  ;;  %v5743_v50 = vpop.f32.mrb[122].mxu1 }
 0x666   : > { %v6740_v46 = vadd.f32 %v11565_v45, %v5699_v1  ;;  %v11060_v51 = vadd.f32 %v11566_v5, %v5743_v50  ;;  %v7597_v48 = vpop.f32.mrb[123].mxu0  ;;  %v7603_v53 = vpop.f32.mrb[123].mxu1  ;;  %6831 = vxpose.xlu1.b32.cont [4/16] (narrow) %v6799_v52, 32  ;;  %v6772_v41 = vmul.f32 %v11013_v7, %v6739_v58 }
 0x667   : > { %v11585_v48 = vld [vmem:[#allocation15_spill] sm:$0xff] }
 0x668   : > { %v6804_v58 = vadd.f32 %v6772_v41, %v11583_v49  ;;  %v6773_v1 = vmul.f32 %v11013_v7, %v6740_v46  ;;  %v6774_v46 = vmul.f32 %v11013_v7, %v6741_v33  ;;  %v11604_v49 = vld [vmem:[#allocation66_spill] sm:$0xff] }
 0x66a   : > { %6832 = vxpose.xlu1.b32.cont [5/16] (narrow) %v6800_v22, 32  ;;  %v11587_v22 = vld [vmem:[#allocation59_spill] sm:$0xff] }
 0x66b   : > { %v5784_v27 = vpop.f32.mrb[124].mxu0  ;;  %v5828_v47 = vpop.f32.mrb[124].mxu1  ;;  %v11588_v25 = vcombine.low %v11586_v59, %v11587_v22 }
 0x66c   : > { %v11069_v31 = vadd.f32 %v11569_v19, %v5784_v27  ;;  %v11074_v24 = vadd.f32 %v11570_v62, %v5828_v47  ;;  %v7608_v21 = vpop.f32.mrb[125].mxu0  ;;  %v7614_v55 = vpop.f32.mrb[125].mxu1  ;;  %v11589_v47 = vcombine.high %v11586_v59, %v11587_v22  ;;  %v11590_v19 = vld [vmem:[#allocation27_spill] sm:$0xff]  ;;  %v11608_v59 = vld [vmem:[#allocation32_spill] sm:$0xff] }
 0x66d   : > { %v5787_v8 = vpop.f32.mrb[126].mxu0  ;;  %v5831_v54 = vpop.f32.mrb[126].mxu1  ;;  %v6805_v62 = vadd.f32 %v6773_v1, %v11590_v19  ;;  %v11610_v19 = vld [vmem:[#allocation63_spill] sm:$0xff] }
 0x66e   : > { %v11079_v36 = vadd.f32 %v11571_v43, %v5787_v8  ;;  %v11084_v32 = vadd.f32 %v11572_v44, %v5831_v54  ;;  %v7609_v3 = vpop.f32.mrb[127].mxu0  ;;  %v7615_v23 = vpop.f32.mrb[127].mxu1  ;;  %6833 = vxpose.xlu1.b32.cont [6/16] (narrow) %v6801_v63, 32  ;;  %v11591_v8 = vld [vmem:[#allocation62_spill] sm:$0xff]  ;;  %v11592_v54 = vld [vmem:[#allocation65_spill] sm:$0xff] }
 0x66f   : > { %v11593_v43 = vcombine.low %v11591_v8, %v11592_v54  ;;  %v11594_v3 = vcombine.high %v11591_v8, %v11592_v54 }
 0x672   : > { %6834 = vxpose.xlu1.b32.cont [7/16] (narrow) %v6802_v12, 32 }
 0x673   : > { %v5872_v2 = vpop.f32.mrb[128].mxu0  ;;  %v5916_v34 = vpop.f32.mrb[128].mxu1 }
 0x674   : > { %v6747_v35 = vadd.f32 %v11577_v56, %v5872_v2  ;;  %v6749_v30 = vadd.f32 %v11578_v17, %v5916_v34  ;;  %v7620_v13 = vpop.f32.mrb[129].mxu0  ;;  %v7626_v16 = vpop.f32.mrb[129].mxu1  ;;  %v11596_v34 = vld [vmem:[#allocation29_spill] sm:$0xff]  ;;  %v11598_v17 = vld [vmem:[#allocation58_spill] sm:$0xff] }
 0x675   : > { %v5875_v6 = vpop.f32.mrb[130].mxu0  ;;  %v5919_v15 = vpop.f32.mrb[130].mxu1  ;;  %v6806_v29 = vadd.f32 %v6774_v46, %v11596_v34  ;;  %v11616_v34 = vld [vmem:[#allocation50_spill] sm:$0xff] }
 0x676   : > { %v6780_v38 = vmul.f32 %v11013_v7, %v6747_v35  ;;  %v6748_v42 = vadd.f32 %v11581_v60, %v5875_v6  ;;  %v6750_v9 = vadd.f32 %v11582_v18, %v5919_v15  ;;  %v7621_v52 = vpop.f32.mrb[131].mxu0  ;;  %v7627_v39 = vpop.f32.mrb[131].mxu1  ;;  %6835 = vxpose.xlu1.b32.cont [8/16] (narrow) %v6803_v4, 32  ;;  %v6782_v5 = vmul.f32 %v11013_v7, %v6749_v30  ;;  %v11599_v30 = vld [vmem:[#allocation57_spill] sm:$0xff] }
 0x677   : > { %v6775_v4 = vmul.f32 %v11013_v7, %v11060_v51  ;;  %v11600_v13 = vcombine.low %v11598_v17, %v11599_v30  ;;  %v11601_v6 = vcombine.high %v11598_v17, %v11599_v30  ;;  %v6776_v60 = vmul.f32 %v11013_v7, %v11069_v31  ;;  %v11603_v39 = vld [vmem:[#allocation67_spill] sm:$0xff] }
 0x678   : > { %v6812_v28 = vadd.f32 %v6780_v38, %v11584_v20  ;;  %v6781_v40 = vmul.f32 %v11013_v7, %v6748_v42  ;;  %v6814_v2 = vadd.f32 %v6782_v5, %v11595_v10  ;;  %v6783_v33 = vmul.f32 %v11013_v7, %v6750_v9 }
 0x679   : > { %v6807_v51 = vadd.f32 %v6775_v4, %v11602_v57  ;;  %v6808_v22 = vadd.f32 %v6776_v60, %v11608_v59  ;;  %v11622_v57 = vld [vmem:[#allocation37_spill] sm:$0xff] }
 0x67a   : > { %6860 = vxpose.xlu0.b32.start [1/16] (narrow) %v6812_v28, 32  ;;  %6836 = vxpose.xlu1.b32.cont [9/16] (narrow) %v6804_v58, 32  ;;  %v6813_v53 = vadd.f32 %v6781_v40, %v11585_v48  ;;  %v6815_v56 = vadd.f32 %v6783_v33, %v11597_v61  ;;  %v11605_v58 = vcombine.low %v11603_v39, %v11604_v49  ;;  %v11615_v33 = vld [vmem:[#allocation49_spill] sm:$0xff] }
 0x67b   : > { %v5960_v50 = vpop.f32.mrb[132].mxu0  ;;  %v6004_v45 = vpop.f32.mrb[132].mxu1  ;;  %v11606_v28 = vcombine.high %v11603_v39, %v11604_v49  ;;  %v11623_v60 = vld [vmem:[#allocation33_spill] sm:$0xff]  ;;  %v11625_v39 = vld [vmem:[#allocation38_spill] sm:$0xff] }
 0x67c   : > { %v6751_v27 = vadd.f32 %v11588_v25, %v5960_v50  ;;  %v6753_v0 = vadd.f32 %v11589_v47, %v6004_v45  ;;  %v7632_v14 = vpop.f32.mrb[133].mxu0  ;;  %v7638_v63 = vpop.f32.mrb[133].mxu1  ;;  %v11607_v45 = vld [vmem:[#allocation23_spill] sm:$0xff]  ;;  %v6777_v25 = vmul.f32 %v11013_v7, %v11079_v36  ;;  %v6778_v36 = vmul.f32 %v11013_v7, %v11074_v24  ;;  %v11619_v24 = vld [vmem:[#allocation28_spill] sm:$0xff] }
 0x67d   : > { %v5963_v21 = vpop.f32.mrb[134].mxu0  ;;  %v6007_v55 = vpop.f32.mrb[134].mxu1  ;;  %v11609_v63 = vld [vmem:[#allocation25_spill] sm:$0xff] }
 0x67e   : > { %v6752_v44 = vadd.f32 %v11593_v43, %v5963_v21  ;;  %v6754_v23 = vadd.f32 %v11594_v3, %v6007_v55  ;;  %v7633_v26 = vpop.f32.mrb[135].mxu0  ;;  %v7639_v12 = vpop.f32.mrb[135].mxu1  ;;  %6861 = vxpose.xlu0.b32.cont [2/16] (narrow) %v6813_v53, 32  ;;  %6837 = vxpose.xlu1.b32.cont [10/16] (narrow) %v6805_v62, 32  ;;  %v6784_v35 = vmul.f32 %v11013_v7, %v6751_v27  ;;  %v11611_v62 = vld [vmem:[#allocation60_spill] sm:$0xff]  ;;  %v11614_v3 = vld [vmem:[#allocation34_spill] sm:$0xff] }
 0x67f   : > { %v6786_v14 = vmul.f32 %v11013_v7, %v6753_v0  ;;  %v11612_v21 = vcombine.low %v11610_v19, %v11611_v62  ;;  %v11613_v8 = vcombine.high %v11610_v19, %v11611_v62  ;;  %v6809_v26 = vadd.f32 %v6777_v25, %v11614_v3 }
 0x680   : > { %v6816_v31 = vadd.f32 %v6784_v35, %v11607_v45  ;;  %v6785_v5 = vmul.f32 %v11013_v7, %v6752_v44  ;;  %v6787_v17 = vmul.f32 %v11013_v7, %v6754_v23  ;;  %v11624_v23 = vld [vmem:[#allocation35_spill] sm:$0xff] }
 0x681   : > { %v6818_v35 = vadd.f32 %v6786_v14, %v11619_v24 }
 0x682   : > { %6862 = vxpose.xlu0.b32.cont [3/16] (narrow) %v6814_v2, 32  ;;  %6838 = vxpose.xlu1.b32.cont [11/16] (narrow) %v6806_v29, 32  ;;  %v6817_v46 = vadd.f32 %v6785_v5, %v11609_v63  ;;  %v11617_v29 = vcombine.low %v11615_v33, %v11616_v34 }
 0x683   : > { %v6048_v41 = vpop.f32.mrb[136].mxu0  ;;  %v6092_v11 = vpop.f32.mrb[136].mxu1 }
 0x684   : > { %v6755_v16 = vadd.f32 %v11600_v13, %v6048_v41  ;;  %v6757_v15 = vadd.f32 %v11601_v6, %v6092_v11  ;;  %v7644_v38 = vpop.f32.mrb[137].mxu0  ;;  %v7650_v37 = vpop.f32.mrb[137].mxu1  ;;  %v11618_v41 = vcombine.high %v11615_v33, %v11616_v34 }
 0x685   : > { %v6051_v42 = vpop.f32.mrb[138].mxu0  ;;  %v6095_v18 = vpop.f32.mrb[138].mxu1  ;;  %v11621_v38 = vld [vmem:[#allocation30_spill] sm:$0xff] }
 0x686   : > { %v6788_v9 = vmul.f32 %v11013_v7, %v6755_v16  ;;  %v6790_v52 = vmul.f32 %v11013_v7, %v6757_v15  ;;  %v6756_v20 = vadd.f32 %v11605_v58, %v6051_v42  ;;  %v6758_v40 = vadd.f32 %v11606_v28, %v6095_v18  ;;  %v7645_v1 = vpop.f32.mrb[139].mxu0  ;;  %v7651_v50 = vpop.f32.mrb[139].mxu1  ;;  %6863 = vxpose.xlu0.b32.cont [4/16] (narrow) %v6815_v56, 32  ;;  %v11620_v16 = vld [vmem:[#allocation36_spill] sm:$0xff]  ;;  %v11626_v58 = vld [vmem:[#allocation39_spill] sm:$0xff]  ;;  %v11628_v28 = vld [vmem:[#allocation41_spill] sm:$0xff] }
 0x687   : > { %6839 = vxpose.xlu1.b32.cont [12/16] (narrow) %v6807_v51, 32  ;;  %v6810_v6 = vadd.f32 %v6778_v36, %v11620_v16  ;;  %v6779_v15 = vmul.f32 %v11013_v7, %v11084_v32  ;;  %v6819_v37 = vadd.f32 %v6787_v17, %v11621_v38  ;;  %v11627_v32 = vld [vmem:[#allocation40_spill] sm:$0xff]  ;;  %v11629_v1 = vld [vmem:[#allocation42_spill] sm:$0xff] }
 0x688   : > { %v6789_v48 = vmul.f32 %v11013_v7, %v6756_v20  ;;  %v6791_v53 = vmul.f32 %v11013_v7, %v6758_v40  ;;  %v6820_v42 = vadd.f32 %v6788_v9, %v11623_v60  ;;  %v6822_v49 = vadd.f32 %v6790_v52, %v11625_v39  ;;  %v11630_v9 = vld [vmem:[#allocation43_spill] sm:$0xff] }
 0x689   : > { %v6811_v51 = vadd.f32 %v6779_v15, %v11622_v57 }
 0x68a   : > { %6864 = vxpose.xlu0.b32.cont [5/16] (narrow) %v6816_v31, 32  ;;  %v6821_v18 = vadd.f32 %v6789_v48, %v11624_v23 }
 0x68b   : > { %6840 = vxpose.xlu1.b32.cont [13/16] (narrow) %v6808_v22, 32  ;;  %v6136_v27 = vpop.f32.mrb[140].mxu0  ;;  %v6180_v47 = vpop.f32.mrb[140].mxu1 }
 0x68c   : > { %v6759_v55 = vadd.f32 %v11612_v21, %v6136_v27  ;;  %v6761_v54 = vadd.f32 %v11613_v8, %v6180_v47  ;;  %v7656_v43 = vpop.f32.mrb[141].mxu0  ;;  %v7662_v44 = vpop.f32.mrb[141].mxu1 }
 0x68d   : > { %v6139_v12 = vpop.f32.mrb[142].mxu0  ;;  %v6183_v10 = vpop.f32.mrb[142].mxu1 }
 0x68e   : > { %v6792_v0 = vmul.f32 %v11013_v7, %v6759_v55  ;;  %v6794_v2 = vmul.f32 %v11013_v7, %v6761_v54  ;;  %v6760_v4 = vadd.f32 %v11617_v29, %v6139_v12  ;;  %v6762_v11 = vadd.f32 %v11618_v41, %v6183_v10  ;;  %v7657_v61 = vpop.f32.mrb[143].mxu0  ;;  %v7663_v56 = vpop.f32.mrb[143].mxu1  ;;  %6865 = vxpose.xlu0.b32.cont [6/16] (narrow) %v6817_v46, 32 }
 0x68f   : > { %6841 = vxpose.xlu1.b32.cont [14/16] (narrow) %v6809_v26, 32 }
 0x690   : > { %v6793_v30 = vmul.f32 %v11013_v7, %v6760_v4  ;;  %v6795_v13 = vmul.f32 %v11013_v7, %v6762_v11  ;;  %v6823_v7 = vadd.f32 %v6791_v53, %v11626_v58  ;;  %v6824_v20 = vadd.f32 %v6792_v0, %v11627_v32 }
 0x691   : > { %v6826_v50 = vadd.f32 %v6794_v2, %v11629_v1 }
 0x692   : > { %6866 = vxpose.xlu0.b32.cont [7/16] (narrow) %v6818_v35, 32  ;;  %v6825_v40 = vadd.f32 %v6793_v30, %v11628_v28  ;;  %v6827_v45 = vadd.f32 %v6795_v13, %v11630_v9 }
 0x693   : > { %6842 = vxpose.xlu1.b32.cont [15/16] (narrow) %v6810_v6, 32 }
 0x696   : > { %6867 = vxpose.xlu0.b32.cont [8/16] (narrow) %v6819_v37, 32 }
 0x697   : > { %6843 = vxpose.xlu1.b32.end [16/16] (narrow) %v6811_v51, 32 }
 0x69a   : > { %6868 = vxpose.xlu0.b32.cont [9/16] (narrow) %v6820_v42, 32 }
 0x69e   : > { %6869 = vxpose.xlu0.b32.cont [10/16] (narrow) %v6821_v18, 32 }
 0x6a2   : > { %6870 = vxpose.xlu0.b32.cont [11/16] (narrow) %v6822_v49, 32 }
 0x6a6   : > { %6871 = vxpose.xlu0.b32.cont [12/16] (narrow) %v6823_v7, 32 }
 0x6aa   : > { %6872 = vxpose.xlu0.b32.cont [13/16] (narrow) %v6824_v20, 32 }
 0x6ae   : > { %6873 = vxpose.xlu0.b32.cont [14/16] (narrow) %v6825_v40, 32 }
 0x6b2   : > { %6874 = vxpose.xlu0.b32.cont [15/16] (narrow) %v6826_v50, 32 }
 0x6b6   : > { %6875 = vxpose.xlu0.b32.end [16/16] (narrow) %v6827_v45, 32 }
 0x6db   : > { %v6844_v31 = vpop.trf.xlu1 }
 0x6dc   : > { %6892 = vst [vmem:[%s231_s10] sm:$0xff] %v6844_v31 }
 0x6df   : > { %v6845_v52 = vpop.trf.xlu1 }
 0x6e0   : > { %6894 = vst [vmem:[%s231_s10 + $0x10] sm:$0xff] %v6845_v52 }
 0x6e3   : > { %v6846_v5 = vpop.trf.xlu1 }
 0x6e4   : > { %6896 = vst [vmem:[%s231_s10 + $0x20] sm:$0xff] %v6846_v5 }
 0x6e7   : > { %v6847_v48 = vpop.trf.xlu1 }
 0x6e8   : > { %6898 = vst [vmem:[%s231_s10 + $0x30] sm:$0xff] %v6847_v48 }
 0x6fa   : > { %v6876_v53 = vpop.trf.xlu0 }
 0x6fb   : > { %6893 = vst [vmem:[%s231_s10 + $0x8] sm:$0xff] %v6876_v53 }
 0x6fe   : > { %v6877_v59 = vpop.trf.xlu0 }
 0x6ff   : > { %6895 = vst [vmem:[%s231_s10 + $0x18] sm:$0xff] %v6877_v59 }
 0x702   : > { %v6878_v22 = vpop.trf.xlu0 }
 0x703   : > { %6897 = vst [vmem:[%s231_s10 + $0x28] sm:$0xff] %v6878_v22 }
 0x706   : > { %v6879_v25 = vpop.trf.xlu0 }
 0x707   : > { %6899 = vst [vmem:[%s231_s10 + $0x38] sm:$0xff] %v6879_v25 }
 0x708   : > { %7970 = shalt.err (!%p7967_p7)
}
 0x709   : > { %s7971_s13 = scalar_lea.hbm %s11198_s7, 1024  ;;  %s7975_s24 = scalar_lea.hbm %s11246_s4, 2048 }
 0x70a   : > { %p7972_p9 = scmp.ne.s32.totalorder %s11198_s7, %s7971_s13  ;;  %p7976_p5 = scmp.lt.u32.totalorder %s11198_s7, %s11246_s4 }
 0x70b   : > { %p7977_p11 = scmp.lt.u32.totalorder %s7975_s24, %s7971_s13  ;;  %p7979_p4 = scmp.lt.u32.totalorder %s7971_s13, %s11198_s7 }
 0x70c   : > { %p7973_p2 = pnand %p7972_p9, %p8163_p12 }
 0x70d   : > { %p7978_p1 = por %p7977_p11, %p7976_p5 }
 0x70e   : > { %p7974_p0 = pneg %p7973_p2 }
 0x70f   : > { %p7980_p6 = por %p7979_p4, %p7978_p1 }
 0x711   : > { %p7981_p8 = pnand %p7980_p6, %p7974_p0 }
 0x713   : > { %7984 = shalt.err (!%p7981_p8)
}
 0x714   : > { %s8042_s30 = smov 256   ;;  %s8043_s10 = smov 16  }
 0x715   : > { %7670 = dma.vmem_to_hbm [thread:$0]  (%p8163_p12), %s11193_s15, 1024, %s11198_s7, %s6901_s27, %s8042_s30, %s8042_s30, %s8043_s10  }
 0x716 PF: > { %s6929_s16 = sand.u32 1, %s8015_s17   ;;  %p11631_p10 = scmp.ne.s32.totalorder %s11373_s23, 0 }
 0x717   : > { %p11632_p13 = scmp.ge.s32.totalorder %s8027_s20, 2  ;;  %s6930_s5 = scalar_lea.sflag [#allocation5], %s6929_s16 }
 0x719   : > { %p7681_p3 = pnand %p11632_p13, %p11631_p10 }
 0x71b   : > { %8010 = dma.done.wait (!%p7681_p3), %s6930_s5, 1024  }
 0x71c   : > { %8012 = vsyncadd (!%p7681_p3), %s6930_s5, 4294966272  ;;  %p19_p7 = scmp.ge.s32.totalorder %s8128_s28, 4   ;;  %s11633_s17 = smov %s8019_s18 }
 0x71d   : > { %s11634_s18 = smov %s8023_s19  ;;  %s11635_s19 = smov %s8159_s21 }
 0x71e   : > { %s11636_s20 = smov %s8128_s28  ;;  %21 = sbr.rel (!%p19_p7) target bundleno = 8 (0x8), region = 85 }
 0x725   :  { %6935 = vsyncpa [#allocation4], 1 }
 0x726   :  { %6937 = vsyncpa [#allocation4 + $0x1], 1 }
 0x727   :  { %6938 = vsyncpa [#allocation7], 1 }
 0x728   :  { %6939 = vsyncpa [#allocation5], 1 }
 0x729   :  { %6941 = vsyncpa [#allocation5 + $0x1], 1 }

</bundles_post_ra>
